<compile_context>
chip_gen: v7x
topology: tpu7x:2x2x1
jax: 0.10.0
libtpu: 0.0.40
codegen_flags: <defaults>
</compile_context>

<pallas_src>
import functools

import jax
import jax.numpy as jnp
from jax import lax
from jax.experimental import pallas as pl
from jax.experimental.pallas import tpu as pltpu


# ----------------------------- Pallas kernel ------------------------------ #

def bigru_layer_kernel(x_ref,
                       wf_ih_ref, wf_hh_ref, bf_ih_ref, bf_hh_ref,
                       wb_ih_ref, wb_hh_ref, bb_ih_ref, bb_hh_ref,
                       out_f_ref, out_b_ref, hf_ref, hb_ref,
                       gi_f_ref, gi_b_ref,
                       *, hidden_size, seq_len, batch):
    """One bidirectional GRU layer, full sequence, both directions fused.

    x_ref:      (T*Bp, D)   time-major, flattened (row = t*Bp + b)
    out_*_ref:  (T*Bp, H)   per-timestep hidden states, same layout
    h*_ref:     (Bp, H)     final hidden state per direction
    gi_*_ref:   (T*Bp, 3H)  VMEM scratch with precomputed input projections
    """
    H, T, Bp = hidden_size, seq_len, batch

    # -- hoisted input projections: one big MXU matmul per direction,
    #    input bias folded in once (outside the recurrence).
    x = x_ref[...]
    gi_f_ref[...] = (
        jnp.dot(x, wf_ih_ref[...], preferred_element_type=jnp.float32)
        + bf_ih_ref[...])
    gi_b_ref[...] = (
        jnp.dot(x, wb_ih_ref[...], preferred_element_type=jnp.float32)
        + bb_ih_ref[...])

    # Hoist weight/bias loads out of the time loop.
    whh_f = wf_hh_ref[...]
    whh_b = wb_hh_ref[...]
    bhh_f = bf_hh_ref[...]
    bhh_b = bb_hh_ref[...]

    def cell(gi_t, h, w_hh, b_hh):
        # PyTorch nn.GRU cell, gate order [r, z, n].
        gh = jnp.dot(h, w_hh, preferred_element_type=jnp.float32) + b_hh
        r = jax.nn.sigmoid(gi_t[:, :H] + gh[:, :H])
        z = jax.nn.sigmoid(gi_t[:, H:2 * H] + gh[:, H:2 * H])
        n = jnp.tanh(gi_t[:, 2 * H:] + r * gh[:, 2 * H:])
        return (1.0 - z) * n + z * h

    def step(t, carry):
        h_f, h_b = carry
        # forward processes time t, backward processes time T-1-t;
        # row offsets are multiples of the padded batch (a multiple of 8).
        rf = pl.multiple_of(t * Bp, 8)
        rb = pl.multiple_of((T - 1 - t) * Bp, 8)
        h_f = cell(gi_f_ref[pl.ds(rf, Bp), :], h_f, whh_f, bhh_f)
        h_b = cell(gi_b_ref[pl.ds(rb, Bp), :], h_b, whh_b, bhh_b)
        out_f_ref[pl.ds(rf, Bp), :] = h_f
        out_b_ref[pl.ds(rb, Bp), :] = h_b
        return (h_f, h_b)

    h0 = jnp.zeros((Bp, H), jnp.float32)
    h_f, h_b = lax.fori_loop(0, T, step, (h0, h0), unroll=True)
    hf_ref[...] = h_f
    hb_ref[...] = h_b


def bigru_layer(x_flat, wf_ih, wf_hh, bf_ih, bf_hh,
                wb_ih, wb_hh, bb_ih, bb_hh, *, seq_len, batch):
    """Run one fused bidirectional GRU layer on x_flat: (T*Bp, D_in)."""
    T, Bp = seq_len, batch
    H = wf_hh.shape[0]
    TB = x_flat.shape[0]

    vmem = lambda: pl.BlockSpec(memory_space=pltpu.MemorySpace.VMEM)
    kernel = functools.partial(
        bigru_layer_kernel, hidden_size=H, seq_len=T, batch=Bp)

    out_f, out_b, h_f, h_b = pl.pallas_call(
        kernel,
        out_shape=(jax.ShapeDtypeStruct((TB, H), jnp.float32),   # fwd sequence
                   jax.ShapeDtypeStruct((TB, H), jnp.float32),   # bwd sequence
                   jax.ShapeDtypeStruct((Bp, H), jnp.float32),   # fwd final h
                   jax.ShapeDtypeStruct((Bp, H), jnp.float32)),  # bwd final h
        in_specs=[vmem() for _ in range(9)],
        out_specs=(vmem(), vmem(), vmem(), vmem()),
        scratch_shapes=[pltpu.VMEM((TB, 3 * H), jnp.float32),
                        pltpu.VMEM((TB, 3 * H), jnp.float32)],
    )(x_flat, wf_ih, wf_hh, bf_ih, bf_hh, wb_ih, wb_hh, bb_ih, bb_hh)
    return out_f, out_b, h_f, h_b


# ------------------------------ Module glue ------------------------------- #

def init_params(key, vocab_size, embedding_dim, hidden_size, num_layers):
    """Deterministic parameter init matching nn.Embedding + nn.GRU shapes."""
    params = {}
    k_emb, key = jax.random.split(key)
    emb = jax.random.normal(k_emb, (vocab_size, embedding_dim), jnp.float32)
    emb = emb.at[0].set(0.0)                     # padding_idx=0
    params["embedding"] = emb

    H = hidden_size
    bound = 1.0 / jnp.sqrt(H)
    gru = []
    for layer in range(num_layers):
        d_in = embedding_dim if layer == 0 else 2 * H
        layer_params = []
        for _direction in range(2):              # forward, backward
            key, k1, k2, k3, k4 = jax.random.split(key, 5)
            w_ih = jax.random.uniform(k1, (d_in, 3 * H), jnp.float32, -bound, bound)
            w_hh = jax.random.uniform(k2, (H, 3 * H), jnp.float32, -bound, bound)
            b_ih = jax.random.uniform(k3, (1, 3 * H), jnp.float32, -bound, bound)
            b_hh = jax.random.uniform(k4, (1, 3 * H), jnp.float32, -bound, bound)
            layer_params.append((w_ih, w_hh, b_ih, b_hh))
        gru.append(layer_params)
    params["gru"] = gru
    return params


def gru_encoder_forward(params, tokens):
    """tokens: int32 (B, T). Returns (B, 2*H) = concat(h_n[-2], h_n[-1])."""
    B, T = tokens.shape
    Bp = ((B + 7) // 8) * 8                              # pad batch to sublanes
    tok_p = jnp.pad(tokens, ((0, Bp - B), (0, 0)))       # extra rows use token 0
    emb = params["embedding"][tok_p.T]                   # (T, Bp, E) time-major gather
    x = emb.reshape(T * Bp, emb.shape[-1])               # flat time-major layout

    h_f = h_b = None
    for layer_params in params["gru"]:
        (wf_ih, wf_hh, bf_ih, bf_hh) = layer_params[0]
        (wb_ih, wb_hh, bb_ih, bb_hh) = layer_params[1]
        out_f, out_b, h_f, h_b = bigru_layer(
            x, wf_ih, wf_hh, bf_ih, bf_hh, wb_ih, wb_hh, bb_ih, bb_hh,
            seq_len=T, batch=Bp)
        x = jnp.concatenate([out_f, out_b], axis=-1)     # next layer input (T*Bp, 2H)

    out = jnp.concatenate([h_f, h_b], axis=1)[:B]        # (B, 2H)
    # TODO(synk): nn.Dropout(0.1) is stochastic in train mode; eval-mode identity here.
    return out


# ------------------------- Pure-JAX reference (check) ---------------------- #

def _gru_cell_ref(h, x, w_ih, w_hh, b_ih, b_hh):
    H = h.shape[-1]
    gi = x @ w_ih + b_ih
    gh = h @ w_hh + b_hh
    r = jax.nn.sigmoid(gi[:, :H] + gh[:, :H])
    z = jax.nn.sigmoid(gi[:, H:2 * H] + gh[:, H:2 * H])
    n = jnp.tanh(gi[:, 2 * H:] + r * gh[:, 2 * H:])
    return (1.0 - z) * n + z * h


def _gru_pass_ref(x_seq, w_ih, w_hh, b_ih, b_hh, reverse):
    T, B, _ = x_seq.shape
    H = w_hh.shape[0]
    xs = x_seq[::-1] if reverse else x_seq
    def step(h, x):
        h_new = _gru_cell_ref(h, x, w_ih, w_hh, b_ih, b_hh)
        return h_new, h_new
    h_T, outs = lax.scan(step, jnp.zeros((B, H), jnp.float32), xs)
    if reverse:
        outs = outs[::-1]
    return outs, h_T


def gru_encoder_forward_ref(params, tokens):
    x = jnp.transpose(params["embedding"][tokens], (1, 0, 2))
    h_f = h_b = None
    for layer_params in params["gru"]:
        (wf_ih, wf_hh, bf_ih, bf_hh) = layer_params[0]
        (wb_ih, wb_hh, bb_ih, bb_hh) = layer_params[1]
        of, h_f = _gru_pass_ref(x, wf_ih, wf_hh, bf_ih, bf_hh, False)
        ob, h_b = _gru_pass_ref(x, wb_ih, wb_hh, bb_ih, bb_hh, True)
        x = jnp.concatenate([of, ob], axis=-1)
    return jnp.concatenate([h_f, h_b], axis=1)


# --------------------------------- main ------------------------------------ #

if __name__ == "__main__":
    vocab_size, embedding_dim, hidden_size = 50, 16, 32
    num_layers, batch, seq_len = 2, 2, 8

    key = jax.random.PRNGKey(0)
    k_params, k_tokens = jax.random.split(key)
    params = init_params(k_params, vocab_size, embedding_dim, hidden_size, num_layers)
    tokens = jax.random.randint(k_tokens, (batch, seq_len), 0, vocab_size, jnp.int32)

    fwd = jax.jit(gru_encoder_forward)
    out = jax.block_until_ready(fwd(params, tokens))

    ref = jax.block_until_ready(gru_encoder_forward_ref(params, tokens))
    assert out.shape == (batch, 2 * hidden_size)
    assert jnp.allclose(out, ref, atol=1e-4, rtol=1e-4), "Pallas GRU mismatch vs reference"

    print("KERNEL_OK")
</pallas_src>

<mosaic_0001>
module attributes {stable_mosaic.version = 11 : i64} {
  func.func @bigru_layer_kernel(%arg0: memref<64x16xf32, #tpu.memory_space<vmem>>, %arg1: memref<16x96xf32, #tpu.memory_space<vmem>>, %arg2: memref<32x96xf32, #tpu.memory_space<vmem>>, %arg3: memref<1x96xf32, #tpu.memory_space<vmem>>, %arg4: memref<1x96xf32, #tpu.memory_space<vmem>>, %arg5: memref<16x96xf32, #tpu.memory_space<vmem>>, %arg6: memref<32x96xf32, #tpu.memory_space<vmem>>, %arg7: memref<1x96xf32, #tpu.memory_space<vmem>>, %arg8: memref<1x96xf32, #tpu.memory_space<vmem>>, %arg9: memref<64x32xf32, #tpu.memory_space<vmem>>, %arg10: memref<64x32xf32, #tpu.memory_space<vmem>>, %arg11: memref<8x32xf32, #tpu.memory_space<vmem>>, %arg12: memref<8x32xf32, #tpu.memory_space<vmem>>, %arg13: memref<64x96xf32, #tpu.memory_space<vmem>>, %arg14: memref<64x96xf32, #tpu.memory_space<vmem>>) attributes {dimension_semantics = [], scalar_prefetch = 0 : i64, scratch_operands = 2 : i64, tpu.core_type = #tpu.core_type<tc>} {
    %c0 = arith.constant 0 : index
    %c0_0 = arith.constant 0 : index
    %0 = vector.load %arg0[%c0, %c0_0] : memref<64x16xf32, #tpu.memory_space<vmem>>, vector<64x16xf32>
    %c0_1 = arith.constant 0 : index
    %c0_2 = arith.constant 0 : index
    %1 = vector.load %arg1[%c0_1, %c0_2] : memref<16x96xf32, #tpu.memory_space<vmem>>, vector<16x96xf32>
    %cst = arith.constant dense<0.000000e+00> : vector<64x96xf32>
    %2 = tpu.matmul %0, %1, %cst {dimension_numbers = #tpu.dot_dimension_numbers<[1], [0], [0], [1], [0, 0, 1, 1], [], []>} : vector<64x16xf32>, vector<16x96xf32>, vector<64x96xf32> -> vector<64x96xf32>
    %c0_3 = arith.constant 0 : index
    %c0_4 = arith.constant 0 : index
    %3 = vector.load %arg3[%c0_3, %c0_4] : memref<1x96xf32, #tpu.memory_space<vmem>>, vector<1x96xf32>
    %4 = vector.broadcast %3 : vector<1x96xf32> to vector<64x96xf32>
    %5 = arith.addf %2, %4 : vector<64x96xf32>
    %c0_5 = arith.constant 0 : index
    %c0_6 = arith.constant 0 : index
    %6 = vector.load %arg13[%c0_5, %c0_6] : memref<64x96xf32, #tpu.memory_space<vmem>>, vector<64x96xf32>
    tpu.vector_store %arg13[%c0_5, %c0_6], %5 {strides = array<i32>} : memref<64x96xf32, #tpu.memory_space<vmem>>, vector<64x96xf32>,
    %c0_7 = arith.constant 0 : index
    %c0_8 = arith.constant 0 : index
    %7 = vector.load %arg5[%c0_7, %c0_8] : memref<16x96xf32, #tpu.memory_space<vmem>>, vector<16x96xf32>
    %cst_9 = arith.constant dense<0.000000e+00> : vector<64x96xf32>
    %8 = tpu.matmul %0, %7, %cst_9 {dimension_numbers = #tpu.dot_dimension_numbers<[1], [0], [0], [1], [0, 0, 1, 1], [], []>} : vector<64x16xf32>, vector<16x96xf32>, vector<64x96xf32> -> vector<64x96xf32>
    %c0_10 = arith.constant 0 : index
    %c0_11 = arith.constant 0 : index
    %9 = vector.load %arg7[%c0_10, %c0_11] : memref<1x96xf32, #tpu.memory_space<vmem>>, vector<1x96xf32>
    %10 = vector.broadcast %9 : vector<1x96xf32> to vector<64x96xf32>
    %11 = arith.addf %8, %10 : vector<64x96xf32>
    %c0_12 = arith.constant 0 : index
    %c0_13 = arith.constant 0 : index
    %12 = vector.load %arg14[%c0_12, %c0_13] : memref<64x96xf32, #tpu.memory_space<vmem>>, vector<64x96xf32>
    tpu.vector_store %arg14[%c0_12, %c0_13], %11 {strides = array<i32>} : memref<64x96xf32, #tpu.memory_space<vmem>>, vector<64x96xf32>,
    %c0_14 = arith.constant 0 : index
    %c0_15 = arith.constant 0 : index
    %13 = vector.load %arg2[%c0_14, %c0_15] : memref<32x96xf32, #tpu.memory_space<vmem>>, vector<32x96xf32>
    %c0_16 = arith.constant 0 : index
    %c0_17 = arith.constant 0 : index
    %14 = vector.load %arg6[%c0_16, %c0_17] : memref<32x96xf32, #tpu.memory_space<vmem>>, vector<32x96xf32>
    %c0_18 = arith.constant 0 : index
    %c0_19 = arith.constant 0 : index
    %15 = vector.load %arg4[%c0_18, %c0_19] : memref<1x96xf32, #tpu.memory_space<vmem>>, vector<1x96xf32>
    %c0_20 = arith.constant 0 : index
    %c0_21 = arith.constant 0 : index
    %16 = vector.load %arg8[%c0_20, %c0_21] : memref<1x96xf32, #tpu.memory_space<vmem>>, vector<1x96xf32>
    %cst_22 = arith.constant 0.000000e+00 : f32
    %17 = vector.broadcast %cst_22 : f32 to vector<8x32xf32>
    %c0_i32 = arith.constant 0 : i32
    %c8_i32 = arith.constant 8 : i32
    %18 = arith.muli %c0_i32, %c8_i32 : i32
    %19 = tpu.assume_multiple %18, 8 : i32
    %c7_i32 = arith.constant 7 : i32
    %20 = arith.subi %c7_i32, %c0_i32 : i32
    %c8_i32_23 = arith.constant 8 : i32
    %21 = arith.muli %20, %c8_i32_23 : i32
    %22 = tpu.assume_multiple %21, 8 : i32
    %23 = arith.index_cast %19 : i32 to index
    %c0_24 = arith.constant 0 : index
    %24 = vector.load %arg13[%23, %c0_24] : memref<64x96xf32, #tpu.memory_space<vmem>>, vector<8x96xf32>
    %cst_25 = arith.constant dense<0.000000e+00> : vector<8x96xf32>
    %25 = tpu.matmul %17, %13, %cst_25 {dimension_numbers = #tpu.dot_dimension_numbers<[1], [0], [0], [1], [0, 0, 1, 1], [], []>} : vector<8x32xf32>, vector<32x96xf32>, vector<8x96xf32> -> vector<8x96xf32>
    %26 = vector.broadcast %15 : vector<1x96xf32> to vector<8x96xf32>
    %27 = arith.addf %25, %26 : vector<8x96xf32>
    %28 = vector.extract_strided_slice %24 {offsets = [0, 0], sizes = [8, 32], strides = [1, 1]} : vector<8x96xf32> to vector<8x32xf32>
    %29 = vector.extract_strided_slice %27 {offsets = [0, 0], sizes = [8, 32], strides = [1, 1]} : vector<8x96xf32> to vector<8x32xf32>
    %30 = arith.addf %28, %29 : vector<8x32xf32>
    %31 = arith.negf %30 : vector<8x32xf32>
    %32 = math.exp %31 : vector<8x32xf32>
    %cst_26 = arith.constant 1.000000e+00 : f32
    %33 = vector.broadcast %cst_26 : f32 to vector<8x32xf32>
    %34 = arith.addf %33, %32 : vector<8x32xf32>
    %35 = arith.divf %33, %34 : vector<8x32xf32>
    %36 = vector.extract_strided_slice %24 {offsets = [0, 32], sizes = [8, 32], strides = [1, 1]} : vector<8x96xf32> to vector<8x32xf32>
    %37 = vector.extract_strided_slice %27 {offsets = [0, 32], sizes = [8, 32], strides = [1, 1]} : vector<8x96xf32> to vector<8x32xf32>
    %38 = arith.addf %36, %37 : vector<8x32xf32>
    %39 = arith.negf %38 : vector<8x32xf32>
    %40 = math.exp %39 : vector<8x32xf32>
    %cst_27 = arith.constant 1.000000e+00 : f32
    %41 = vector.broadcast %cst_27 : f32 to vector<8x32xf32>
    %42 = arith.addf %41, %40 : vector<8x32xf32>
    %43 = arith.divf %41, %42 : vector<8x32xf32>
    %44 = vector.extract_strided_slice %24 {offsets = [0, 64], sizes = [8, 32], strides = [1, 1]} : vector<8x96xf32> to vector<8x32xf32>
    %45 = vector.extract_strided_slice %27 {offsets = [0, 64], sizes = [8, 32], strides = [1, 1]} : vector<8x96xf32> to vector<8x32xf32>
    %46 = arith.mulf %35, %45 : vector<8x32xf32>
    %47 = arith.addf %44, %46 : vector<8x32xf32>
    %48 = math.tanh %47 : vector<8x32xf32>
    %cst_28 = arith.constant 1.000000e+00 : f32
    %49 = vector.broadcast %cst_28 : f32 to vector<8x32xf32>
    %50 = arith.subf %49, %43 : vector<8x32xf32>
    %51 = arith.mulf %50, %48 : vector<8x32xf32>
    %52 = arith.mulf %43, %17 : vector<8x32xf32>
    %53 = arith.addf %51, %52 : vector<8x32xf32>
    %54 = arith.index_cast %22 : i32 to index
    %c0_29 = arith.constant 0 : index
    %55 = vector.load %arg14[%54, %c0_29] : memref<64x96xf32, #tpu.memory_space<vmem>>, vector<8x96xf32>
    %cst_30 = arith.constant dense<0.000000e+00> : vector<8x96xf32>
    %56 = tpu.matmul %17, %14, %cst_30 {dimension_numbers = #tpu.dot_dimension_numbers<[1], [0], [0], [1], [0, 0, 1, 1], [], []>} : vector<8x32xf32>, vector<32x96xf32>, vector<8x96xf32> -> vector<8x96xf32>
    %57 = vector.broadcast %16 : vector<1x96xf32> to vector<8x96xf32>
    %58 = arith.addf %56, %57 : vector<8x96xf32>
    %59 = vector.extract_strided_slice %55 {offsets = [0, 0], sizes = [8, 32], strides = [1, 1]} : vector<8x96xf32> to vector<8x32xf32>
    %60 = vector.extract_strided_slice %58 {offsets = [0, 0], sizes = [8, 32], strides = [1, 1]} : vector<8x96xf32> to vector<8x32xf32>
    %61 = arith.addf %59, %60 : vector<8x32xf32>
    %62 = arith.negf %61 : vector<8x32xf32>
    %63 = math.exp %62 : vector<8x32xf32>
    %cst_31 = arith.constant 1.000000e+00 : f32
    %64 = vector.broadcast %cst_31 : f32 to vector<8x32xf32>
    %65 = arith.addf %64, %63 : vector<8x32xf32>
    %66 = arith.divf %64, %65 : vector<8x32xf32>
    %67 = vector.extract_strided_slice %55 {offsets = [0, 32], sizes = [8, 32], strides = [1, 1]} : vector<8x96xf32> to vector<8x32xf32>
    %68 = vector.extract_strided_slice %58 {offsets = [0, 32], sizes = [8, 32], strides = [1, 1]} : vector<8x96xf32> to vector<8x32xf32>
    %69 = arith.addf %67, %68 : vector<8x32xf32>
    %70 = arith.negf %69 : vector<8x32xf32>
    %71 = math.exp %70 : vector<8x32xf32>
    %cst_32 = arith.constant 1.000000e+00 : f32
    %72 = vector.broadcast %cst_32 : f32 to vector<8x32xf32>
    %73 = arith.addf %72, %71 : vector<8x32xf32>
    %74 = arith.divf %72, %73 : vector<8x32xf32>
    %75 = vector.extract_strided_slice %55 {offsets = [0, 64], sizes = [8, 32], strides = [1, 1]} : vector<8x96xf32> to vector<8x32xf32>
    %76 = vector.extract_strided_slice %58 {offsets = [0, 64], sizes = [8, 32], strides = [1, 1]} : vector<8x96xf32> to vector<8x32xf32>
    %77 = arith.mulf %66, %76 : vector<8x32xf32>
    %78 = arith.addf %75, %77 : vector<8x32xf32>
    %79 = math.tanh %78 : vector<8x32xf32>
    %cst_33 = arith.constant 1.000000e+00 : f32
    %80 = vector.broadcast %cst_33 : f32 to vector<8x32xf32>
    %81 = arith.subf %80, %74 : vector<8x32xf32>
    %82 = arith.mulf %81, %79 : vector<8x32xf32>
    %83 = arith.mulf %74, %17 : vector<8x32xf32>
    %84 = arith.addf %82, %83 : vector<8x32xf32>
    %85 = arith.index_cast %19 : i32 to index
    %c0_34 = arith.constant 0 : index
    %86 = vector.load %arg9[%85, %c0_34] : memref<64x32xf32, #tpu.memory_space<vmem>>, vector<8x32xf32>
    tpu.vector_store %arg9[%85, %c0_34], %53 {strides = array<i32>} : memref<64x32xf32, #tpu.memory_space<vmem>>, vector<8x32xf32>,
    %87 = arith.index_cast %22 : i32 to index
    %c0_35 = arith.constant 0 : index
    %88 = vector.load %arg10[%87, %c0_35] : memref<64x32xf32, #tpu.memory_space<vmem>>, vector<8x32xf32>
    tpu.vector_store %arg10[%87, %c0_35], %84 {strides = array<i32>} : memref<64x32xf32, #tpu.memory_space<vmem>>, vector<8x32xf32>,
    %c1_i32 = arith.constant 1 : i32
    %c8_i32_36 = arith.constant 8 : i32
    %89 = arith.muli %c1_i32, %c8_i32_36 : i32
    %90 = tpu.assume_multiple %89, 8 : i32
    %c7_i32_37 = arith.constant 7 : i32
    %91 = arith.subi %c7_i32_37, %c1_i32 : i32
    %c8_i32_38 = arith.constant 8 : i32
    %92 = arith.muli %91, %c8_i32_38 : i32
    %93 = tpu.assume_multiple %92, 8 : i32
    %94 = arith.index_cast %90 : i32 to index
    %c0_39 = arith.constant 0 : index
    %95 = vector.load %arg13[%94, %c0_39] : memref<64x96xf32, #tpu.memory_space<vmem>>, vector<8x96xf32>
    %cst_40 = arith.constant dense<0.000000e+00> : vector<8x96xf32>
    %96 = tpu.matmul %53, %13, %cst_40 {dimension_numbers = #tpu.dot_dimension_numbers<[1], [0], [0], [1], [0, 0, 1, 1], [], []>} : vector<8x32xf32>, vector<32x96xf32>, vector<8x96xf32> -> vector<8x96xf32>
    %97 = vector.broadcast %15 : vector<1x96xf32> to vector<8x96xf32>
    %98 = arith.addf %96, %97 : vector<8x96xf32>
    %99 = vector.extract_strided_slice %95 {offsets = [0, 0], sizes = [8, 32], strides = [1, 1]} : vector<8x96xf32> to vector<8x32xf32>
    %100 = vector.extract_strided_slice %98 {offsets = [0, 0], sizes = [8, 32], strides = [1, 1]} : vector<8x96xf32> to vector<8x32xf32>
    %101 = arith.addf %99, %100 : vector<8x32xf32>
    %102 = arith.negf %101 : vector<8x32xf32>
    %103 = math.exp %102 : vector<8x32xf32>
    %cst_41 = arith.constant 1.000000e+00 : f32
    %104 = vector.broadcast %cst_41 : f32 to vector<8x32xf32>
    %105 = arith.addf %104, %103 : vector<8x32xf32>
    %106 = arith.divf %104, %105 : vector<8x32xf32>
    %107 = vector.extract_strided_slice %95 {offsets = [0, 32], sizes = [8, 32], strides = [1, 1]} : vector<8x96xf32> to vector<8x32xf32>
    %108 = vector.extract_strided_slice %98 {offsets = [0, 32], sizes = [8, 32], strides = [1, 1]} : vector<8x96xf32> to vector<8x32xf32>
    %109 = arith.addf %107, %108 : vector<8x32xf32>
    %110 = arith.negf %109 : vector<8x32xf32>
    %111 = math.exp %110 : vector<8x32xf32>
    %cst_42 = arith.constant 1.000000e+00 : f32
    %112 = vector.broadcast %cst_42 : f32 to vector<8x32xf32>
    %113 = arith.addf %112, %111 : vector<8x32xf32>
    %114 = arith.divf %112, %113 : vector<8x32xf32>
    %115 = vector.extract_strided_slice %95 {offsets = [0, 64], sizes = [8, 32], strides = [1, 1]} : vector<8x96xf32> to vector<8x32xf32>
    %116 = vector.extract_strided_slice %98 {offsets = [0, 64], sizes = [8, 32], strides = [1, 1]} : vector<8x96xf32> to vector<8x32xf32>
    %117 = arith.mulf %106, %116 : vector<8x32xf32>
    %118 = arith.addf %115, %117 : vector<8x32xf32>
    %119 = math.tanh %118 : vector<8x32xf32>
    %cst_43 = arith.constant 1.000000e+00 : f32
    %120 = vector.broadcast %cst_43 : f32 to vector<8x32xf32>
    %121 = arith.subf %120, %114 : vector<8x32xf32>
    %122 = arith.mulf %121, %119 : vector<8x32xf32>
    %123 = arith.mulf %114, %53 : vector<8x32xf32>
    %124 = arith.addf %122, %123 : vector<8x32xf32>
    %125 = arith.index_cast %93 : i32 to index
    %c0_44 = arith.constant 0 : index
    %126 = vector.load %arg14[%125, %c0_44] : memref<64x96xf32, #tpu.memory_space<vmem>>, vector<8x96xf32>
    %cst_45 = arith.constant dense<0.000000e+00> : vector<8x96xf32>
    %127 = tpu.matmul %84, %14, %cst_45 {dimension_numbers = #tpu.dot_dimension_numbers<[1], [0], [0], [1], [0, 0, 1, 1], [], []>} : vector<8x32xf32>, vector<32x96xf32>, vector<8x96xf32> -> vector<8x96xf32>
    %128 = vector.broadcast %16 : vector<1x96xf32> to vector<8x96xf32>
    %129 = arith.addf %127, %128 : vector<8x96xf32>
    %130 = vector.extract_strided_slice %126 {offsets = [0, 0], sizes = [8, 32], strides = [1, 1]} : vector<8x96xf32> to vector<8x32xf32>
    %131 = vector.extract_strided_slice %129 {offsets = [0, 0], sizes = [8, 32], strides = [1, 1]} : vector<8x96xf32> to vector<8x32xf32>
    %132 = arith.addf %130, %131 : vector<8x32xf32>
    %133 = arith.negf %132 : vector<8x32xf32>
    %134 = math.exp %133 : vector<8x32xf32>
    %cst_46 = arith.constant 1.000000e+00 : f32
    %135 = vector.broadcast %cst_46 : f32 to vector<8x32xf32>
    %136 = arith.addf %135, %134 : vector<8x32xf32>
    %137 = arith.divf %135, %136 : vector<8x32xf32>
    %138 = vector.extract_strided_slice %126 {offsets = [0, 32], sizes = [8, 32], strides = [1, 1]} : vector<8x96xf32> to vector<8x32xf32>
    %139 = vector.extract_strided_slice %129 {offsets = [0, 32], sizes = [8, 32], strides = [1, 1]} : vector<8x96xf32> to vector<8x32xf32>
    %140 = arith.addf %138, %139 : vector<8x32xf32>
    %141 = arith.negf %140 : vector<8x32xf32>
    %142 = math.exp %141 : vector<8x32xf32>
    %cst_47 = arith.constant 1.000000e+00 : f32
    %143 = vector.broadcast %cst_47 : f32 to vector<8x32xf32>
    %144 = arith.addf %143, %142 : vector<8x32xf32>
    %145 = arith.divf %143, %144 : vector<8x32xf32>
    %146 = vector.extract_strided_slice %126 {offsets = [0, 64], sizes = [8, 32], strides = [1, 1]} : vector<8x96xf32> to vector<8x32xf32>
    %147 = vector.extract_strided_slice %129 {offsets = [0, 64], sizes = [8, 32], strides = [1, 1]} : vector<8x96xf32> to vector<8x32xf32>
    %148 = arith.mulf %137, %147 : vector<8x32xf32>
    %149 = arith.addf %146, %148 : vector<8x32xf32>
    %150 = math.tanh %149 : vector<8x32xf32>
    %cst_48 = arith.constant 1.000000e+00 : f32
    %151 = vector.broadcast %cst_48 : f32 to vector<8x32xf32>
    %152 = arith.subf %151, %145 : vector<8x32xf32>
    %153 = arith.mulf %152, %150 : vector<8x32xf32>
    %154 = arith.mulf %145, %84 : vector<8x32xf32>
    %155 = arith.addf %153, %154 : vector<8x32xf32>
    %156 = arith.index_cast %90 : i32 to index
    %c0_49 = arith.constant 0 : index
    %157 = vector.load %arg9[%156, %c0_49] : memref<64x32xf32, #tpu.memory_space<vmem>>, vector<8x32xf32>
    tpu.vector_store %arg9[%156, %c0_49], %124 {strides = array<i32>} : memref<64x32xf32, #tpu.memory_space<vmem>>, vector<8x32xf32>,
    %158 = arith.index_cast %93 : i32 to index
    %c0_50 = arith.constant 0 : index
    %159 = vector.load %arg10[%158, %c0_50] : memref<64x32xf32, #tpu.memory_space<vmem>>, vector<8x32xf32>
    tpu.vector_store %arg10[%158, %c0_50], %155 {strides = array<i32>} : memref<64x32xf32, #tpu.memory_space<vmem>>, vector<8x32xf32>,
    %c2_i32 = arith.constant 2 : i32
    %c8_i32_51 = arith.constant 8 : i32
    %160 = arith.muli %c2_i32, %c8_i32_51 : i32
    %161 = tpu.assume_multiple %160, 8 : i32
    %c7_i32_52 = arith.constant 7 : i32
    %162 = arith.subi %c7_i32_52, %c2_i32 : i32
    %c8_i32_53 = arith.constant 8 : i32
    %163 = arith.muli %162, %c8_i32_53 : i32
    %164 = tpu.assume_multiple %163, 8 : i32
    %165 = arith.index_cast %161 : i32 to index
    %c0_54 = arith.constant 0 : index
    %166 = vector.load %arg13[%165, %c0_54] : memref<64x96xf32, #tpu.memory_space<vmem>>, vector<8x96xf32>
    %cst_55 = arith.constant dense<0.000000e+00> : vector<8x96xf32>
    %167 = tpu.matmul %124, %13, %cst_55 {dimension_numbers = #tpu.dot_dimension_numbers<[1], [0], [0], [1], [0, 0, 1, 1], [], []>} : vector<8x32xf32>, vector<32x96xf32>, vector<8x96xf32> -> vector<8x96xf32>
    %168 = vector.broadcast %15 : vector<1x96xf32> to vector<8x96xf32>
    %169 = arith.addf %167, %168 : vector<8x96xf32>
    %170 = vector.extract_strided_slice %166 {offsets = [0, 0], sizes = [8, 32], strides = [1, 1]} : vector<8x96xf32> to vector<8x32xf32>
    %171 = vector.extract_strided_slice %169 {offsets = [0, 0], sizes = [8, 32], strides = [1, 1]} : vector<8x96xf32> to vector<8x32xf32>
    %172 = arith.addf %170, %171 : vector<8x32xf32>
    %173 = arith.negf %172 : vector<8x32xf32>
    %174 = math.exp %173 : vector<8x32xf32>
    %cst_56 = arith.constant 1.000000e+00 : f32
    %175 = vector.broadcast %cst_56 : f32 to vector<8x32xf32>
    %176 = arith.addf %175, %174 : vector<8x32xf32>
    %177 = arith.divf %175, %176 : vector<8x32xf32>
    %178 = vector.extract_strided_slice %166 {offsets = [0, 32], sizes = [8, 32], strides = [1, 1]} : vector<8x96xf32> to vector<8x32xf32>
    %179 = vector.extract_strided_slice %169 {offsets = [0, 32], sizes = [8, 32], strides = [1, 1]} : vector<8x96xf32> to vector<8x32xf32>
    %180 = arith.addf %178, %179 : vector<8x32xf32>
    %181 = arith.negf %180 : vector<8x32xf32>
    %182 = math.exp %181 : vector<8x32xf32>
    %cst_57 = arith.constant 1.000000e+00 : f32
    %183 = vector.broadcast %cst_57 : f32 to vector<8x32xf32>
    %184 = arith.addf %183, %182 : vector<8x32xf32>
    %185 = arith.divf %183, %184 : vector<8x32xf32>
    %186 = vector.extract_strided_slice %166 {offsets = [0, 64], sizes = [8, 32], strides = [1, 1]} : vector<8x96xf32> to vector<8x32xf32>
    %187 = vector.extract_strided_slice %169 {offsets = [0, 64], sizes = [8, 32], strides = [1, 1]} : vector<8x96xf32> to vector<8x32xf32>
    %188 = arith.mulf %177, %187 : vector<8x32xf32>
    %189 = arith.addf %186, %188 : vector<8x32xf32>
    %190 = math.tanh %189 : vector<8x32xf32>
    %cst_58 = arith.constant 1.000000e+00 : f32
    %191 = vector.broadcast %cst_58 : f32 to vector<8x32xf32>
    %192 = arith.subf %191, %185 : vector<8x32xf32>
    %193 = arith.mulf %192, %190 : vector<8x32xf32>
    %194 = arith.mulf %185, %124 : vector<8x32xf32>
    %195 = arith.addf %193, %194 : vector<8x32xf32>
    %196 = arith.index_cast %164 : i32 to index
    %c0_59 = arith.constant 0 : index
    %197 = vector.load %arg14[%196, %c0_59] : memref<64x96xf32, #tpu.memory_space<vmem>>, vector<8x96xf32>
    %cst_60 = arith.constant dense<0.000000e+00> : vector<8x96xf32>
    %198 = tpu.matmul %155, %14, %cst_60 {dimension_numbers = #tpu.dot_dimension_numbers<[1], [0], [0], [1], [0, 0, 1, 1], [], []>} : vector<8x32xf32>, vector<32x96xf32>, vector<8x96xf32> -> vector<8x96xf32>
    %199 = vector.broadcast %16 : vector<1x96xf32> to vector<8x96xf32>
    %200 = arith.addf %198, %199 : vector<8x96xf32>
    %201 = vector.extract_strided_slice %197 {offsets = [0, 0], sizes = [8, 32], strides = [1, 1]} : vector<8x96xf32> to vector<8x32xf32>
    %202 = vector.extract_strided_slice %200 {offsets = [0, 0], sizes = [8, 32], strides = [1, 1]} : vector<8x96xf32> to vector<8x32xf32>
    %203 = arith.addf %201, %202 : vector<8x32xf32>
    %204 = arith.negf %203 : vector<8x32xf32>
    %205 = math.exp %204 : vector<8x32xf32>
    %cst_61 = arith.constant 1.000000e+00 : f32
    %206 = vector.broadcast %cst_61 : f32 to vector<8x32xf32>
    %207 = arith.addf %206, %205 : vector<8x32xf32>
    %208 = arith.divf %206, %207 : vector<8x32xf32>
    %209 = vector.extract_strided_slice %197 {offsets = [0, 32], sizes = [8, 32], strides = [1, 1]} : vector<8x96xf32> to vector<8x32xf32>
    %210 = vector.extract_strided_slice %200 {offsets = [0, 32], sizes = [8, 32], strides = [1, 1]} : vector<8x96xf32> to vector<8x32xf32>
    %211 = arith.addf %209, %210 : vector<8x32xf32>
    %212 = arith.negf %211 : vector<8x32xf32>
    %213 = math.exp %212 : vector<8x32xf32>
    %cst_62 = arith.constant 1.000000e+00 : f32
    %214 = vector.broadcast %cst_62 : f32 to vector<8x32xf32>
    %215 = arith.addf %214, %213 : vector<8x32xf32>
    %216 = arith.divf %214, %215 : vector<8x32xf32>
    %217 = vector.extract_strided_slice %197 {offsets = [0, 64], sizes = [8, 32], strides = [1, 1]} : vector<8x96xf32> to vector<8x32xf32>
    %218 = vector.extract_strided_slice %200 {offsets = [0, 64], sizes = [8, 32], strides = [1, 1]} : vector<8x96xf32> to vector<8x32xf32>
    %219 = arith.mulf %208, %218 : vector<8x32xf32>
    %220 = arith.addf %217, %219 : vector<8x32xf32>
    %221 = math.tanh %220 : vector<8x32xf32>
    %cst_63 = arith.constant 1.000000e+00 : f32
    %222 = vector.broadcast %cst_63 : f32 to vector<8x32xf32>
    %223 = arith.subf %222, %216 : vector<8x32xf32>
    %224 = arith.mulf %223, %221 : vector<8x32xf32>
    %225 = arith.mulf %216, %155 : vector<8x32xf32>
    %226 = arith.addf %224, %225 : vector<8x32xf32>
    %227 = arith.index_cast %161 : i32 to index
    %c0_64 = arith.constant 0 : index
    %228 = vector.load %arg9[%227, %c0_64] : memref<64x32xf32, #tpu.memory_space<vmem>>, vector<8x32xf32>
    tpu.vector_store %arg9[%227, %c0_64], %195 {strides = array<i32>} : memref<64x32xf32, #tpu.memory_space<vmem>>, vector<8x32xf32>,
    %229 = arith.index_cast %164 : i32 to index
    %c0_65 = arith.constant 0 : index
    %230 = vector.load %arg10[%229, %c0_65] : memref<64x32xf32, #tpu.memory_space<vmem>>, vector<8x32xf32>
    tpu.vector_store %arg10[%229, %c0_65], %226 {strides = array<i32>} : memref<64x32xf32, #tpu.memory_space<vmem>>, vector<8x32xf32>,
    %c3_i32 = arith.constant 3 : i32
    %c8_i32_66 = arith.constant 8 : i32
    %231 = arith.muli %c3_i32, %c8_i32_66 : i32
    %232 = tpu.assume_multiple %231, 8 : i32
    %c7_i32_67 = arith.constant 7 : i32
    %233 = arith.subi %c7_i32_67, %c3_i32 : i32
    %c8_i32_68 = arith.constant 8 : i32
    %234 = arith.muli %233, %c8_i32_68 : i32
    %235 = tpu.assume_multiple %234, 8 : i32
    %236 = arith.index_cast %232 : i32 to index
    %c0_69 = arith.constant 0 : index
    %237 = vector.load %arg13[%236, %c0_69] : memref<64x96xf32, #tpu.memory_space<vmem>>, vector<8x96xf32>
    %cst_70 = arith.constant dense<0.000000e+00> : vector<8x96xf32>
    %238 = tpu.matmul %195, %13, %cst_70 {dimension_numbers = #tpu.dot_dimension_numbers<[1], [0], [0], [1], [0, 0, 1, 1], [], []>} : vector<8x32xf32>, vector<32x96xf32>, vector<8x96xf32> -> vector<8x96xf32>
    %239 = vector.broadcast %15 : vector<1x96xf32> to vector<8x96xf32>
    %240 = arith.addf %238, %239 : vector<8x96xf32>
    %241 = vector.extract_strided_slice %237 {offsets = [0, 0], sizes = [8, 32], strides = [1, 1]} : vector<8x96xf32> to vector<8x32xf32>
    %242 = vector.extract_strided_slice %240 {offsets = [0, 0], sizes = [8, 32], strides = [1, 1]} : vector<8x96xf32> to vector<8x32xf32>
    %243 = arith.addf %241, %242 : vector<8x32xf32>
    %244 = arith.negf %243 : vector<8x32xf32>
    %245 = math.exp %244 : vector<8x32xf32>
    %cst_71 = arith.constant 1.000000e+00 : f32
    %246 = vector.broadcast %cst_71 : f32 to vector<8x32xf32>
    %247 = arith.addf %246, %245 : vector<8x32xf32>
    %248 = arith.divf %246, %247 : vector<8x32xf32>
    %249 = vector.extract_strided_slice %237 {offsets = [0, 32], sizes = [8, 32], strides = [1, 1]} : vector<8x96xf32> to vector<8x32xf32>
    %250 = vector.extract_strided_slice %240 {offsets = [0, 32], sizes = [8, 32], strides = [1, 1]} : vector<8x96xf32> to vector<8x32xf32>
    %251 = arith.addf %249, %250 : vector<8x32xf32>
    %252 = arith.negf %251 : vector<8x32xf32>
    %253 = math.exp %252 : vector<8x32xf32>
    %cst_72 = arith.constant 1.000000e+00 : f32
    %254 = vector.broadcast %cst_72 : f32 to vector<8x32xf32>
    %255 = arith.addf %254, %253 : vector<8x32xf32>
    %256 = arith.divf %254, %255 : vector<8x32xf32>
    %257 = vector.extract_strided_slice %237 {offsets = [0, 64], sizes = [8, 32], strides = [1, 1]} : vector<8x96xf32> to vector<8x32xf32>
    %258 = vector.extract_strided_slice %240 {offsets = [0, 64], sizes = [8, 32], strides = [1, 1]} : vector<8x96xf32> to vector<8x32xf32>
    %259 = arith.mulf %248, %258 : vector<8x32xf32>
    %260 = arith.addf %257, %259 : vector<8x32xf32>
    %261 = math.tanh %260 : vector<8x32xf32>
    %cst_73 = arith.constant 1.000000e+00 : f32
    %262 = vector.broadcast %cst_73 : f32 to vector<8x32xf32>
    %263 = arith.subf %262, %256 : vector<8x32xf32>
    %264 = arith.mulf %263, %261 : vector<8x32xf32>
    %265 = arith.mulf %256, %195 : vector<8x32xf32>
    %266 = arith.addf %264, %265 : vector<8x32xf32>
    %267 = arith.index_cast %235 : i32 to index
    %c0_74 = arith.constant 0 : index
    %268 = vector.load %arg14[%267, %c0_74] : memref<64x96xf32, #tpu.memory_space<vmem>>, vector<8x96xf32>
    %cst_75 = arith.constant dense<0.000000e+00> : vector<8x96xf32>
    %269 = tpu.matmul %226, %14, %cst_75 {dimension_numbers = #tpu.dot_dimension_numbers<[1], [0], [0], [1], [0, 0, 1, 1], [], []>} : vector<8x32xf32>, vector<32x96xf32>, vector<8x96xf32> -> vector<8x96xf32>
    %270 = vector.broadcast %16 : vector<1x96xf32> to vector<8x96xf32>
    %271 = arith.addf %269, %270 : vector<8x96xf32>
    %272 = vector.extract_strided_slice %268 {offsets = [0, 0], sizes = [8, 32], strides = [1, 1]} : vector<8x96xf32> to vector<8x32xf32>
    %273 = vector.extract_strided_slice %271 {offsets = [0, 0], sizes = [8, 32], strides = [1, 1]} : vector<8x96xf32> to vector<8x32xf32>
    %274 = arith.addf %272, %273 : vector<8x32xf32>
    %275 = arith.negf %274 : vector<8x32xf32>
    %276 = math.exp %275 : vector<8x32xf32>
    %cst_76 = arith.constant 1.000000e+00 : f32
    %277 = vector.broadcast %cst_76 : f32 to vector<8x32xf32>
    %278 = arith.addf %277, %276 : vector<8x32xf32>
    %279 = arith.divf %277, %278 : vector<8x32xf32>
    %280 = vector.extract_strided_slice %268 {offsets = [0, 32], sizes = [8, 32], strides = [1, 1]} : vector<8x96xf32> to vector<8x32xf32>
    %281 = vector.extract_strided_slice %271 {offsets = [0, 32], sizes = [8, 32], strides = [1, 1]} : vector<8x96xf32> to vector<8x32xf32>
    %282 = arith.addf %280, %281 : vector<8x32xf32>
    %283 = arith.negf %282 : vector<8x32xf32>
    %284 = math.exp %283 : vector<8x32xf32>
    %cst_77 = arith.constant 1.000000e+00 : f32
    %285 = vector.broadcast %cst_77 : f32 to vector<8x32xf32>
    %286 = arith.addf %285, %284 : vector<8x32xf32>
    %287 = arith.divf %285, %286 : vector<8x32xf32>
    %288 = vector.extract_strided_slice %268 {offsets = [0, 64], sizes = [8, 32], strides = [1, 1]} : vector<8x96xf32> to vector<8x32xf32>
    %289 = vector.extract_strided_slice %271 {offsets = [0, 64], sizes = [8, 32], strides = [1, 1]} : vector<8x96xf32> to vector<8x32xf32>
    %290 = arith.mulf %279, %289 : vector<8x32xf32>
    %291 = arith.addf %288, %290 : vector<8x32xf32>
    %292 = math.tanh %291 : vector<8x32xf32>
    %cst_78 = arith.constant 1.000000e+00 : f32
    %293 = vector.broadcast %cst_78 : f32 to vector<8x32xf32>
    %294 = arith.subf %293, %287 : vector<8x32xf32>
    %295 = arith.mulf %294, %292 : vector<8x32xf32>
    %296 = arith.mulf %287, %226 : vector<8x32xf32>
    %297 = arith.addf %295, %296 : vector<8x32xf32>
    %298 = arith.index_cast %232 : i32 to index
    %c0_79 = arith.constant 0 : index
    %299 = vector.load %arg9[%298, %c0_79] : memref<64x32xf32, #tpu.memory_space<vmem>>, vector<8x32xf32>
    tpu.vector_store %arg9[%298, %c0_79], %266 {strides = array<i32>} : memref<64x32xf32, #tpu.memory_space<vmem>>, vector<8x32xf32>,
    %300 = arith.index_cast %235 : i32 to index
    %c0_80 = arith.constant 0 : index
    %301 = vector.load %arg10[%300, %c0_80] : memref<64x32xf32, #tpu.memory_space<vmem>>, vector<8x32xf32>
    tpu.vector_store %arg10[%300, %c0_80], %297 {strides = array<i32>} : memref<64x32xf32, #tpu.memory_space<vmem>>, vector<8x32xf32>,
    %c4_i32 = arith.constant 4 : i32
    %c8_i32_81 = arith.constant 8 : i32
    %302 = arith.muli %c4_i32, %c8_i32_81 : i32
    %303 = tpu.assume_multiple %302, 8 : i32
    %c7_i32_82 = arith.constant 7 : i32
    %304 = arith.subi %c7_i32_82, %c4_i32 : i32
    %c8_i32_83 = arith.constant 8 : i32
    %305 = arith.muli %304, %c8_i32_83 : i32
    %306 = tpu.assume_multiple %305, 8 : i32
    %307 = arith.index_cast %303 : i32 to index
    %c0_84 = arith.constant 0 : index
    %308 = vector.load %arg13[%307, %c0_84] : memref<64x96xf32, #tpu.memory_space<vmem>>, vector<8x96xf32>
    %cst_85 = arith.constant dense<0.000000e+00> : vector<8x96xf32>
    %309 = tpu.matmul %266, %13, %cst_85 {dimension_numbers = #tpu.dot_dimension_numbers<[1], [0], [0], [1], [0, 0, 1, 1], [], []>} : vector<8x32xf32>, vector<32x96xf32>, vector<8x96xf32> -> vector<8x96xf32>
    %310 = vector.broadcast %15 : vector<1x96xf32> to vector<8x96xf32>
    %311 = arith.addf %309, %310 : vector<8x96xf32>
    %312 = vector.extract_strided_slice %308 {offsets = [0, 0], sizes = [8, 32], strides = [1, 1]} : vector<8x96xf32> to vector<8x32xf32>
    %313 = vector.extract_strided_slice %311 {offsets = [0, 0], sizes = [8, 32], strides = [1, 1]} : vector<8x96xf32> to vector<8x32xf32>
    %314 = arith.addf %312, %313 : vector<8x32xf32>
    %315 = arith.negf %314 : vector<8x32xf32>
    %316 = math.exp %315 : vector<8x32xf32>
    %cst_86 = arith.constant 1.000000e+00 : f32
    %317 = vector.broadcast %cst_86 : f32 to vector<8x32xf32>
    %318 = arith.addf %317, %316 : vector<8x32xf32>
    %319 = arith.divf %317, %318 : vector<8x32xf32>
    %320 = vector.extract_strided_slice %308 {offsets = [0, 32], sizes = [8, 32], strides = [1, 1]} : vector<8x96xf32> to vector<8x32xf32>
    %321 = vector.extract_strided_slice %311 {offsets = [0, 32], sizes = [8, 32], strides = [1, 1]} : vector<8x96xf32> to vector<8x32xf32>
    %322 = arith.addf %320, %321 : vector<8x32xf32>
    %323 = arith.negf %322 : vector<8x32xf32>
    %324 = math.exp %323 : vector<8x32xf32>
    %cst_87 = arith.constant 1.000000e+00 : f32
    %325 = vector.broadcast %cst_87 : f32 to vector<8x32xf32>
    %326 = arith.addf %325, %324 : vector<8x32xf32>
    %327 = arith.divf %325, %326 : vector<8x32xf32>
    %328 = vector.extract_strided_slice %308 {offsets = [0, 64], sizes = [8, 32], strides = [1, 1]} : vector<8x96xf32> to vector<8x32xf32>
    %329 = vector.extract_strided_slice %311 {offsets = [0, 64], sizes = [8, 32], strides = [1, 1]} : vector<8x96xf32> to vector<8x32xf32>
    %330 = arith.mulf %319, %329 : vector<8x32xf32>
    %331 = arith.addf %328, %330 : vector<8x32xf32>
    %332 = math.tanh %331 : vector<8x32xf32>
    %cst_88 = arith.constant 1.000000e+00 : f32
    %333 = vector.broadcast %cst_88 : f32 to vector<8x32xf32>
    %334 = arith.subf %333, %327 : vector<8x32xf32>
    %335 = arith.mulf %334, %332 : vector<8x32xf32>
    %336 = arith.mulf %327, %266 : vector<8x32xf32>
    %337 = arith.addf %335, %336 : vector<8x32xf32>
    %338 = arith.index_cast %306 : i32 to index
    %c0_89 = arith.constant 0 : index
    %339 = vector.load %arg14[%338, %c0_89] : memref<64x96xf32, #tpu.memory_space<vmem>>, vector<8x96xf32>
    %cst_90 = arith.constant dense<0.000000e+00> : vector<8x96xf32>
    %340 = tpu.matmul %297, %14, %cst_90 {dimension_numbers = #tpu.dot_dimension_numbers<[1], [0], [0], [1], [0, 0, 1, 1], [], []>} : vector<8x32xf32>, vector<32x96xf32>, vector<8x96xf32> -> vector<8x96xf32>
    %341 = vector.broadcast %16 : vector<1x96xf32> to vector<8x96xf32>
    %342 = arith.addf %340, %341 : vector<8x96xf32>
    %343 = vector.extract_strided_slice %339 {offsets = [0, 0], sizes = [8, 32], strides = [1, 1]} : vector<8x96xf32> to vector<8x32xf32>
    %344 = vector.extract_strided_slice %342 {offsets = [0, 0], sizes = [8, 32], strides = [1, 1]} : vector<8x96xf32> to vector<8x32xf32>
    %345 = arith.addf %343, %344 : vector<8x32xf32>
    %346 = arith.negf %345 : vector<8x32xf32>
    %347 = math.exp %346 : vector<8x32xf32>
    %cst_91 = arith.constant 1.000000e+00 : f32
    %348 = vector.broadcast %cst_91 : f32 to vector<8x32xf32>
    %349 = arith.addf %348, %347 : vector<8x32xf32>
    %350 = arith.divf %348, %349 : vector<8x32xf32>
    %351 = vector.extract_strided_slice %339 {offsets = [0, 32], sizes = [8, 32], strides = [1, 1]} : vector<8x96xf32> to vector<8x32xf32>
    %352 = vector.extract_strided_slice %342 {offsets = [0, 32], sizes = [8, 32], strides = [1, 1]} : vector<8x96xf32> to vector<8x32xf32>
    %353 = arith.addf %351, %352 : vector<8x32xf32>
    %354 = arith.negf %353 : vector<8x32xf32>
    %355 = math.exp %354 : vector<8x32xf32>
    %cst_92 = arith.constant 1.000000e+00 : f32
    %356 = vector.broadcast %cst_92 : f32 to vector<8x32xf32>
    %357 = arith.addf %356, %355 : vector<8x32xf32>
    %358 = arith.divf %356, %357 : vector<8x32xf32>
    %359 = vector.extract_strided_slice %339 {offsets = [0, 64], sizes = [8, 32], strides = [1, 1]} : vector<8x96xf32> to vector<8x32xf32>
    %360 = vector.extract_strided_slice %342 {offsets = [0, 64], sizes = [8, 32], strides = [1, 1]} : vector<8x96xf32> to vector<8x32xf32>
    %361 = arith.mulf %350, %360 : vector<8x32xf32>
    %362 = arith.addf %359, %361 : vector<8x32xf32>
    %363 = math.tanh %362 : vector<8x32xf32>
    %cst_93 = arith.constant 1.000000e+00 : f32
    %364 = vector.broadcast %cst_93 : f32 to vector<8x32xf32>
    %365 = arith.subf %364, %358 : vector<8x32xf32>
    %366 = arith.mulf %365, %363 : vector<8x32xf32>
    %367 = arith.mulf %358, %297 : vector<8x32xf32>
    %368 = arith.addf %366, %367 : vector<8x32xf32>
    %369 = arith.index_cast %303 : i32 to index
    %c0_94 = arith.constant 0 : index
    %370 = vector.load %arg9[%369, %c0_94] : memref<64x32xf32, #tpu.memory_space<vmem>>, vector<8x32xf32>
    tpu.vector_store %arg9[%369, %c0_94], %337 {strides = array<i32>} : memref<64x32xf32, #tpu.memory_space<vmem>>, vector<8x32xf32>,
    %371 = arith.index_cast %306 : i32 to index
    %c0_95 = arith.constant 0 : index
    %372 = vector.load %arg10[%371, %c0_95] : memref<64x32xf32, #tpu.memory_space<vmem>>, vector<8x32xf32>
    tpu.vector_store %arg10[%371, %c0_95], %368 {strides = array<i32>} : memref<64x32xf32, #tpu.memory_space<vmem>>, vector<8x32xf32>,
    %c5_i32 = arith.constant 5 : i32
    %c8_i32_96 = arith.constant 8 : i32
    %373 = arith.muli %c5_i32, %c8_i32_96 : i32
    %374 = tpu.assume_multiple %373, 8 : i32
    %c7_i32_97 = arith.constant 7 : i32
    %375 = arith.subi %c7_i32_97, %c5_i32 : i32
    %c8_i32_98 = arith.constant 8 : i32
    %376 = arith.muli %375, %c8_i32_98 : i32
    %377 = tpu.assume_multiple %376, 8 : i32
    %378 = arith.index_cast %374 : i32 to index
    %c0_99 = arith.constant 0 : index
    %379 = vector.load %arg13[%378, %c0_99] : memref<64x96xf32, #tpu.memory_space<vmem>>, vector<8x96xf32>
    %cst_100 = arith.constant dense<0.000000e+00> : vector<8x96xf32>
    %380 = tpu.matmul %337, %13, %cst_100 {dimension_numbers = #tpu.dot_dimension_numbers<[1], [0], [0], [1], [0, 0, 1, 1], [], []>} : vector<8x32xf32>, vector<32x96xf32>, vector<8x96xf32> -> vector<8x96xf32>
    %381 = vector.broadcast %15 : vector<1x96xf32> to vector<8x96xf32>
    %382 = arith.addf %380, %381 : vector<8x96xf32>
    %383 = vector.extract_strided_slice %379 {offsets = [0, 0], sizes = [8, 32], strides = [1, 1]} : vector<8x96xf32> to vector<8x32xf32>
    %384 = vector.extract_strided_slice %382 {offsets = [0, 0], sizes = [8, 32], strides = [1, 1]} : vector<8x96xf32> to vector<8x32xf32>
    %385 = arith.addf %383, %384 : vector<8x32xf32>
    %386 = arith.negf %385 : vector<8x32xf32>
    %387 = math.exp %386 : vector<8x32xf32>
    %cst_101 = arith.constant 1.000000e+00 : f32
    %388 = vector.broadcast %cst_101 : f32 to vector<8x32xf32>
    %389 = arith.addf %388, %387 : vector<8x32xf32>
    %390 = arith.divf %388, %389 : vector<8x32xf32>
    %391 = vector.extract_strided_slice %379 {offsets = [0, 32], sizes = [8, 32], strides = [1, 1]} : vector<8x96xf32> to vector<8x32xf32>
    %392 = vector.extract_strided_slice %382 {offsets = [0, 32], sizes = [8, 32], strides = [1, 1]} : vector<8x96xf32> to vector<8x32xf32>
    %393 = arith.addf %391, %392 : vector<8x32xf32>
    %394 = arith.negf %393 : vector<8x32xf32>
    %395 = math.exp %394 : vector<8x32xf32>
    %cst_102 = arith.constant 1.000000e+00 : f32
    %396 = vector.broadcast %cst_102 : f32 to vector<8x32xf32>
    %397 = arith.addf %396, %395 : vector<8x32xf32>
    %398 = arith.divf %396, %397 : vector<8x32xf32>
    %399 = vector.extract_strided_slice %379 {offsets = [0, 64], sizes = [8, 32], strides = [1, 1]} : vector<8x96xf32> to vector<8x32xf32>
    %400 = vector.extract_strided_slice %382 {offsets = [0, 64], sizes = [8, 32], strides = [1, 1]} : vector<8x96xf32> to vector<8x32xf32>
    %401 = arith.mulf %390, %400 : vector<8x32xf32>
    %402 = arith.addf %399, %401 : vector<8x32xf32>
    %403 = math.tanh %402 : vector<8x32xf32>
    %cst_103 = arith.constant 1.000000e+00 : f32
    %404 = vector.broadcast %cst_103 : f32 to vector<8x32xf32>
    %405 = arith.subf %404, %398 : vector<8x32xf32>
    %406 = arith.mulf %405, %403 : vector<8x32xf32>
    %407 = arith.mulf %398, %337 : vector<8x32xf32>
    %408 = arith.addf %406, %407 : vector<8x32xf32>
    %409 = arith.index_cast %377 : i32 to index
    %c0_104 = arith.constant 0 : index
    %410 = vector.load %arg14[%409, %c0_104] : memref<64x96xf32, #tpu.memory_space<vmem>>, vector<8x96xf32>
    %cst_105 = arith.constant dense<0.000000e+00> : vector<8x96xf32>
    %411 = tpu.matmul %368, %14, %cst_105 {dimension_numbers = #tpu.dot_dimension_numbers<[1], [0], [0], [1], [0, 0, 1, 1], [], []>} : vector<8x32xf32>, vector<32x96xf32>, vector<8x96xf32> -> vector<8x96xf32>
    %412 = vector.broadcast %16 : vector<1x96xf32> to vector<8x96xf32>
    %413 = arith.addf %411, %412 : vector<8x96xf32>
    %414 = vector.extract_strided_slice %410 {offsets = [0, 0], sizes = [8, 32], strides = [1, 1]} : vector<8x96xf32> to vector<8x32xf32>
    %415 = vector.extract_strided_slice %413 {offsets = [0, 0], sizes = [8, 32], strides = [1, 1]} : vector<8x96xf32> to vector<8x32xf32>
    %416 = arith.addf %414, %415 : vector<8x32xf32>
    %417 = arith.negf %416 : vector<8x32xf32>
    %418 = math.exp %417 : vector<8x32xf32>
    %cst_106 = arith.constant 1.000000e+00 : f32
    %419 = vector.broadcast %cst_106 : f32 to vector<8x32xf32>
    %420 = arith.addf %419, %418 : vector<8x32xf32>
    %421 = arith.divf %419, %420 : vector<8x32xf32>
    %422 = vector.extract_strided_slice %410 {offsets = [0, 32], sizes = [8, 32], strides = [1, 1]} : vector<8x96xf32> to vector<8x32xf32>
    %423 = vector.extract_strided_slice %413 {offsets = [0, 32], sizes = [8, 32], strides = [1, 1]} : vector<8x96xf32> to vector<8x32xf32>
    %424 = arith.addf %422, %423 : vector<8x32xf32>
    %425 = arith.negf %424 : vector<8x32xf32>
    %426 = math.exp %425 : vector<8x32xf32>
    %cst_107 = arith.constant 1.000000e+00 : f32
    %427 = vector.broadcast %cst_107 : f32 to vector<8x32xf32>
    %428 = arith.addf %427, %426 : vector<8x32xf32>
    %429 = arith.divf %427, %428 : vector<8x32xf32>
    %430 = vector.extract_strided_slice %410 {offsets = [0, 64], sizes = [8, 32], strides = [1, 1]} : vector<8x96xf32> to vector<8x32xf32>
    %431 = vector.extract_strided_slice %413 {offsets = [0, 64], sizes = [8, 32], strides = [1, 1]} : vector<8x96xf32> to vector<8x32xf32>
    %432 = arith.mulf %421, %431 : vector<8x32xf32>
    %433 = arith.addf %430, %432 : vector<8x32xf32>
    %434 = math.tanh %433 : vector<8x32xf32>
    %cst_108 = arith.constant 1.000000e+00 : f32
    %435 = vector.broadcast %cst_108 : f32 to vector<8x32xf32>
    %436 = arith.subf %435, %429 : vector<8x32xf32>
    %437 = arith.mulf %436, %434 : vector<8x32xf32>
    %438 = arith.mulf %429, %368 : vector<8x32xf32>
    %439 = arith.addf %437, %438 : vector<8x32xf32>
    %440 = arith.index_cast %374 : i32 to index
    %c0_109 = arith.constant 0 : index
    %441 = vector.load %arg9[%440, %c0_109] : memref<64x32xf32, #tpu.memory_space<vmem>>, vector<8x32xf32>
    tpu.vector_store %arg9[%440, %c0_109], %408 {strides = array<i32>} : memref<64x32xf32, #tpu.memory_space<vmem>>, vector<8x32xf32>,
    %442 = arith.index_cast %377 : i32 to index
    %c0_110 = arith.constant 0 : index
    %443 = vector.load %arg10[%442, %c0_110] : memref<64x32xf32, #tpu.memory_space<vmem>>, vector<8x32xf32>
    tpu.vector_store %arg10[%442, %c0_110], %439 {strides = array<i32>} : memref<64x32xf32, #tpu.memory_space<vmem>>, vector<8x32xf32>,
    %c6_i32 = arith.constant 6 : i32
    %c8_i32_111 = arith.constant 8 : i32
    %444 = arith.muli %c6_i32, %c8_i32_111 : i32
    %445 = tpu.assume_multiple %444, 8 : i32
    %c7_i32_112 = arith.constant 7 : i32
    %446 = arith.subi %c7_i32_112, %c6_i32 : i32
    %c8_i32_113 = arith.constant 8 : i32
    %447 = arith.muli %446, %c8_i32_113 : i32
    %448 = tpu.assume_multiple %447, 8 : i32
    %449 = arith.index_cast %445 : i32 to index
    %c0_114 = arith.constant 0 : index
    %450 = vector.load %arg13[%449, %c0_114] : memref<64x96xf32, #tpu.memory_space<vmem>>, vector<8x96xf32>
    %cst_115 = arith.constant dense<0.000000e+00> : vector<8x96xf32>
    %451 = tpu.matmul %408, %13, %cst_115 {dimension_numbers = #tpu.dot_dimension_numbers<[1], [0], [0], [1], [0, 0, 1, 1], [], []>} : vector<8x32xf32>, vector<32x96xf32>, vector<8x96xf32> -> vector<8x96xf32>
    %452 = vector.broadcast %15 : vector<1x96xf32> to vector<8x96xf32>
    %453 = arith.addf %451, %452 : vector<8x96xf32>
    %454 = vector.extract_strided_slice %450 {offsets = [0, 0], sizes = [8, 32], strides = [1, 1]} : vector<8x96xf32> to vector<8x32xf32>
    %455 = vector.extract_strided_slice %453 {offsets = [0, 0], sizes = [8, 32], strides = [1, 1]} : vector<8x96xf32> to vector<8x32xf32>
    %456 = arith.addf %454, %455 : vector<8x32xf32>
    %457 = arith.negf %456 : vector<8x32xf32>
    %458 = math.exp %457 : vector<8x32xf32>
    %cst_116 = arith.constant 1.000000e+00 : f32
    %459 = vector.broadcast %cst_116 : f32 to vector<8x32xf32>
    %460 = arith.addf %459, %458 : vector<8x32xf32>
    %461 = arith.divf %459, %460 : vector<8x32xf32>
    %462 = vector.extract_strided_slice %450 {offsets = [0, 32], sizes = [8, 32], strides = [1, 1]} : vector<8x96xf32> to vector<8x32xf32>
    %463 = vector.extract_strided_slice %453 {offsets = [0, 32], sizes = [8, 32], strides = [1, 1]} : vector<8x96xf32> to vector<8x32xf32>
    %464 = arith.addf %462, %463 : vector<8x32xf32>
    %465 = arith.negf %464 : vector<8x32xf32>
    %466 = math.exp %465 : vector<8x32xf32>
    %cst_117 = arith.constant 1.000000e+00 : f32
    %467 = vector.broadcast %cst_117 : f32 to vector<8x32xf32>
    %468 = arith.addf %467, %466 : vector<8x32xf32>
    %469 = arith.divf %467, %468 : vector<8x32xf32>
    %470 = vector.extract_strided_slice %450 {offsets = [0, 64], sizes = [8, 32], strides = [1, 1]} : vector<8x96xf32> to vector<8x32xf32>
    %471 = vector.extract_strided_slice %453 {offsets = [0, 64], sizes = [8, 32], strides = [1, 1]} : vector<8x96xf32> to vector<8x32xf32>
    %472 = arith.mulf %461, %471 : vector<8x32xf32>
    %473 = arith.addf %470, %472 : vector<8x32xf32>
    %474 = math.tanh %473 : vector<8x32xf32>
    %cst_118 = arith.constant 1.000000e+00 : f32
    %475 = vector.broadcast %cst_118 : f32 to vector<8x32xf32>
    %476 = arith.subf %475, %469 : vector<8x32xf32>
    %477 = arith.mulf %476, %474 : vector<8x32xf32>
    %478 = arith.mulf %469, %408 : vector<8x32xf32>
    %479 = arith.addf %477, %478 : vector<8x32xf32>
    %480 = arith.index_cast %448 : i32 to index
    %c0_119 = arith.constant 0 : index
    %481 = vector.load %arg14[%480, %c0_119] : memref<64x96xf32, #tpu.memory_space<vmem>>, vector<8x96xf32>
    %cst_120 = arith.constant dense<0.000000e+00> : vector<8x96xf32>
    %482 = tpu.matmul %439, %14, %cst_120 {dimension_numbers = #tpu.dot_dimension_numbers<[1], [0], [0], [1], [0, 0, 1, 1], [], []>} : vector<8x32xf32>, vector<32x96xf32>, vector<8x96xf32> -> vector<8x96xf32>
    %483 = vector.broadcast %16 : vector<1x96xf32> to vector<8x96xf32>
    %484 = arith.addf %482, %483 : vector<8x96xf32>
    %485 = vector.extract_strided_slice %481 {offsets = [0, 0], sizes = [8, 32], strides = [1, 1]} : vector<8x96xf32> to vector<8x32xf32>
    %486 = vector.extract_strided_slice %484 {offsets = [0, 0], sizes = [8, 32], strides = [1, 1]} : vector<8x96xf32> to vector<8x32xf32>
    %487 = arith.addf %485, %486 : vector<8x32xf32>
    %488 = arith.negf %487 : vector<8x32xf32>
    %489 = math.exp %488 : vector<8x32xf32>
    %cst_121 = arith.constant 1.000000e+00 : f32
    %490 = vector.broadcast %cst_121 : f32 to vector<8x32xf32>
    %491 = arith.addf %490, %489 : vector<8x32xf32>
    %492 = arith.divf %490, %491 : vector<8x32xf32>
    %493 = vector.extract_strided_slice %481 {offsets = [0, 32], sizes = [8, 32], strides = [1, 1]} : vector<8x96xf32> to vector<8x32xf32>
    %494 = vector.extract_strided_slice %484 {offsets = [0, 32], sizes = [8, 32], strides = [1, 1]} : vector<8x96xf32> to vector<8x32xf32>
    %495 = arith.addf %493, %494 : vector<8x32xf32>
    %496 = arith.negf %495 : vector<8x32xf32>
    %497 = math.exp %496 : vector<8x32xf32>
    %cst_122 = arith.constant 1.000000e+00 : f32
    %498 = vector.broadcast %cst_122 : f32 to vector<8x32xf32>
    %499 = arith.addf %498, %497 : vector<8x32xf32>
    %500 = arith.divf %498, %499 : vector<8x32xf32>
    %501 = vector.extract_strided_slice %481 {offsets = [0, 64], sizes = [8, 32], strides = [1, 1]} : vector<8x96xf32> to vector<8x32xf32>
    %502 = vector.extract_strided_slice %484 {offsets = [0, 64], sizes = [8, 32], strides = [1, 1]} : vector<8x96xf32> to vector<8x32xf32>
    %503 = arith.mulf %492, %502 : vector<8x32xf32>
    %504 = arith.addf %501, %503 : vector<8x32xf32>
    %505 = math.tanh %504 : vector<8x32xf32>
    %cst_123 = arith.constant 1.000000e+00 : f32
    %506 = vector.broadcast %cst_123 : f32 to vector<8x32xf32>
    %507 = arith.subf %506, %500 : vector<8x32xf32>
    %508 = arith.mulf %507, %505 : vector<8x32xf32>
    %509 = arith.mulf %500, %439 : vector<8x32xf32>
    %510 = arith.addf %508, %509 : vector<8x32xf32>
    %511 = arith.index_cast %445 : i32 to index
    %c0_124 = arith.constant 0 : index
    %512 = vector.load %arg9[%511, %c0_124] : memref<64x32xf32, #tpu.memory_space<vmem>>, vector<8x32xf32>
    tpu.vector_store %arg9[%511, %c0_124], %479 {strides = array<i32>} : memref<64x32xf32, #tpu.memory_space<vmem>>, vector<8x32xf32>,
    %513 = arith.index_cast %448 : i32 to index
    %c0_125 = arith.constant 0 : index
    %514 = vector.load %arg10[%513, %c0_125] : memref<64x32xf32, #tpu.memory_space<vmem>>, vector<8x32xf32>
    tpu.vector_store %arg10[%513, %c0_125], %510 {strides = array<i32>} : memref<64x32xf32, #tpu.memory_space<vmem>>, vector<8x32xf32>,
    %c7_i32_126 = arith.constant 7 : i32
    %c8_i32_127 = arith.constant 8 : i32
    %515 = arith.muli %c7_i32_126, %c8_i32_127 : i32
    %516 = tpu.assume_multiple %515, 8 : i32
    %c7_i32_128 = arith.constant 7 : i32
    %517 = arith.subi %c7_i32_128, %c7_i32_126 : i32
    %c8_i32_129 = arith.constant 8 : i32
    %518 = arith.muli %517, %c8_i32_129 : i32
    %519 = tpu.assume_multiple %518, 8 : i32
    %520 = arith.index_cast %516 : i32 to index
    %c0_130 = arith.constant 0 : index
    %521 = vector.load %arg13[%520, %c0_130] : memref<64x96xf32, #tpu.memory_space<vmem>>, vector<8x96xf32>
    %cst_131 = arith.constant dense<0.000000e+00> : vector<8x96xf32>
    %522 = tpu.matmul %479, %13, %cst_131 {dimension_numbers = #tpu.dot_dimension_numbers<[1], [0], [0], [1], [0, 0, 1, 1], [], []>} : vector<8x32xf32>, vector<32x96xf32>, vector<8x96xf32> -> vector<8x96xf32>
    %523 = vector.broadcast %15 : vector<1x96xf32> to vector<8x96xf32>
    %524 = arith.addf %522, %523 : vector<8x96xf32>
    %525 = vector.extract_strided_slice %521 {offsets = [0, 0], sizes = [8, 32], strides = [1, 1]} : vector<8x96xf32> to vector<8x32xf32>
    %526 = vector.extract_strided_slice %524 {offsets = [0, 0], sizes = [8, 32], strides = [1, 1]} : vector<8x96xf32> to vector<8x32xf32>
    %527 = arith.addf %525, %526 : vector<8x32xf32>
    %528 = arith.negf %527 : vector<8x32xf32>
    %529 = math.exp %528 : vector<8x32xf32>
    %cst_132 = arith.constant 1.000000e+00 : f32
    %530 = vector.broadcast %cst_132 : f32 to vector<8x32xf32>
    %531 = arith.addf %530, %529 : vector<8x32xf32>
    %532 = arith.divf %530, %531 : vector<8x32xf32>
    %533 = vector.extract_strided_slice %521 {offsets = [0, 32], sizes = [8, 32], strides = [1, 1]} : vector<8x96xf32> to vector<8x32xf32>
    %534 = vector.extract_strided_slice %524 {offsets = [0, 32], sizes = [8, 32], strides = [1, 1]} : vector<8x96xf32> to vector<8x32xf32>
    %535 = arith.addf %533, %534 : vector<8x32xf32>
    %536 = arith.negf %535 : vector<8x32xf32>
    %537 = math.exp %536 : vector<8x32xf32>
    %cst_133 = arith.constant 1.000000e+00 : f32
    %538 = vector.broadcast %cst_133 : f32 to vector<8x32xf32>
    %539 = arith.addf %538, %537 : vector<8x32xf32>
    %540 = arith.divf %538, %539 : vector<8x32xf32>
    %541 = vector.extract_strided_slice %521 {offsets = [0, 64], sizes = [8, 32], strides = [1, 1]} : vector<8x96xf32> to vector<8x32xf32>
    %542 = vector.extract_strided_slice %524 {offsets = [0, 64], sizes = [8, 32], strides = [1, 1]} : vector<8x96xf32> to vector<8x32xf32>
    %543 = arith.mulf %532, %542 : vector<8x32xf32>
    %544 = arith.addf %541, %543 : vector<8x32xf32>
    %545 = math.tanh %544 : vector<8x32xf32>
    %cst_134 = arith.constant 1.000000e+00 : f32
    %546 = vector.broadcast %cst_134 : f32 to vector<8x32xf32>
    %547 = arith.subf %546, %540 : vector<8x32xf32>
    %548 = arith.mulf %547, %545 : vector<8x32xf32>
    %549 = arith.mulf %540, %479 : vector<8x32xf32>
    %550 = arith.addf %548, %549 : vector<8x32xf32>
    %551 = arith.index_cast %519 : i32 to index
    %c0_135 = arith.constant 0 : index
    %552 = vector.load %arg14[%551, %c0_135] : memref<64x96xf32, #tpu.memory_space<vmem>>, vector<8x96xf32>
    %cst_136 = arith.constant dense<0.000000e+00> : vector<8x96xf32>
    %553 = tpu.matmul %510, %14, %cst_136 {dimension_numbers = #tpu.dot_dimension_numbers<[1], [0], [0], [1], [0, 0, 1, 1], [], []>} : vector<8x32xf32>, vector<32x96xf32>, vector<8x96xf32> -> vector<8x96xf32>
    %554 = vector.broadcast %16 : vector<1x96xf32> to vector<8x96xf32>
    %555 = arith.addf %553, %554 : vector<8x96xf32>
    %556 = vector.extract_strided_slice %552 {offsets = [0, 0], sizes = [8, 32], strides = [1, 1]} : vector<8x96xf32> to vector<8x32xf32>
    %557 = vector.extract_strided_slice %555 {offsets = [0, 0], sizes = [8, 32], strides = [1, 1]} : vector<8x96xf32> to vector<8x32xf32>
    %558 = arith.addf %556, %557 : vector<8x32xf32>
    %559 = arith.negf %558 : vector<8x32xf32>
    %560 = math.exp %559 : vector<8x32xf32>
    %cst_137 = arith.constant 1.000000e+00 : f32
    %561 = vector.broadcast %cst_137 : f32 to vector<8x32xf32>
    %562 = arith.addf %561, %560 : vector<8x32xf32>
    %563 = arith.divf %561, %562 : vector<8x32xf32>
    %564 = vector.extract_strided_slice %552 {offsets = [0, 32], sizes = [8, 32], strides = [1, 1]} : vector<8x96xf32> to vector<8x32xf32>
    %565 = vector.extract_strided_slice %555 {offsets = [0, 32], sizes = [8, 32], strides = [1, 1]} : vector<8x96xf32> to vector<8x32xf32>
    %566 = arith.addf %564, %565 : vector<8x32xf32>
    %567 = arith.negf %566 : vector<8x32xf32>
    %568 = math.exp %567 : vector<8x32xf32>
    %cst_138 = arith.constant 1.000000e+00 : f32
    %569 = vector.broadcast %cst_138 : f32 to vector<8x32xf32>
    %570 = arith.addf %569, %568 : vector<8x32xf32>
    %571 = arith.divf %569, %570 : vector<8x32xf32>
    %572 = vector.extract_strided_slice %552 {offsets = [0, 64], sizes = [8, 32], strides = [1, 1]} : vector<8x96xf32> to vector<8x32xf32>
    %573 = vector.extract_strided_slice %555 {offsets = [0, 64], sizes = [8, 32], strides = [1, 1]} : vector<8x96xf32> to vector<8x32xf32>
    %574 = arith.mulf %563, %573 : vector<8x32xf32>
    %575 = arith.addf %572, %574 : vector<8x32xf32>
    %576 = math.tanh %575 : vector<8x32xf32>
    %cst_139 = arith.constant 1.000000e+00 : f32
    %577 = vector.broadcast %cst_139 : f32 to vector<8x32xf32>
    %578 = arith.subf %577, %571 : vector<8x32xf32>
    %579 = arith.mulf %578, %576 : vector<8x32xf32>
    %580 = arith.mulf %571, %510 : vector<8x32xf32>
    %581 = arith.addf %579, %580 : vector<8x32xf32>
    %582 = arith.index_cast %516 : i32 to index
    %c0_140 = arith.constant 0 : index
    %583 = vector.load %arg9[%582, %c0_140] : memref<64x32xf32, #tpu.memory_space<vmem>>, vector<8x32xf32>
    tpu.vector_store %arg9[%582, %c0_140], %550 {strides = array<i32>} : memref<64x32xf32, #tpu.memory_space<vmem>>, vector<8x32xf32>,
    %584 = arith.index_cast %519 : i32 to index
    %c0_141 = arith.constant 0 : index
    %585 = vector.load %arg10[%584, %c0_141] : memref<64x32xf32, #tpu.memory_space<vmem>>, vector<8x32xf32>
    tpu.vector_store %arg10[%584, %c0_141], %581 {strides = array<i32>} : memref<64x32xf32, #tpu.memory_space<vmem>>, vector<8x32xf32>,
    %c8_i32_142 = arith.constant 8 : i32
    %c0_143 = arith.constant 0 : index
    %c0_144 = arith.constant 0 : index
    %586 = vector.load %arg11[%c0_143, %c0_144] : memref<8x32xf32, #tpu.memory_space<vmem>>, vector<8x32xf32>
    tpu.vector_store %arg11[%c0_143, %c0_144], %550 {strides = array<i32>} : memref<8x32xf32, #tpu.memory_space<vmem>>, vector<8x32xf32>,
    %c0_145 = arith.constant 0 : index
    %c0_146 = arith.constant 0 : index
    %587 = vector.load %arg12[%c0_145, %c0_146] : memref<8x32xf32, #tpu.memory_space<vmem>>, vector<8x32xf32>
    tpu.vector_store %arg12[%c0_145, %c0_146], %581 {strides = array<i32>} : memref<8x32xf32, #tpu.memory_space<vmem>>, vector<8x32xf32>,
    return
  }
}

module attributes {stable_mosaic.version = 11 : i64} {
  func.func @bigru_layer_kernel(%arg0: memref<64x64xf32, #tpu.memory_space<vmem>>, %arg1: memref<64x96xf32, #tpu.memory_space<vmem>>, %arg2: memref<32x96xf32, #tpu.memory_space<vmem>>, %arg3: memref<1x96xf32, #tpu.memory_space<vmem>>, %arg4: memref<1x96xf32, #tpu.memory_space<vmem>>, %arg5: memref<64x96xf32, #tpu.memory_space<vmem>>, %arg6: memref<32x96xf32, #tpu.memory_space<vmem>>, %arg7: memref<1x96xf32, #tpu.memory_space<vmem>>, %arg8: memref<1x96xf32, #tpu.memory_space<vmem>>, %arg9: memref<64x32xf32, #tpu.memory_space<vmem>>, %arg10: memref<64x32xf32, #tpu.memory_space<vmem>>, %arg11: memref<8x32xf32, #tpu.memory_space<vmem>>, %arg12: memref<8x32xf32, #tpu.memory_space<vmem>>, %arg13: memref<64x96xf32, #tpu.memory_space<vmem>>, %arg14: memref<64x96xf32, #tpu.memory_space<vmem>>) attributes {dimension_semantics = [], scalar_prefetch = 0 : i64, scratch_operands = 2 : i64, tpu.core_type = #tpu.core_type<tc>} {
    %c0 = arith.constant 0 : index
    %c0_0 = arith.constant 0 : index
    %0 = vector.load %arg0[%c0, %c0_0] : memref<64x64xf32, #tpu.memory_space<vmem>>, vector<64x64xf32>
    %c0_1 = arith.constant 0 : index
    %c0_2 = arith.constant 0 : index
    %1 = vector.load %arg1[%c0_1, %c0_2] : memref<64x96xf32, #tpu.memory_space<vmem>>, vector<64x96xf32>
    %cst = arith.constant dense<0.000000e+00> : vector<64x96xf32>
    %2 = tpu.matmul %0, %1, %cst {dimension_numbers = #tpu.dot_dimension_numbers<[1], [0], [0], [1], [0, 0, 1, 1], [], []>} : vector<64x64xf32>, vector<64x96xf32>, vector<64x96xf32> -> vector<64x96xf32>
    %c0_3 = arith.constant 0 : index
    %c0_4 = arith.constant 0 : index
    %3 = vector.load %arg3[%c0_3, %c0_4] : memref<1x96xf32, #tpu.memory_space<vmem>>, vector<1x96xf32>
    %4 = vector.broadcast %3 : vector<1x96xf32> to vector<64x96xf32>
    %5 = arith.addf %2, %4 : vector<64x96xf32>
    %c0_5 = arith.constant 0 : index
    %c0_6 = arith.constant 0 : index
    %6 = vector.load %arg13[%c0_5, %c0_6] : memref<64x96xf32, #tpu.memory_space<vmem>>, vector<64x96xf32>
    tpu.vector_store %arg13[%c0_5, %c0_6], %5 {strides = array<i32>} : memref<64x96xf32, #tpu.memory_space<vmem>>, vector<64x96xf32>,
    %c0_7 = arith.constant 0 : index
    %c0_8 = arith.constant 0 : index
    %7 = vector.load %arg5[%c0_7, %c0_8] : memref<64x96xf32, #tpu.memory_space<vmem>>, vector<64x96xf32>
    %cst_9 = arith.constant dense<0.000000e+00> : vector<64x96xf32>
    %8 = tpu.matmul %0, %7, %cst_9 {dimension_numbers = #tpu.dot_dimension_numbers<[1], [0], [0], [1], [0, 0, 1, 1], [], []>} : vector<64x64xf32>, vector<64x96xf32>, vector<64x96xf32> -> vector<64x96xf32>
    %c0_10 = arith.constant 0 : index
    %c0_11 = arith.constant 0 : index
    %9 = vector.load %arg7[%c0_10, %c0_11] : memref<1x96xf32, #tpu.memory_space<vmem>>, vector<1x96xf32>
    %10 = vector.broadcast %9 : vector<1x96xf32> to vector<64x96xf32>
    %11 = arith.addf %8, %10 : vector<64x96xf32>
    %c0_12 = arith.constant 0 : index
    %c0_13 = arith.constant 0 : index
    %12 = vector.load %arg14[%c0_12, %c0_13] : memref<64x96xf32, #tpu.memory_space<vmem>>, vector<64x96xf32>
    tpu.vector_store %arg14[%c0_12, %c0_13], %11 {strides = array<i32>} : memref<64x96xf32, #tpu.memory_space<vmem>>, vector<64x96xf32>,
    %c0_14 = arith.constant 0 : index
    %c0_15 = arith.constant 0 : index
    %13 = vector.load %arg2[%c0_14, %c0_15] : memref<32x96xf32, #tpu.memory_space<vmem>>, vector<32x96xf32>
    %c0_16 = arith.constant 0 : index
    %c0_17 = arith.constant 0 : index
    %14 = vector.load %arg6[%c0_16, %c0_17] : memref<32x96xf32, #tpu.memory_space<vmem>>, vector<32x96xf32>
    %c0_18 = arith.constant 0 : index
    %c0_19 = arith.constant 0 : index
    %15 = vector.load %arg4[%c0_18, %c0_19] : memref<1x96xf32, #tpu.memory_space<vmem>>, vector<1x96xf32>
    %c0_20 = arith.constant 0 : index
    %c0_21 = arith.constant 0 : index
    %16 = vector.load %arg8[%c0_20, %c0_21] : memref<1x96xf32, #tpu.memory_space<vmem>>, vector<1x96xf32>
    %cst_22 = arith.constant 0.000000e+00 : f32
    %17 = vector.broadcast %cst_22 : f32 to vector<8x32xf32>
    %c0_i32 = arith.constant 0 : i32
    %c8_i32 = arith.constant 8 : i32
    %18 = arith.muli %c0_i32, %c8_i32 : i32
    %19 = tpu.assume_multiple %18, 8 : i32
    %c7_i32 = arith.constant 7 : i32
    %20 = arith.subi %c7_i32, %c0_i32 : i32
    %c8_i32_23 = arith.constant 8 : i32
    %21 = arith.muli %20, %c8_i32_23 : i32
    %22 = tpu.assume_multiple %21, 8 : i32
    %23 = arith.index_cast %19 : i32 to index
    %c0_24 = arith.constant 0 : index
    %24 = vector.load %arg13[%23, %c0_24] : memref<64x96xf32, #tpu.memory_space<vmem>>, vector<8x96xf32>
    %cst_25 = arith.constant dense<0.000000e+00> : vector<8x96xf32>
    %25 = tpu.matmul %17, %13, %cst_25 {dimension_numbers = #tpu.dot_dimension_numbers<[1], [0], [0], [1], [0, 0, 1, 1], [], []>} : vector<8x32xf32>, vector<32x96xf32>, vector<8x96xf32> -> vector<8x96xf32>
    %26 = vector.broadcast %15 : vector<1x96xf32> to vector<8x96xf32>
    %27 = arith.addf %25, %26 : vector<8x96xf32>
    %28 = vector.extract_strided_slice %24 {offsets = [0, 0], sizes = [8, 32], strides = [1, 1]} : vector<8x96xf32> to vector<8x32xf32>
    %29 = vector.extract_strided_slice %27 {offsets = [0, 0], sizes = [8, 32], strides = [1, 1]} : vector<8x96xf32> to vector<8x32xf32>
    %30 = arith.addf %28, %29 : vector<8x32xf32>
    %31 = arith.negf %30 : vector<8x32xf32>
    %32 = math.exp %31 : vector<8x32xf32>
    %cst_26 = arith.constant 1.000000e+00 : f32
    %33 = vector.broadcast %cst_26 : f32 to vector<8x32xf32>
    %34 = arith.addf %33, %32 : vector<8x32xf32>
    %35 = arith.divf %33, %34 : vector<8x32xf32>
    %36 = vector.extract_strided_slice %24 {offsets = [0, 32], sizes = [8, 32], strides = [1, 1]} : vector<8x96xf32> to vector<8x32xf32>
    %37 = vector.extract_strided_slice %27 {offsets = [0, 32], sizes = [8, 32], strides = [1, 1]} : vector<8x96xf32> to vector<8x32xf32>
    %38 = arith.addf %36, %37 : vector<8x32xf32>
    %39 = arith.negf %38 : vector<8x32xf32>
    %40 = math.exp %39 : vector<8x32xf32>
    %cst_27 = arith.constant 1.000000e+00 : f32
    %41 = vector.broadcast %cst_27 : f32 to vector<8x32xf32>
    %42 = arith.addf %41, %40 : vector<8x32xf32>
    %43 = arith.divf %41, %42 : vector<8x32xf32>
    %44 = vector.extract_strided_slice %24 {offsets = [0, 64], sizes = [8, 32], strides = [1, 1]} : vector<8x96xf32> to vector<8x32xf32>
    %45 = vector.extract_strided_slice %27 {offsets = [0, 64], sizes = [8, 32], strides = [1, 1]} : vector<8x96xf32> to vector<8x32xf32>
    %46 = arith.mulf %35, %45 : vector<8x32xf32>
    %47 = arith.addf %44, %46 : vector<8x32xf32>
    %48 = math.tanh %47 : vector<8x32xf32>
    %cst_28 = arith.constant 1.000000e+00 : f32
    %49 = vector.broadcast %cst_28 : f32 to vector<8x32xf32>
    %50 = arith.subf %49, %43 : vector<8x32xf32>
    %51 = arith.mulf %50, %48 : vector<8x32xf32>
    %52 = arith.mulf %43, %17 : vector<8x32xf32>
    %53 = arith.addf %51, %52 : vector<8x32xf32>
    %54 = arith.index_cast %22 : i32 to index
    %c0_29 = arith.constant 0 : index
    %55 = vector.load %arg14[%54, %c0_29] : memref<64x96xf32, #tpu.memory_space<vmem>>, vector<8x96xf32>
    %cst_30 = arith.constant dense<0.000000e+00> : vector<8x96xf32>
    %56 = tpu.matmul %17, %14, %cst_30 {dimension_numbers = #tpu.dot_dimension_numbers<[1], [0], [0], [1], [0, 0, 1, 1], [], []>} : vector<8x32xf32>, vector<32x96xf32>, vector<8x96xf32> -> vector<8x96xf32>
    %57 = vector.broadcast %16 : vector<1x96xf32> to vector<8x96xf32>
    %58 = arith.addf %56, %57 : vector<8x96xf32>
    %59 = vector.extract_strided_slice %55 {offsets = [0, 0], sizes = [8, 32], strides = [1, 1]} : vector<8x96xf32> to vector<8x32xf32>
    %60 = vector.extract_strided_slice %58 {offsets = [0, 0], sizes = [8, 32], strides = [1, 1]} : vector<8x96xf32> to vector<8x32xf32>
    %61 = arith.addf %59, %60 : vector<8x32xf32>
    %62 = arith.negf %61 : vector<8x32xf32>
    %63 = math.exp %62 : vector<8x32xf32>
    %cst_31 = arith.constant 1.000000e+00 : f32
    %64 = vector.broadcast %cst_31 : f32 to vector<8x32xf32>
    %65 = arith.addf %64, %63 : vector<8x32xf32>
    %66 = arith.divf %64, %65 : vector<8x32xf32>
    %67 = vector.extract_strided_slice %55 {offsets = [0, 32], sizes = [8, 32], strides = [1, 1]} : vector<8x96xf32> to vector<8x32xf32>
    %68 = vector.extract_strided_slice %58 {offsets = [0, 32], sizes = [8, 32], strides = [1, 1]} : vector<8x96xf32> to vector<8x32xf32>
    %69 = arith.addf %67, %68 : vector<8x32xf32>
    %70 = arith.negf %69 : vector<8x32xf32>
    %71 = math.exp %70 : vector<8x32xf32>
    %cst_32 = arith.constant 1.000000e+00 : f32
    %72 = vector.broadcast %cst_32 : f32 to vector<8x32xf32>
    %73 = arith.addf %72, %71 : vector<8x32xf32>
    %74 = arith.divf %72, %73 : vector<8x32xf32>
    %75 = vector.extract_strided_slice %55 {offsets = [0, 64], sizes = [8, 32], strides = [1, 1]} : vector<8x96xf32> to vector<8x32xf32>
    %76 = vector.extract_strided_slice %58 {offsets = [0, 64], sizes = [8, 32], strides = [1, 1]} : vector<8x96xf32> to vector<8x32xf32>
    %77 = arith.mulf %66, %76 : vector<8x32xf32>
    %78 = arith.addf %75, %77 : vector<8x32xf32>
    %79 = math.tanh %78 : vector<8x32xf32>
    %cst_33 = arith.constant 1.000000e+00 : f32
    %80 = vector.broadcast %cst_33 : f32 to vector<8x32xf32>
    %81 = arith.subf %80, %74 : vector<8x32xf32>
    %82 = arith.mulf %81, %79 : vector<8x32xf32>
    %83 = arith.mulf %74, %17 : vector<8x32xf32>
    %84 = arith.addf %82, %83 : vector<8x32xf32>
    %85 = arith.index_cast %19 : i32 to index
    %c0_34 = arith.constant 0 : index
    %86 = vector.load %arg9[%85, %c0_34] : memref<64x32xf32, #tpu.memory_space<vmem>>, vector<8x32xf32>
    tpu.vector_store %arg9[%85, %c0_34], %53 {strides = array<i32>} : memref<64x32xf32, #tpu.memory_space<vmem>>, vector<8x32xf32>,
    %87 = arith.index_cast %22 : i32 to index
    %c0_35 = arith.constant 0 : index
    %88 = vector.load %arg10[%87, %c0_35] : memref<64x32xf32, #tpu.memory_space<vmem>>, vector<8x32xf32>
    tpu.vector_store %arg10[%87, %c0_35], %84 {strides = array<i32>} : memref<64x32xf32, #tpu.memory_space<vmem>>, vector<8x32xf32>,
    %c1_i32 = arith.constant 1 : i32
    %c8_i32_36 = arith.constant 8 : i32
    %89 = arith.muli %c1_i32, %c8_i32_36 : i32
    %90 = tpu.assume_multiple %89, 8 : i32
    %c7_i32_37 = arith.constant 7 : i32
    %91 = arith.subi %c7_i32_37, %c1_i32 : i32
    %c8_i32_38 = arith.constant 8 : i32
    %92 = arith.muli %91, %c8_i32_38 : i32
    %93 = tpu.assume_multiple %92, 8 : i32
    %94 = arith.index_cast %90 : i32 to index
    %c0_39 = arith.constant 0 : index
    %95 = vector.load %arg13[%94, %c0_39] : memref<64x96xf32, #tpu.memory_space<vmem>>, vector<8x96xf32>
    %cst_40 = arith.constant dense<0.000000e+00> : vector<8x96xf32>
    %96 = tpu.matmul %53, %13, %cst_40 {dimension_numbers = #tpu.dot_dimension_numbers<[1], [0], [0], [1], [0, 0, 1, 1], [], []>} : vector<8x32xf32>, vector<32x96xf32>, vector<8x96xf32> -> vector<8x96xf32>
    %97 = vector.broadcast %15 : vector<1x96xf32> to vector<8x96xf32>
    %98 = arith.addf %96, %97 : vector<8x96xf32>
    %99 = vector.extract_strided_slice %95 {offsets = [0, 0], sizes = [8, 32], strides = [1, 1]} : vector<8x96xf32> to vector<8x32xf32>
    %100 = vector.extract_strided_slice %98 {offsets = [0, 0], sizes = [8, 32], strides = [1, 1]} : vector<8x96xf32> to vector<8x32xf32>
    %101 = arith.addf %99, %100 : vector<8x32xf32>
    %102 = arith.negf %101 : vector<8x32xf32>
    %103 = math.exp %102 : vector<8x32xf32>
    %cst_41 = arith.constant 1.000000e+00 : f32
    %104 = vector.broadcast %cst_41 : f32 to vector<8x32xf32>
    %105 = arith.addf %104, %103 : vector<8x32xf32>
    %106 = arith.divf %104, %105 : vector<8x32xf32>
    %107 = vector.extract_strided_slice %95 {offsets = [0, 32], sizes = [8, 32], strides = [1, 1]} : vector<8x96xf32> to vector<8x32xf32>
    %108 = vector.extract_strided_slice %98 {offsets = [0, 32], sizes = [8, 32], strides = [1, 1]} : vector<8x96xf32> to vector<8x32xf32>
    %109 = arith.addf %107, %108 : vector<8x32xf32>
    %110 = arith.negf %109 : vector<8x32xf32>
    %111 = math.exp %110 : vector<8x32xf32>
    %cst_42 = arith.constant 1.000000e+00 : f32
    %112 = vector.broadcast %cst_42 : f32 to vector<8x32xf32>
    %113 = arith.addf %112, %111 : vector<8x32xf32>
    %114 = arith.divf %112, %113 : vector<8x32xf32>
    %115 = vector.extract_strided_slice %95 {offsets = [0, 64], sizes = [8, 32], strides = [1, 1]} : vector<8x96xf32> to vector<8x32xf32>
    %116 = vector.extract_strided_slice %98 {offsets = [0, 64], sizes = [8, 32], strides = [1, 1]} : vector<8x96xf32> to vector<8x32xf32>
    %117 = arith.mulf %106, %116 : vector<8x32xf32>
    %118 = arith.addf %115, %117 : vector<8x32xf32>
    %119 = math.tanh %118 : vector<8x32xf32>
    %cst_43 = arith.constant 1.000000e+00 : f32
    %120 = vector.broadcast %cst_43 : f32 to vector<8x32xf32>
    %121 = arith.subf %120, %114 : vector<8x32xf32>
    %122 = arith.mulf %121, %119 : vector<8x32xf32>
    %123 = arith.mulf %114, %53 : vector<8x32xf32>
    %124 = arith.addf %122, %123 : vector<8x32xf32>
    %125 = arith.index_cast %93 : i32 to index
    %c0_44 = arith.constant 0 : index
    %126 = vector.load %arg14[%125, %c0_44] : memref<64x96xf32, #tpu.memory_space<vmem>>, vector<8x96xf32>
    %cst_45 = arith.constant dense<0.000000e+00> : vector<8x96xf32>
    %127 = tpu.matmul %84, %14, %cst_45 {dimension_numbers = #tpu.dot_dimension_numbers<[1], [0], [0], [1], [0, 0, 1, 1], [], []>} : vector<8x32xf32>, vector<32x96xf32>, vector<8x96xf32> -> vector<8x96xf32>
    %128 = vector.broadcast %16 : vector<1x96xf32> to vector<8x96xf32>
    %129 = arith.addf %127, %128 : vector<8x96xf32>
    %130 = vector.extract_strided_slice %126 {offsets = [0, 0], sizes = [8, 32], strides = [1, 1]} : vector<8x96xf32> to vector<8x32xf32>
    %131 = vector.extract_strided_slice %129 {offsets = [0, 0], sizes = [8, 32], strides = [1, 1]} : vector<8x96xf32> to vector<8x32xf32>
    %132 = arith.addf %130, %131 : vector<8x32xf32>
    %133 = arith.negf %132 : vector<8x32xf32>
    %134 = math.exp %133 : vector<8x32xf32>
    %cst_46 = arith.constant 1.000000e+00 : f32
    %135 = vector.broadcast %cst_46 : f32 to vector<8x32xf32>
    %136 = arith.addf %135, %134 : vector<8x32xf32>
    %137 = arith.divf %135, %136 : vector<8x32xf32>
    %138 = vector.extract_strided_slice %126 {offsets = [0, 32], sizes = [8, 32], strides = [1, 1]} : vector<8x96xf32> to vector<8x32xf32>
    %139 = vector.extract_strided_slice %129 {offsets = [0, 32], sizes = [8, 32], strides = [1, 1]} : vector<8x96xf32> to vector<8x32xf32>
    %140 = arith.addf %138, %139 : vector<8x32xf32>
    %141 = arith.negf %140 : vector<8x32xf32>
    %142 = math.exp %141 : vector<8x32xf32>
    %cst_47 = arith.constant 1.000000e+00 : f32
    %143 = vector.broadcast %cst_47 : f32 to vector<8x32xf32>
    %144 = arith.addf %143, %142 : vector<8x32xf32>
    %145 = arith.divf %143, %144 : vector<8x32xf32>
    %146 = vector.extract_strided_slice %126 {offsets = [0, 64], sizes = [8, 32], strides = [1, 1]} : vector<8x96xf32> to vector<8x32xf32>
    %147 = vector.extract_strided_slice %129 {offsets = [0, 64], sizes = [8, 32], strides = [1, 1]} : vector<8x96xf32> to vector<8x32xf32>
    %148 = arith.mulf %137, %147 : vector<8x32xf32>
    %149 = arith.addf %146, %148 : vector<8x32xf32>
    %150 = math.tanh %149 : vector<8x32xf32>
    %cst_48 = arith.constant 1.000000e+00 : f32
    %151 = vector.broadcast %cst_48 : f32 to vector<8x32xf32>
    %152 = arith.subf %151, %145 : vector<8x32xf32>
    %153 = arith.mulf %152, %150 : vector<8x32xf32>
    %154 = arith.mulf %145, %84 : vector<8x32xf32>
    %155 = arith.addf %153, %154 : vector<8x32xf32>
    %156 = arith.index_cast %90 : i32 to index
    %c0_49 = arith.constant 0 : index
    %157 = vector.load %arg9[%156, %c0_49] : memref<64x32xf32, #tpu.memory_space<vmem>>, vector<8x32xf32>
    tpu.vector_store %arg9[%156, %c0_49], %124 {strides = array<i32>} : memref<64x32xf32, #tpu.memory_space<vmem>>, vector<8x32xf32>,
    %158 = arith.index_cast %93 : i32 to index
    %c0_50 = arith.constant 0 : index
    %159 = vector.load %arg10[%158, %c0_50] : memref<64x32xf32, #tpu.memory_space<vmem>>, vector<8x32xf32>
    tpu.vector_store %arg10[%158, %c0_50], %155 {strides = array<i32>} : memref<64x32xf32, #tpu.memory_space<vmem>>, vector<8x32xf32>,
    %c2_i32 = arith.constant 2 : i32
    %c8_i32_51 = arith.constant 8 : i32
    %160 = arith.muli %c2_i32, %c8_i32_51 : i32
    %161 = tpu.assume_multiple %160, 8 : i32
    %c7_i32_52 = arith.constant 7 : i32
    %162 = arith.subi %c7_i32_52, %c2_i32 : i32
    %c8_i32_53 = arith.constant 8 : i32
    %163 = arith.muli %162, %c8_i32_53 : i32
    %164 = tpu.assume_multiple %163, 8 : i32
    %165 = arith.index_cast %161 : i32 to index
    %c0_54 = arith.constant 0 : index
    %166 = vector.load %arg13[%165, %c0_54] : memref<64x96xf32, #tpu.memory_space<vmem>>, vector<8x96xf32>
    %cst_55 = arith.constant dense<0.000000e+00> : vector<8x96xf32>
    %167 = tpu.matmul %124, %13, %cst_55 {dimension_numbers = #tpu.dot_dimension_numbers<[1], [0], [0], [1], [0, 0, 1, 1], [], []>} : vector<8x32xf32>, vector<32x96xf32>, vector<8x96xf32> -> vector<8x96xf32>
    %168 = vector.broadcast %15 : vector<1x96xf32> to vector<8x96xf32>
    %169 = arith.addf %167, %168 : vector<8x96xf32>
    %170 = vector.extract_strided_slice %166 {offsets = [0, 0], sizes = [8, 32], strides = [1, 1]} : vector<8x96xf32> to vector<8x32xf32>
    %171 = vector.extract_strided_slice %169 {offsets = [0, 0], sizes = [8, 32], strides = [1, 1]} : vector<8x96xf32> to vector<8x32xf32>
    %172 = arith.addf %170, %171 : vector<8x32xf32>
    %173 = arith.negf %172 : vector<8x32xf32>
    %174 = math.exp %173 : vector<8x32xf32>
    %cst_56 = arith.constant 1.000000e+00 : f32
    %175 = vector.broadcast %cst_56 : f32 to vector<8x32xf32>
    %176 = arith.addf %175, %174 : vector<8x32xf32>
    %177 = arith.divf %175, %176 : vector<8x32xf32>
    %178 = vector.extract_strided_slice %166 {offsets = [0, 32], sizes = [8, 32], strides = [1, 1]} : vector<8x96xf32> to vector<8x32xf32>
    %179 = vector.extract_strided_slice %169 {offsets = [0, 32], sizes = [8, 32], strides = [1, 1]} : vector<8x96xf32> to vector<8x32xf32>
    %180 = arith.addf %178, %179 : vector<8x32xf32>
    %181 = arith.negf %180 : vector<8x32xf32>
    %182 = math.exp %181 : vector<8x32xf32>
    %cst_57 = arith.constant 1.000000e+00 : f32
    %183 = vector.broadcast %cst_57 : f32 to vector<8x32xf32>
    %184 = arith.addf %183, %182 : vector<8x32xf32>
    %185 = arith.divf %183, %184 : vector<8x32xf32>
    %186 = vector.extract_strided_slice %166 {offsets = [0, 64], sizes = [8, 32], strides = [1, 1]} : vector<8x96xf32> to vector<8x32xf32>
    %187 = vector.extract_strided_slice %169 {offsets = [0, 64], sizes = [8, 32], strides = [1, 1]} : vector<8x96xf32> to vector<8x32xf32>
    %188 = arith.mulf %177, %187 : vector<8x32xf32>
    %189 = arith.addf %186, %188 : vector<8x32xf32>
    %190 = math.tanh %189 : vector<8x32xf32>
    %cst_58 = arith.constant 1.000000e+00 : f32
    %191 = vector.broadcast %cst_58 : f32 to vector<8x32xf32>
    %192 = arith.subf %191, %185 : vector<8x32xf32>
    %193 = arith.mulf %192, %190 : vector<8x32xf32>
    %194 = arith.mulf %185, %124 : vector<8x32xf32>
    %195 = arith.addf %193, %194 : vector<8x32xf32>
    %196 = arith.index_cast %164 : i32 to index
    %c0_59 = arith.constant 0 : index
    %197 = vector.load %arg14[%196, %c0_59] : memref<64x96xf32, #tpu.memory_space<vmem>>, vector<8x96xf32>
    %cst_60 = arith.constant dense<0.000000e+00> : vector<8x96xf32>
    %198 = tpu.matmul %155, %14, %cst_60 {dimension_numbers = #tpu.dot_dimension_numbers<[1], [0], [0], [1], [0, 0, 1, 1], [], []>} : vector<8x32xf32>, vector<32x96xf32>, vector<8x96xf32> -> vector<8x96xf32>
    %199 = vector.broadcast %16 : vector<1x96xf32> to vector<8x96xf32>
    %200 = arith.addf %198, %199 : vector<8x96xf32>
    %201 = vector.extract_strided_slice %197 {offsets = [0, 0], sizes = [8, 32], strides = [1, 1]} : vector<8x96xf32> to vector<8x32xf32>
    %202 = vector.extract_strided_slice %200 {offsets = [0, 0], sizes = [8, 32], strides = [1, 1]} : vector<8x96xf32> to vector<8x32xf32>
    %203 = arith.addf %201, %202 : vector<8x32xf32>
    %204 = arith.negf %203 : vector<8x32xf32>
    %205 = math.exp %204 : vector<8x32xf32>
    %cst_61 = arith.constant 1.000000e+00 : f32
    %206 = vector.broadcast %cst_61 : f32 to vector<8x32xf32>
    %207 = arith.addf %206, %205 : vector<8x32xf32>
    %208 = arith.divf %206, %207 : vector<8x32xf32>
    %209 = vector.extract_strided_slice %197 {offsets = [0, 32], sizes = [8, 32], strides = [1, 1]} : vector<8x96xf32> to vector<8x32xf32>
    %210 = vector.extract_strided_slice %200 {offsets = [0, 32], sizes = [8, 32], strides = [1, 1]} : vector<8x96xf32> to vector<8x32xf32>
    %211 = arith.addf %209, %210 : vector<8x32xf32>
    %212 = arith.negf %211 : vector<8x32xf32>
    %213 = math.exp %212 : vector<8x32xf32>
    %cst_62 = arith.constant 1.000000e+00 : f32
    %214 = vector.broadcast %cst_62 : f32 to vector<8x32xf32>
    %215 = arith.addf %214, %213 : vector<8x32xf32>
    %216 = arith.divf %214, %215 : vector<8x32xf32>
    %217 = vector.extract_strided_slice %197 {offsets = [0, 64], sizes = [8, 32], strides = [1, 1]} : vector<8x96xf32> to vector<8x32xf32>
    %218 = vector.extract_strided_slice %200 {offsets = [0, 64], sizes = [8, 32], strides = [1, 1]} : vector<8x96xf32> to vector<8x32xf32>
    %219 = arith.mulf %208, %218 : vector<8x32xf32>
    %220 = arith.addf %217, %219 : vector<8x32xf32>
    %221 = math.tanh %220 : vector<8x32xf32>
    %cst_63 = arith.constant 1.000000e+00 : f32
    %222 = vector.broadcast %cst_63 : f32 to vector<8x32xf32>
    %223 = arith.subf %222, %216 : vector<8x32xf32>
    %224 = arith.mulf %223, %221 : vector<8x32xf32>
    %225 = arith.mulf %216, %155 : vector<8x32xf32>
    %226 = arith.addf %224, %225 : vector<8x32xf32>
    %227 = arith.index_cast %161 : i32 to index
    %c0_64 = arith.constant 0 : index
    %228 = vector.load %arg9[%227, %c0_64] : memref<64x32xf32, #tpu.memory_space<vmem>>, vector<8x32xf32>
    tpu.vector_store %arg9[%227, %c0_64], %195 {strides = array<i32>} : memref<64x32xf32, #tpu.memory_space<vmem>>, vector<8x32xf32>,
    %229 = arith.index_cast %164 : i32 to index
    %c0_65 = arith.constant 0 : index
    %230 = vector.load %arg10[%229, %c0_65] : memref<64x32xf32, #tpu.memory_space<vmem>>, vector<8x32xf32>
    tpu.vector_store %arg10[%229, %c0_65], %226 {strides = array<i32>} : memref<64x32xf32, #tpu.memory_space<vmem>>, vector<8x32xf32>,
    %c3_i32 = arith.constant 3 : i32
    %c8_i32_66 = arith.constant 8 : i32
    %231 = arith.muli %c3_i32, %c8_i32_66 : i32
    %232 = tpu.assume_multiple %231, 8 : i32
    %c7_i32_67 = arith.constant 7 : i32
    %233 = arith.subi %c7_i32_67, %c3_i32 : i32
    %c8_i32_68 = arith.constant 8 : i32
    %234 = arith.muli %233, %c8_i32_68 : i32
    %235 = tpu.assume_multiple %234, 8 : i32
    %236 = arith.index_cast %232 : i32 to index
    %c0_69 = arith.constant 0 : index
    %237 = vector.load %arg13[%236, %c0_69] : memref<64x96xf32, #tpu.memory_space<vmem>>, vector<8x96xf32>
    %cst_70 = arith.constant dense<0.000000e+00> : vector<8x96xf32>
    %238 = tpu.matmul %195, %13, %cst_70 {dimension_numbers = #tpu.dot_dimension_numbers<[1], [0], [0], [1], [0, 0, 1, 1], [], []>} : vector<8x32xf32>, vector<32x96xf32>, vector<8x96xf32> -> vector<8x96xf32>
    %239 = vector.broadcast %15 : vector<1x96xf32> to vector<8x96xf32>
    %240 = arith.addf %238, %239 : vector<8x96xf32>
    %241 = vector.extract_strided_slice %237 {offsets = [0, 0], sizes = [8, 32], strides = [1, 1]} : vector<8x96xf32> to vector<8x32xf32>
    %242 = vector.extract_strided_slice %240 {offsets = [0, 0], sizes = [8, 32], strides = [1, 1]} : vector<8x96xf32> to vector<8x32xf32>
    %243 = arith.addf %241, %242 : vector<8x32xf32>
    %244 = arith.negf %243 : vector<8x32xf32>
    %245 = math.exp %244 : vector<8x32xf32>
    %cst_71 = arith.constant 1.000000e+00 : f32
    %246 = vector.broadcast %cst_71 : f32 to vector<8x32xf32>
    %247 = arith.addf %246, %245 : vector<8x32xf32>
    %248 = arith.divf %246, %247 : vector<8x32xf32>
    %249 = vector.extract_strided_slice %237 {offsets = [0, 32], sizes = [8, 32], strides = [1, 1]} : vector<8x96xf32> to vector<8x32xf32>
    %250 = vector.extract_strided_slice %240 {offsets = [0, 32], sizes = [8, 32], strides = [1, 1]} : vector<8x96xf32> to vector<8x32xf32>
    %251 = arith.addf %249, %250 : vector<8x32xf32>
    %252 = arith.negf %251 : vector<8x32xf32>
    %253 = math.exp %252 : vector<8x32xf32>
    %cst_72 = arith.constant 1.000000e+00 : f32
    %254 = vector.broadcast %cst_72 : f32 to vector<8x32xf32>
    %255 = arith.addf %254, %253 : vector<8x32xf32>
    %256 = arith.divf %254, %255 : vector<8x32xf32>
    %257 = vector.extract_strided_slice %237 {offsets = [0, 64], sizes = [8, 32], strides = [1, 1]} : vector<8x96xf32> to vector<8x32xf32>
    %258 = vector.extract_strided_slice %240 {offsets = [0, 64], sizes = [8, 32], strides = [1, 1]} : vector<8x96xf32> to vector<8x32xf32>
    %259 = arith.mulf %248, %258 : vector<8x32xf32>
    %260 = arith.addf %257, %259 : vector<8x32xf32>
    %261 = math.tanh %260 : vector<8x32xf32>
    %cst_73 = arith.constant 1.000000e+00 : f32
    %262 = vector.broadcast %cst_73 : f32 to vector<8x32xf32>
    %263 = arith.subf %262, %256 : vector<8x32xf32>
    %264 = arith.mulf %263, %261 : vector<8x32xf32>
    %265 = arith.mulf %256, %195 : vector<8x32xf32>
    %266 = arith.addf %264, %265 : vector<8x32xf32>
    %267 = arith.index_cast %235 : i32 to index
    %c0_74 = arith.constant 0 : index
    %268 = vector.load %arg14[%267, %c0_74] : memref<64x96xf32, #tpu.memory_space<vmem>>, vector<8x96xf32>
    %cst_75 = arith.constant dense<0.000000e+00> : vector<8x96xf32>
    %269 = tpu.matmul %226, %14, %cst_75 {dimension_numbers = #tpu.dot_dimension_numbers<[1], [0], [0], [1], [0, 0, 1, 1], [], []>} : vector<8x32xf32>, vector<32x96xf32>, vector<8x96xf32> -> vector<8x96xf32>
    %270 = vector.broadcast %16 : vector<1x96xf32> to vector<8x96xf32>
    %271 = arith.addf %269, %270 : vector<8x96xf32>
    %272 = vector.extract_strided_slice %268 {offsets = [0, 0], sizes = [8, 32], strides = [1, 1]} : vector<8x96xf32> to vector<8x32xf32>
    %273 = vector.extract_strided_slice %271 {offsets = [0, 0], sizes = [8, 32], strides = [1, 1]} : vector<8x96xf32> to vector<8x32xf32>
    %274 = arith.addf %272, %273 : vector<8x32xf32>
    %275 = arith.negf %274 : vector<8x32xf32>
    %276 = math.exp %275 : vector<8x32xf32>
    %cst_76 = arith.constant 1.000000e+00 : f32
    %277 = vector.broadcast %cst_76 : f32 to vector<8x32xf32>
    %278 = arith.addf %277, %276 : vector<8x32xf32>
    %279 = arith.divf %277, %278 : vector<8x32xf32>
    %280 = vector.extract_strided_slice %268 {offsets = [0, 32], sizes = [8, 32], strides = [1, 1]} : vector<8x96xf32> to vector<8x32xf32>
    %281 = vector.extract_strided_slice %271 {offsets = [0, 32], sizes = [8, 32], strides = [1, 1]} : vector<8x96xf32> to vector<8x32xf32>
    %282 = arith.addf %280, %281 : vector<8x32xf32>
    %283 = arith.negf %282 : vector<8x32xf32>
    %284 = math.exp %283 : vector<8x32xf32>
    %cst_77 = arith.constant 1.000000e+00 : f32
    %285 = vector.broadcast %cst_77 : f32 to vector<8x32xf32>
    %286 = arith.addf %285, %284 : vector<8x32xf32>
    %287 = arith.divf %285, %286 : vector<8x32xf32>
    %288 = vector.extract_strided_slice %268 {offsets = [0, 64], sizes = [8, 32], strides = [1, 1]} : vector<8x96xf32> to vector<8x32xf32>
    %289 = vector.extract_strided_slice %271 {offsets = [0, 64], sizes = [8, 32], strides = [1, 1]} : vector<8x96xf32> to vector<8x32xf32>
    %290 = arith.mulf %279, %289 : vector<8x32xf32>
    %291 = arith.addf %288, %290 : vector<8x32xf32>
    %292 = math.tanh %291 : vector<8x32xf32>
    %cst_78 = arith.constant 1.000000e+00 : f32
    %293 = vector.broadcast %cst_78 : f32 to vector<8x32xf32>
    %294 = arith.subf %293, %287 : vector<8x32xf32>
    %295 = arith.mulf %294, %292 : vector<8x32xf32>
    %296 = arith.mulf %287, %226 : vector<8x32xf32>
    %297 = arith.addf %295, %296 : vector<8x32xf32>
    %298 = arith.index_cast %232 : i32 to index
    %c0_79 = arith.constant 0 : index
    %299 = vector.load %arg9[%298, %c0_79] : memref<64x32xf32, #tpu.memory_space<vmem>>, vector<8x32xf32>
    tpu.vector_store %arg9[%298, %c0_79], %266 {strides = array<i32>} : memref<64x32xf32, #tpu.memory_space<vmem>>, vector<8x32xf32>,
    %300 = arith.index_cast %235 : i32 to index
    %c0_80 = arith.constant 0 : index
    %301 = vector.load %arg10[%300, %c0_80] : memref<64x32xf32, #tpu.memory_space<vmem>>, vector<8x32xf32>
    tpu.vector_store %arg10[%300, %c0_80], %297 {strides = array<i32>} : memref<64x32xf32, #tpu.memory_space<vmem>>, vector<8x32xf32>,
    %c4_i32 = arith.constant 4 : i32
    %c8_i32_81 = arith.constant 8 : i32
    %302 = arith.muli %c4_i32, %c8_i32_81 : i32
    %303 = tpu.assume_multiple %302, 8 : i32
    %c7_i32_82 = arith.constant 7 : i32
    %304 = arith.subi %c7_i32_82, %c4_i32 : i32
    %c8_i32_83 = arith.constant 8 : i32
    %305 = arith.muli %304, %c8_i32_83 : i32
    %306 = tpu.assume_multiple %305, 8 : i32
    %307 = arith.index_cast %303 : i32 to index
    %c0_84 = arith.constant 0 : index
    %308 = vector.load %arg13[%307, %c0_84] : memref<64x96xf32, #tpu.memory_space<vmem>>, vector<8x96xf32>
    %cst_85 = arith.constant dense<0.000000e+00> : vector<8x96xf32>
    %309 = tpu.matmul %266, %13, %cst_85 {dimension_numbers = #tpu.dot_dimension_numbers<[1], [0], [0], [1], [0, 0, 1, 1], [], []>} : vector<8x32xf32>, vector<32x96xf32>, vector<8x96xf32> -> vector<8x96xf32>
    %310 = vector.broadcast %15 : vector<1x96xf32> to vector<8x96xf32>
    %311 = arith.addf %309, %310 : vector<8x96xf32>
    %312 = vector.extract_strided_slice %308 {offsets = [0, 0], sizes = [8, 32], strides = [1, 1]} : vector<8x96xf32> to vector<8x32xf32>
    %313 = vector.extract_strided_slice %311 {offsets = [0, 0], sizes = [8, 32], strides = [1, 1]} : vector<8x96xf32> to vector<8x32xf32>
    %314 = arith.addf %312, %313 : vector<8x32xf32>
    %315 = arith.negf %314 : vector<8x32xf32>
    %316 = math.exp %315 : vector<8x32xf32>
    %cst_86 = arith.constant 1.000000e+00 : f32
    %317 = vector.broadcast %cst_86 : f32 to vector<8x32xf32>
    %318 = arith.addf %317, %316 : vector<8x32xf32>
    %319 = arith.divf %317, %318 : vector<8x32xf32>
    %320 = vector.extract_strided_slice %308 {offsets = [0, 32], sizes = [8, 32], strides = [1, 1]} : vector<8x96xf32> to vector<8x32xf32>
    %321 = vector.extract_strided_slice %311 {offsets = [0, 32], sizes = [8, 32], strides = [1, 1]} : vector<8x96xf32> to vector<8x32xf32>
    %322 = arith.addf %320, %321 : vector<8x32xf32>
    %323 = arith.negf %322 : vector<8x32xf32>
    %324 = math.exp %323 : vector<8x32xf32>
    %cst_87 = arith.constant 1.000000e+00 : f32
    %325 = vector.broadcast %cst_87 : f32 to vector<8x32xf32>
    %326 = arith.addf %325, %324 : vector<8x32xf32>
    %327 = arith.divf %325, %326 : vector<8x32xf32>
    %328 = vector.extract_strided_slice %308 {offsets = [0, 64], sizes = [8, 32], strides = [1, 1]} : vector<8x96xf32> to vector<8x32xf32>
    %329 = vector.extract_strided_slice %311 {offsets = [0, 64], sizes = [8, 32], strides = [1, 1]} : vector<8x96xf32> to vector<8x32xf32>
    %330 = arith.mulf %319, %329 : vector<8x32xf32>
    %331 = arith.addf %328, %330 : vector<8x32xf32>
    %332 = math.tanh %331 : vector<8x32xf32>
    %cst_88 = arith.constant 1.000000e+00 : f32
    %333 = vector.broadcast %cst_88 : f32 to vector<8x32xf32>
    %334 = arith.subf %333, %327 : vector<8x32xf32>
    %335 = arith.mulf %334, %332 : vector<8x32xf32>
    %336 = arith.mulf %327, %266 : vector<8x32xf32>
    %337 = arith.addf %335, %336 : vector<8x32xf32>
    %338 = arith.index_cast %306 : i32 to index
    %c0_89 = arith.constant 0 : index
    %339 = vector.load %arg14[%338, %c0_89] : memref<64x96xf32, #tpu.memory_space<vmem>>, vector<8x96xf32>
    %cst_90 = arith.constant dense<0.000000e+00> : vector<8x96xf32>
    %340 = tpu.matmul %297, %14, %cst_90 {dimension_numbers = #tpu.dot_dimension_numbers<[1], [0], [0], [1], [0, 0, 1, 1], [], []>} : vector<8x32xf32>, vector<32x96xf32>, vector<8x96xf32> -> vector<8x96xf32>
    %341 = vector.broadcast %16 : vector<1x96xf32> to vector<8x96xf32>
    %342 = arith.addf %340, %341 : vector<8x96xf32>
    %343 = vector.extract_strided_slice %339 {offsets = [0, 0], sizes = [8, 32], strides = [1, 1]} : vector<8x96xf32> to vector<8x32xf32>
    %344 = vector.extract_strided_slice %342 {offsets = [0, 0], sizes = [8, 32], strides = [1, 1]} : vector<8x96xf32> to vector<8x32xf32>
    %345 = arith.addf %343, %344 : vector<8x32xf32>
    %346 = arith.negf %345 : vector<8x32xf32>
    %347 = math.exp %346 : vector<8x32xf32>
    %cst_91 = arith.constant 1.000000e+00 : f32
    %348 = vector.broadcast %cst_91 : f32 to vector<8x32xf32>
    %349 = arith.addf %348, %347 : vector<8x32xf32>
    %350 = arith.divf %348, %349 : vector<8x32xf32>
    %351 = vector.extract_strided_slice %339 {offsets = [0, 32], sizes = [8, 32], strides = [1, 1]} : vector<8x96xf32> to vector<8x32xf32>
    %352 = vector.extract_strided_slice %342 {offsets = [0, 32], sizes = [8, 32], strides = [1, 1]} : vector<8x96xf32> to vector<8x32xf32>
    %353 = arith.addf %351, %352 : vector<8x32xf32>
    %354 = arith.negf %353 : vector<8x32xf32>
    %355 = math.exp %354 : vector<8x32xf32>
    %cst_92 = arith.constant 1.000000e+00 : f32
    %356 = vector.broadcast %cst_92 : f32 to vector<8x32xf32>
    %357 = arith.addf %356, %355 : vector<8x32xf32>
    %358 = arith.divf %356, %357 : vector<8x32xf32>
    %359 = vector.extract_strided_slice %339 {offsets = [0, 64], sizes = [8, 32], strides = [1, 1]} : vector<8x96xf32> to vector<8x32xf32>
    %360 = vector.extract_strided_slice %342 {offsets = [0, 64], sizes = [8, 32], strides = [1, 1]} : vector<8x96xf32> to vector<8x32xf32>
    %361 = arith.mulf %350, %360 : vector<8x32xf32>
    %362 = arith.addf %359, %361 : vector<8x32xf32>
    %363 = math.tanh %362 : vector<8x32xf32>
    %cst_93 = arith.constant 1.000000e+00 : f32
    %364 = vector.broadcast %cst_93 : f32 to vector<8x32xf32>
    %365 = arith.subf %364, %358 : vector<8x32xf32>
    %366 = arith.mulf %365, %363 : vector<8x32xf32>
    %367 = arith.mulf %358, %297 : vector<8x32xf32>
    %368 = arith.addf %366, %367 : vector<8x32xf32>
    %369 = arith.index_cast %303 : i32 to index
    %c0_94 = arith.constant 0 : index
    %370 = vector.load %arg9[%369, %c0_94] : memref<64x32xf32, #tpu.memory_space<vmem>>, vector<8x32xf32>
    tpu.vector_store %arg9[%369, %c0_94], %337 {strides = array<i32>} : memref<64x32xf32, #tpu.memory_space<vmem>>, vector<8x32xf32>,
    %371 = arith.index_cast %306 : i32 to index
    %c0_95 = arith.constant 0 : index
    %372 = vector.load %arg10[%371, %c0_95] : memref<64x32xf32, #tpu.memory_space<vmem>>, vector<8x32xf32>
    tpu.vector_store %arg10[%371, %c0_95], %368 {strides = array<i32>} : memref<64x32xf32, #tpu.memory_space<vmem>>, vector<8x32xf32>,
    %c5_i32 = arith.constant 5 : i32
    %c8_i32_96 = arith.constant 8 : i32
    %373 = arith.muli %c5_i32, %c8_i32_96 : i32
    %374 = tpu.assume_multiple %373, 8 : i32
    %c7_i32_97 = arith.constant 7 : i32
    %375 = arith.subi %c7_i32_97, %c5_i32 : i32
    %c8_i32_98 = arith.constant 8 : i32
    %376 = arith.muli %375, %c8_i32_98 : i32
    %377 = tpu.assume_multiple %376, 8 : i32
    %378 = arith.index_cast %374 : i32 to index
    %c0_99 = arith.constant 0 : index
    %379 = vector.load %arg13[%378, %c0_99] : memref<64x96xf32, #tpu.memory_space<vmem>>, vector<8x96xf32>
    %cst_100 = arith.constant dense<0.000000e+00> : vector<8x96xf32>
    %380 = tpu.matmul %337, %13, %cst_100 {dimension_numbers = #tpu.dot_dimension_numbers<[1], [0], [0], [1], [0, 0, 1, 1], [], []>} : vector<8x32xf32>, vector<32x96xf32>, vector<8x96xf32> -> vector<8x96xf32>
    %381 = vector.broadcast %15 : vector<1x96xf32> to vector<8x96xf32>
    %382 = arith.addf %380, %381 : vector<8x96xf32>
    %383 = vector.extract_strided_slice %379 {offsets = [0, 0], sizes = [8, 32], strides = [1, 1]} : vector<8x96xf32> to vector<8x32xf32>
    %384 = vector.extract_strided_slice %382 {offsets = [0, 0], sizes = [8, 32], strides = [1, 1]} : vector<8x96xf32> to vector<8x32xf32>
    %385 = arith.addf %383, %384 : vector<8x32xf32>
    %386 = arith.negf %385 : vector<8x32xf32>
    %387 = math.exp %386 : vector<8x32xf32>
    %cst_101 = arith.constant 1.000000e+00 : f32
    %388 = vector.broadcast %cst_101 : f32 to vector<8x32xf32>
    %389 = arith.addf %388, %387 : vector<8x32xf32>
    %390 = arith.divf %388, %389 : vector<8x32xf32>
    %391 = vector.extract_strided_slice %379 {offsets = [0, 32], sizes = [8, 32], strides = [1, 1]} : vector<8x96xf32> to vector<8x32xf32>
    %392 = vector.extract_strided_slice %382 {offsets = [0, 32], sizes = [8, 32], strides = [1, 1]} : vector<8x96xf32> to vector<8x32xf32>
    %393 = arith.addf %391, %392 : vector<8x32xf32>
    %394 = arith.negf %393 : vector<8x32xf32>
    %395 = math.exp %394 : vector<8x32xf32>
    %cst_102 = arith.constant 1.000000e+00 : f32
    %396 = vector.broadcast %cst_102 : f32 to vector<8x32xf32>
    %397 = arith.addf %396, %395 : vector<8x32xf32>
    %398 = arith.divf %396, %397 : vector<8x32xf32>
    %399 = vector.extract_strided_slice %379 {offsets = [0, 64], sizes = [8, 32], strides = [1, 1]} : vector<8x96xf32> to vector<8x32xf32>
    %400 = vector.extract_strided_slice %382 {offsets = [0, 64], sizes = [8, 32], strides = [1, 1]} : vector<8x96xf32> to vector<8x32xf32>
    %401 = arith.mulf %390, %400 : vector<8x32xf32>
    %402 = arith.addf %399, %401 : vector<8x32xf32>
    %403 = math.tanh %402 : vector<8x32xf32>
    %cst_103 = arith.constant 1.000000e+00 : f32
    %404 = vector.broadcast %cst_103 : f32 to vector<8x32xf32>
    %405 = arith.subf %404, %398 : vector<8x32xf32>
    %406 = arith.mulf %405, %403 : vector<8x32xf32>
    %407 = arith.mulf %398, %337 : vector<8x32xf32>
    %408 = arith.addf %406, %407 : vector<8x32xf32>
    %409 = arith.index_cast %377 : i32 to index
    %c0_104 = arith.constant 0 : index
    %410 = vector.load %arg14[%409, %c0_104] : memref<64x96xf32, #tpu.memory_space<vmem>>, vector<8x96xf32>
    %cst_105 = arith.constant dense<0.000000e+00> : vector<8x96xf32>
    %411 = tpu.matmul %368, %14, %cst_105 {dimension_numbers = #tpu.dot_dimension_numbers<[1], [0], [0], [1], [0, 0, 1, 1], [], []>} : vector<8x32xf32>, vector<32x96xf32>, vector<8x96xf32> -> vector<8x96xf32>
    %412 = vector.broadcast %16 : vector<1x96xf32> to vector<8x96xf32>
    %413 = arith.addf %411, %412 : vector<8x96xf32>
    %414 = vector.extract_strided_slice %410 {offsets = [0, 0], sizes = [8, 32], strides = [1, 1]} : vector<8x96xf32> to vector<8x32xf32>
    %415 = vector.extract_strided_slice %413 {offsets = [0, 0], sizes = [8, 32], strides = [1, 1]} : vector<8x96xf32> to vector<8x32xf32>
    %416 = arith.addf %414, %415 : vector<8x32xf32>
    %417 = arith.negf %416 : vector<8x32xf32>
    %418 = math.exp %417 : vector<8x32xf32>
    %cst_106 = arith.constant 1.000000e+00 : f32
    %419 = vector.broadcast %cst_106 : f32 to vector<8x32xf32>
    %420 = arith.addf %419, %418 : vector<8x32xf32>
    %421 = arith.divf %419, %420 : vector<8x32xf32>
    %422 = vector.extract_strided_slice %410 {offsets = [0, 32], sizes = [8, 32], strides = [1, 1]} : vector<8x96xf32> to vector<8x32xf32>
    %423 = vector.extract_strided_slice %413 {offsets = [0, 32], sizes = [8, 32], strides = [1, 1]} : vector<8x96xf32> to vector<8x32xf32>
    %424 = arith.addf %422, %423 : vector<8x32xf32>
    %425 = arith.negf %424 : vector<8x32xf32>
    %426 = math.exp %425 : vector<8x32xf32>
    %cst_107 = arith.constant 1.000000e+00 : f32
    %427 = vector.broadcast %cst_107 : f32 to vector<8x32xf32>
    %428 = arith.addf %427, %426 : vector<8x32xf32>
    %429 = arith.divf %427, %428 : vector<8x32xf32>
    %430 = vector.extract_strided_slice %410 {offsets = [0, 64], sizes = [8, 32], strides = [1, 1]} : vector<8x96xf32> to vector<8x32xf32>
    %431 = vector.extract_strided_slice %413 {offsets = [0, 64], sizes = [8, 32], strides = [1, 1]} : vector<8x96xf32> to vector<8x32xf32>
    %432 = arith.mulf %421, %431 : vector<8x32xf32>
    %433 = arith.addf %430, %432 : vector<8x32xf32>
    %434 = math.tanh %433 : vector<8x32xf32>
    %cst_108 = arith.constant 1.000000e+00 : f32
    %435 = vector.broadcast %cst_108 : f32 to vector<8x32xf32>
    %436 = arith.subf %435, %429 : vector<8x32xf32>
    %437 = arith.mulf %436, %434 : vector<8x32xf32>
    %438 = arith.mulf %429, %368 : vector<8x32xf32>
    %439 = arith.addf %437, %438 : vector<8x32xf32>
    %440 = arith.index_cast %374 : i32 to index
    %c0_109 = arith.constant 0 : index
    %441 = vector.load %arg9[%440, %c0_109] : memref<64x32xf32, #tpu.memory_space<vmem>>, vector<8x32xf32>
    tpu.vector_store %arg9[%440, %c0_109], %408 {strides = array<i32>} : memref<64x32xf32, #tpu.memory_space<vmem>>, vector<8x32xf32>,
    %442 = arith.index_cast %377 : i32 to index
    %c0_110 = arith.constant 0 : index
    %443 = vector.load %arg10[%442, %c0_110] : memref<64x32xf32, #tpu.memory_space<vmem>>, vector<8x32xf32>
    tpu.vector_store %arg10[%442, %c0_110], %439 {strides = array<i32>} : memref<64x32xf32, #tpu.memory_space<vmem>>, vector<8x32xf32>,
    %c6_i32 = arith.constant 6 : i32
    %c8_i32_111 = arith.constant 8 : i32
    %444 = arith.muli %c6_i32, %c8_i32_111 : i32
    %445 = tpu.assume_multiple %444, 8 : i32
    %c7_i32_112 = arith.constant 7 : i32
    %446 = arith.subi %c7_i32_112, %c6_i32 : i32
    %c8_i32_113 = arith.constant 8 : i32
    %447 = arith.muli %446, %c8_i32_113 : i32
    %448 = tpu.assume_multiple %447, 8 : i32
    %449 = arith.index_cast %445 : i32 to index
    %c0_114 = arith.constant 0 : index
    %450 = vector.load %arg13[%449, %c0_114] : memref<64x96xf32, #tpu.memory_space<vmem>>, vector<8x96xf32>
    %cst_115 = arith.constant dense<0.000000e+00> : vector<8x96xf32>
    %451 = tpu.matmul %408, %13, %cst_115 {dimension_numbers = #tpu.dot_dimension_numbers<[1], [0], [0], [1], [0, 0, 1, 1], [], []>} : vector<8x32xf32>, vector<32x96xf32>, vector<8x96xf32> -> vector<8x96xf32>
    %452 = vector.broadcast %15 : vector<1x96xf32> to vector<8x96xf32>
    %453 = arith.addf %451, %452 : vector<8x96xf32>
    %454 = vector.extract_strided_slice %450 {offsets = [0, 0], sizes = [8, 32], strides = [1, 1]} : vector<8x96xf32> to vector<8x32xf32>
    %455 = vector.extract_strided_slice %453 {offsets = [0, 0], sizes = [8, 32], strides = [1, 1]} : vector<8x96xf32> to vector<8x32xf32>
    %456 = arith.addf %454, %455 : vector<8x32xf32>
    %457 = arith.negf %456 : vector<8x32xf32>
    %458 = math.exp %457 : vector<8x32xf32>
    %cst_116 = arith.constant 1.000000e+00 : f32
    %459 = vector.broadcast %cst_116 : f32 to vector<8x32xf32>
    %460 = arith.addf %459, %458 : vector<8x32xf32>
    %461 = arith.divf %459, %460 : vector<8x32xf32>
    %462 = vector.extract_strided_slice %450 {offsets = [0, 32], sizes = [8, 32], strides = [1, 1]} : vector<8x96xf32> to vector<8x32xf32>
    %463 = vector.extract_strided_slice %453 {offsets = [0, 32], sizes = [8, 32], strides = [1, 1]} : vector<8x96xf32> to vector<8x32xf32>
    %464 = arith.addf %462, %463 : vector<8x32xf32>
    %465 = arith.negf %464 : vector<8x32xf32>
    %466 = math.exp %465 : vector<8x32xf32>
    %cst_117 = arith.constant 1.000000e+00 : f32
    %467 = vector.broadcast %cst_117 : f32 to vector<8x32xf32>
    %468 = arith.addf %467, %466 : vector<8x32xf32>
    %469 = arith.divf %467, %468 : vector<8x32xf32>
    %470 = vector.extract_strided_slice %450 {offsets = [0, 64], sizes = [8, 32], strides = [1, 1]} : vector<8x96xf32> to vector<8x32xf32>
    %471 = vector.extract_strided_slice %453 {offsets = [0, 64], sizes = [8, 32], strides = [1, 1]} : vector<8x96xf32> to vector<8x32xf32>
    %472 = arith.mulf %461, %471 : vector<8x32xf32>
    %473 = arith.addf %470, %472 : vector<8x32xf32>
    %474 = math.tanh %473 : vector<8x32xf32>
    %cst_118 = arith.constant 1.000000e+00 : f32
    %475 = vector.broadcast %cst_118 : f32 to vector<8x32xf32>
    %476 = arith.subf %475, %469 : vector<8x32xf32>
    %477 = arith.mulf %476, %474 : vector<8x32xf32>
    %478 = arith.mulf %469, %408 : vector<8x32xf32>
    %479 = arith.addf %477, %478 : vector<8x32xf32>
    %480 = arith.index_cast %448 : i32 to index
    %c0_119 = arith.constant 0 : index
    %481 = vector.load %arg14[%480, %c0_119] : memref<64x96xf32, #tpu.memory_space<vmem>>, vector<8x96xf32>
    %cst_120 = arith.constant dense<0.000000e+00> : vector<8x96xf32>
    %482 = tpu.matmul %439, %14, %cst_120 {dimension_numbers = #tpu.dot_dimension_numbers<[1], [0], [0], [1], [0, 0, 1, 1], [], []>} : vector<8x32xf32>, vector<32x96xf32>, vector<8x96xf32> -> vector<8x96xf32>
    %483 = vector.broadcast %16 : vector<1x96xf32> to vector<8x96xf32>
    %484 = arith.addf %482, %483 : vector<8x96xf32>
    %485 = vector.extract_strided_slice %481 {offsets = [0, 0], sizes = [8, 32], strides = [1, 1]} : vector<8x96xf32> to vector<8x32xf32>
    %486 = vector.extract_strided_slice %484 {offsets = [0, 0], sizes = [8, 32], strides = [1, 1]} : vector<8x96xf32> to vector<8x32xf32>
    %487 = arith.addf %485, %486 : vector<8x32xf32>
    %488 = arith.negf %487 : vector<8x32xf32>
    %489 = math.exp %488 : vector<8x32xf32>
    %cst_121 = arith.constant 1.000000e+00 : f32
    %490 = vector.broadcast %cst_121 : f32 to vector<8x32xf32>
    %491 = arith.addf %490, %489 : vector<8x32xf32>
    %492 = arith.divf %490, %491 : vector<8x32xf32>
    %493 = vector.extract_strided_slice %481 {offsets = [0, 32], sizes = [8, 32], strides = [1, 1]} : vector<8x96xf32> to vector<8x32xf32>
    %494 = vector.extract_strided_slice %484 {offsets = [0, 32], sizes = [8, 32], strides = [1, 1]} : vector<8x96xf32> to vector<8x32xf32>
    %495 = arith.addf %493, %494 : vector<8x32xf32>
    %496 = arith.negf %495 : vector<8x32xf32>
    %497 = math.exp %496 : vector<8x32xf32>
    %cst_122 = arith.constant 1.000000e+00 : f32
    %498 = vector.broadcast %cst_122 : f32 to vector<8x32xf32>
    %499 = arith.addf %498, %497 : vector<8x32xf32>
    %500 = arith.divf %498, %499 : vector<8x32xf32>
    %501 = vector.extract_strided_slice %481 {offsets = [0, 64], sizes = [8, 32], strides = [1, 1]} : vector<8x96xf32> to vector<8x32xf32>
    %502 = vector.extract_strided_slice %484 {offsets = [0, 64], sizes = [8, 32], strides = [1, 1]} : vector<8x96xf32> to vector<8x32xf32>
    %503 = arith.mulf %492, %502 : vector<8x32xf32>
    %504 = arith.addf %501, %503 : vector<8x32xf32>
    %505 = math.tanh %504 : vector<8x32xf32>
    %cst_123 = arith.constant 1.000000e+00 : f32
    %506 = vector.broadcast %cst_123 : f32 to vector<8x32xf32>
    %507 = arith.subf %506, %500 : vector<8x32xf32>
    %508 = arith.mulf %507, %505 : vector<8x32xf32>
    %509 = arith.mulf %500, %439 : vector<8x32xf32>
    %510 = arith.addf %508, %509 : vector<8x32xf32>
    %511 = arith.index_cast %445 : i32 to index
    %c0_124 = arith.constant 0 : index
    %512 = vector.load %arg9[%511, %c0_124] : memref<64x32xf32, #tpu.memory_space<vmem>>, vector<8x32xf32>
    tpu.vector_store %arg9[%511, %c0_124], %479 {strides = array<i32>} : memref<64x32xf32, #tpu.memory_space<vmem>>, vector<8x32xf32>,
    %513 = arith.index_cast %448 : i32 to index
    %c0_125 = arith.constant 0 : index
    %514 = vector.load %arg10[%513, %c0_125] : memref<64x32xf32, #tpu.memory_space<vmem>>, vector<8x32xf32>
    tpu.vector_store %arg10[%513, %c0_125], %510 {strides = array<i32>} : memref<64x32xf32, #tpu.memory_space<vmem>>, vector<8x32xf32>,
    %c7_i32_126 = arith.constant 7 : i32
    %c8_i32_127 = arith.constant 8 : i32
    %515 = arith.muli %c7_i32_126, %c8_i32_127 : i32
    %516 = tpu.assume_multiple %515, 8 : i32
    %c7_i32_128 = arith.constant 7 : i32
    %517 = arith.subi %c7_i32_128, %c7_i32_126 : i32
    %c8_i32_129 = arith.constant 8 : i32
    %518 = arith.muli %517, %c8_i32_129 : i32
    %519 = tpu.assume_multiple %518, 8 : i32
    %520 = arith.index_cast %516 : i32 to index
    %c0_130 = arith.constant 0 : index
    %521 = vector.load %arg13[%520, %c0_130] : memref<64x96xf32, #tpu.memory_space<vmem>>, vector<8x96xf32>
    %cst_131 = arith.constant dense<0.000000e+00> : vector<8x96xf32>
    %522 = tpu.matmul %479, %13, %cst_131 {dimension_numbers = #tpu.dot_dimension_numbers<[1], [0], [0], [1], [0, 0, 1, 1], [], []>} : vector<8x32xf32>, vector<32x96xf32>, vector<8x96xf32> -> vector<8x96xf32>
    %523 = vector.broadcast %15 : vector<1x96xf32> to vector<8x96xf32>
    %524 = arith.addf %522, %523 : vector<8x96xf32>
    %525 = vector.extract_strided_slice %521 {offsets = [0, 0], sizes = [8, 32], strides = [1, 1]} : vector<8x96xf32> to vector<8x32xf32>
    %526 = vector.extract_strided_slice %524 {offsets = [0, 0], sizes = [8, 32], strides = [1, 1]} : vector<8x96xf32> to vector<8x32xf32>
    %527 = arith.addf %525, %526 : vector<8x32xf32>
    %528 = arith.negf %527 : vector<8x32xf32>
    %529 = math.exp %528 : vector<8x32xf32>
    %cst_132 = arith.constant 1.000000e+00 : f32
    %530 = vector.broadcast %cst_132 : f32 to vector<8x32xf32>
    %531 = arith.addf %530, %529 : vector<8x32xf32>
    %532 = arith.divf %530, %531 : vector<8x32xf32>
    %533 = vector.extract_strided_slice %521 {offsets = [0, 32], sizes = [8, 32], strides = [1, 1]} : vector<8x96xf32> to vector<8x32xf32>
    %534 = vector.extract_strided_slice %524 {offsets = [0, 32], sizes = [8, 32], strides = [1, 1]} : vector<8x96xf32> to vector<8x32xf32>
    %535 = arith.addf %533, %534 : vector<8x32xf32>
    %536 = arith.negf %535 : vector<8x32xf32>
    %537 = math.exp %536 : vector<8x32xf32>
    %cst_133 = arith.constant 1.000000e+00 : f32
    %538 = vector.broadcast %cst_133 : f32 to vector<8x32xf32>
    %539 = arith.addf %538, %537 : vector<8x32xf32>
    %540 = arith.divf %538, %539 : vector<8x32xf32>
    %541 = vector.extract_strided_slice %521 {offsets = [0, 64], sizes = [8, 32], strides = [1, 1]} : vector<8x96xf32> to vector<8x32xf32>
    %542 = vector.extract_strided_slice %524 {offsets = [0, 64], sizes = [8, 32], strides = [1, 1]} : vector<8x96xf32> to vector<8x32xf32>
    %543 = arith.mulf %532, %542 : vector<8x32xf32>
    %544 = arith.addf %541, %543 : vector<8x32xf32>
    %545 = math.tanh %544 : vector<8x32xf32>
    %cst_134 = arith.constant 1.000000e+00 : f32
    %546 = vector.broadcast %cst_134 : f32 to vector<8x32xf32>
    %547 = arith.subf %546, %540 : vector<8x32xf32>
    %548 = arith.mulf %547, %545 : vector<8x32xf32>
    %549 = arith.mulf %540, %479 : vector<8x32xf32>
    %550 = arith.addf %548, %549 : vector<8x32xf32>
    %551 = arith.index_cast %519 : i32 to index
    %c0_135 = arith.constant 0 : index
    %552 = vector.load %arg14[%551, %c0_135] : memref<64x96xf32, #tpu.memory_space<vmem>>, vector<8x96xf32>
    %cst_136 = arith.constant dense<0.000000e+00> : vector<8x96xf32>
    %553 = tpu.matmul %510, %14, %cst_136 {dimension_numbers = #tpu.dot_dimension_numbers<[1], [0], [0], [1], [0, 0, 1, 1], [], []>} : vector<8x32xf32>, vector<32x96xf32>, vector<8x96xf32> -> vector<8x96xf32>
    %554 = vector.broadcast %16 : vector<1x96xf32> to vector<8x96xf32>
    %555 = arith.addf %553, %554 : vector<8x96xf32>
    %556 = vector.extract_strided_slice %552 {offsets = [0, 0], sizes = [8, 32], strides = [1, 1]} : vector<8x96xf32> to vector<8x32xf32>
    %557 = vector.extract_strided_slice %555 {offsets = [0, 0], sizes = [8, 32], strides = [1, 1]} : vector<8x96xf32> to vector<8x32xf32>
    %558 = arith.addf %556, %557 : vector<8x32xf32>
    %559 = arith.negf %558 : vector<8x32xf32>
    %560 = math.exp %559 : vector<8x32xf32>
    %cst_137 = arith.constant 1.000000e+00 : f32
    %561 = vector.broadcast %cst_137 : f32 to vector<8x32xf32>
    %562 = arith.addf %561, %560 : vector<8x32xf32>
    %563 = arith.divf %561, %562 : vector<8x32xf32>
    %564 = vector.extract_strided_slice %552 {offsets = [0, 32], sizes = [8, 32], strides = [1, 1]} : vector<8x96xf32> to vector<8x32xf32>
    %565 = vector.extract_strided_slice %555 {offsets = [0, 32], sizes = [8, 32], strides = [1, 1]} : vector<8x96xf32> to vector<8x32xf32>
    %566 = arith.addf %564, %565 : vector<8x32xf32>
    %567 = arith.negf %566 : vector<8x32xf32>
    %568 = math.exp %567 : vector<8x32xf32>
    %cst_138 = arith.constant 1.000000e+00 : f32
    %569 = vector.broadcast %cst_138 : f32 to vector<8x32xf32>
    %570 = arith.addf %569, %568 : vector<8x32xf32>
    %571 = arith.divf %569, %570 : vector<8x32xf32>
    %572 = vector.extract_strided_slice %552 {offsets = [0, 64], sizes = [8, 32], strides = [1, 1]} : vector<8x96xf32> to vector<8x32xf32>
    %573 = vector.extract_strided_slice %555 {offsets = [0, 64], sizes = [8, 32], strides = [1, 1]} : vector<8x96xf32> to vector<8x32xf32>
    %574 = arith.mulf %563, %573 : vector<8x32xf32>
    %575 = arith.addf %572, %574 : vector<8x32xf32>
    %576 = math.tanh %575 : vector<8x32xf32>
    %cst_139 = arith.constant 1.000000e+00 : f32
    %577 = vector.broadcast %cst_139 : f32 to vector<8x32xf32>
    %578 = arith.subf %577, %571 : vector<8x32xf32>
    %579 = arith.mulf %578, %576 : vector<8x32xf32>
    %580 = arith.mulf %571, %510 : vector<8x32xf32>
    %581 = arith.addf %579, %580 : vector<8x32xf32>
    %582 = arith.index_cast %516 : i32 to index
    %c0_140 = arith.constant 0 : index
    %583 = vector.load %arg9[%582, %c0_140] : memref<64x32xf32, #tpu.memory_space<vmem>>, vector<8x32xf32>
    tpu.vector_store %arg9[%582, %c0_140], %550 {strides = array<i32>} : memref<64x32xf32, #tpu.memory_space<vmem>>, vector<8x32xf32>,
    %584 = arith.index_cast %519 : i32 to index
    %c0_141 = arith.constant 0 : index
    %585 = vector.load %arg10[%584, %c0_141] : memref<64x32xf32, #tpu.memory_space<vmem>>, vector<8x32xf32>
    tpu.vector_store %arg10[%584, %c0_141], %581 {strides = array<i32>} : memref<64x32xf32, #tpu.memory_space<vmem>>, vector<8x32xf32>,
    %c8_i32_142 = arith.constant 8 : i32
    %c0_143 = arith.constant 0 : index
    %c0_144 = arith.constant 0 : index
    %586 = vector.load %arg11[%c0_143, %c0_144] : memref<8x32xf32, #tpu.memory_space<vmem>>, vector<8x32xf32>
    tpu.vector_store %arg11[%c0_143, %c0_144], %550 {strides = array<i32>} : memref<8x32xf32, #tpu.memory_space<vmem>>, vector<8x32xf32>,
    %c0_145 = arith.constant 0 : index
    %c0_146 = arith.constant 0 : index
    %587 = vector.load %arg12[%c0_145, %c0_146] : memref<8x32xf32, #tpu.memory_space<vmem>>, vector<8x32xf32>
    tpu.vector_store %arg12[%c0_145, %c0_146], %581 {strides = array<i32>} : memref<8x32xf32, #tpu.memory_space<vmem>>, vector<8x32xf32>,
    return
  }
}

</mosaic_0001>

<bundles_post_ra>
// kernel: gru_encoder_forward.2
= control target key start
LH: loop header
LB: loop body
LE: loop exit
PB: predicated region body
PF: predicated region fallthrough
CT: control target
= control target key end

     0   :  { %18 = vsyncpa [#allocation5], 0  ;;  %vm55_vm0 = vcmask 130048   ;;  %v2695_v13 = vmov 0.0|0.0   ;;  %s3213_s0 = inlined_call_operand.vmem [shape: f32[64,16], index: 0, kind: input, shape index: {}]   ;;  %s3214_s1 = inlined_call_operand.vmem [shape: f32[16,96], index: 1, kind: input, shape index: {}]   ;;  %s3215_s2 = inlined_call_operand.vmem [shape: f32[32,96], index: 2, kind: input, shape index: {}]   ;;  %s3216_s3 = inlined_call_operand.vmem [shape: f32[1,96], index: 3, kind: input, shape index: {}]   ;;  %s3217_s4 = inlined_call_operand.vmem [shape: f32[1,96], index: 4, kind: input, shape index: {}]   ;;  %s3218_s5 = inlined_call_operand.vmem [shape: f32[16,96], index: 5, kind: input, shape index: {}]   ;;  %s3219_s6 = inlined_call_operand.vmem [shape: f32[32,96], index: 6, kind: input, shape index: {}]   ;;  %s3220_s7 = inlined_call_operand.vmem [shape: f32[1,96], index: 7, kind: input, shape index: {}]   ;;  %s3221_s8 = inlined_call_operand.vmem [shape: f32[1,96], index: 8, kind: input, shape index: {}]   ;;  %s3222_s9 = inlined_call_operand.vmem [shape: f32[64,32], index: 9, kind: output, shape index: {0}]   ;;  %s3223_s10 = inlined_call_operand.vmem [shape: f32[64,32], index: 10, kind: output, shape index: {1}]   ;;  %s3224_s11 = inlined_call_operand.hbm [shape: f32[8,32], index: 11, kind: output, shape index: {2}]   ;;  %s3225_s12 = inlined_call_operand.hbm [shape: f32[8,32], index: 12, kind: output, shape index: {3}]  }
   0x1   :  { %v46_v0 = vld [vmem:[%s3214_s1] sm:$0xff]  ;;  %v47_v1 = vld [vmem:[%s3214_s1 + $0x8] sm:$0xff]  ;;  %v40_v14 = vld [vmem:[%s3213_s0 + $0x10] sm:$0xff] }
   0x2   :  { %v194_v2 = vld [vmem:[%s3218_s5] sm:$0xff]  ;;  %v2440_v3 = vpack.c.bf16 %v47_v1, %v46_v0  ;;  %v195_v4 = vld [vmem:[%s3218_s5 + $0x8] sm:$0xff]  ;;  %v318_v16 = vld [vmem:[%s3215_s2 + $0x10] sm:$0xff] }
   0x3   :  { %v38_v5 = vld [vmem:[%s3213_s0] sm:$0xff]  ;;  %v2444_v6 = vpack.c.bf16 %v195_v4, %v194_v2  ;;  %v317_v8 = vld [vmem:[%s3215_s2 + $0x8] sm:$0xff]  ;;  %v319_v17 = vld [vmem:[%s3215_s2 + $0x18] sm:$0xff] }
   0x4   :  { %2236 = vmatprep.mubr.msk.f32.mxu0 %vm55_vm0, %v38_v5  ;;  %2252 = vmatprep.mubr.msk.f32.mxu1 %vm55_vm0, %v38_v5  ;;  %v316_v7 = vld [vmem:[%s3215_s2] sm:$0xff]  ;;  %v321_v10 = vld [vmem:[%s3219_s6 + $0x8] sm:$0xff] }
   0x5   :  { %2441 = vmatprep.subr.bf16.mxu0 %v2440_v3  ;;  %v320_v9 = vld [vmem:[%s3219_s6] sm:$0xff]  ;;  %2445 = vmatprep.subr.bf16.mxu1 %v2444_v6  ;;  %v39_v11 = vld [vmem:[%s3213_s0 + $0x8] sm:$0xff]  ;;  %v2799_v12 = vpack.c.bf16 %v317_v8, %v316_v7 }
   0x6   :  { %2443 = vmatpush3.bf16.msra.mxu0 %v2440_v3  ;;  %2447 = vmatpush3.bf16.msra.mxu1 %v2444_v6  ;;  %v2806_v15 = vpack.c.bf16 %v321_v10, %v320_v9 }
   0x7   :  { %2448 = vmatprep.subr.bf16.mxu0 %v2695_v13  ;;  %2454 = vmatprep.subr.bf16.mxu1 %v2695_v13 }
   0x8   :  { %19 = vsyncpa [#allocation7], 0  ;;  %v322_v18 = vld [vmem:[%s3219_s6 + $0x10] sm:$0xff]  ;;  %v323_v19 = vld [vmem:[%s3219_s6 + $0x18] sm:$0xff]  ;;  %v2831_v22 = vpack.c.bf16 %v319_v17, %v318_v16  ;;  %vm2696_vm1 = vmmov 0   ;;  %v2697_v27 = vmov 0.0  }
   0x9   :  { %2237 = vmatmul.mubr.msk.f32.vlgmr.msra.gmra.mrb[0].mxu0 %vm55_vm0, %v39_v11  ;;  %2253 = vmatmul.mubr.msk.f32.vlgmr.msra.gmra.mrb[0].mxu1 %vm55_vm0, %v39_v11  ;;  %v41_v20 = vld [vmem:[%s3213_s0 + $0x18] sm:$0xff]  ;;  %v42_v21 = vld [vmem:[%s3213_s0 + $0x20] sm:$0xff]  ;;  %v2835_v23 = vpack.c.bf16 %v323_v19, %v322_v18  ;;  %v43_v24 = vld [vmem:[%s3213_s0 + $0x28] sm:$0xff]  ;;  %vm185_vm2 = vcmask 785408   ;;  %vm333_vm3 = vcmask 261120   ;;  %s2701_s28 = smov [#allocation6]  }
   0xa   :  { %2450 = vmatpush3.bf16.msra.mxu0 %v2799_v12  ;;  %2239 = vmatprep.mubr.msk.f32.mxu0 %vm55_vm0, %v40_v14  ;;  %v44_v25 = vld [vmem:[%s3213_s0 + $0x30] sm:$0xff]  ;;  %v45_v26 = vld [vmem:[%s3213_s0 + $0x38] sm:$0xff]  ;;  %v2068_v28 = vld [vmem:[%s3216_s3] ss:$0 sm:$0xff]  ;;  %s2052_s29 = sshll.u32 %s2701_s28, 4  ;;  %s2053_s29 = int_to_ptr.vmem [resolvable:$true] %s2052_s29 }
   0xb   :  { %2255 = vmatprep.mubr.msk.f32.mxu1 %vm55_vm0, %v40_v14  ;;  %2456 = vmatpush3.bf16.msra.mxu1 %v2806_v15  ;;  %v2077_v29 = vld [vmem:[%s3220_s7] ss:$0 sm:$0xff] }
   0xc   :  { %2451 = vmatprep.subr.bf16.mxu0 %v2695_v13  ;;  %2457 = vmatprep.subr.bf16.mxu1 %v2695_v13  ;;  %v2900_v60 = vld [vmem:[%s3217_s4] ss:$0 sm:$0xff]  ;;  %s2698_s4 = smov 64  }
   0xd   :  { %2240 = vmatmul.mubr.msk.f32.gmra.mrb[2].mxu0 %vm55_vm0, %v41_v20  ;;  %2256 = vmatmul.mubr.msk.f32.gmra.mrb[2].mxu1 %vm55_vm0, %v41_v20  ;;  %v2908_v0 = vld [vmem:[%s3221_s8] ss:$0 sm:$0xff]  ;;  %s2699_s8 = smov 96  }
   0xe   :  { %2242 = vmatprep.mubr.msk.f32.mxu0 %vm55_vm0, %v42_v21  ;;  %2258 = vmatprep.mubr.msk.f32.mxu1 %vm55_vm0, %v42_v21 }
   0xf   :  { %2453 = vmatpush3.bf16.msra.mxu0 %v2831_v22  ;;  %2459 = vmatpush3.bf16.msra.mxu1 %v2835_v23 }
  0x10   :  { %2460 = vmatprep.subr.bf16.mxu0 %v2695_v13  ;;  %2466 = vmatprep.subr.bf16.mxu1 %v2695_v13 }
  0x11   :  { %2243 = vmatmul.mubr.msk.f32.gmra.mrb[4].mxu0 %vm55_vm0, %v43_v24  ;;  %2259 = vmatmul.mubr.msk.f32.gmra.mrb[4].mxu1 %vm55_vm0, %v43_v24 }
  0x12   :  { %2245 = vmatprep.mubr.msk.f32.mxu0 %vm55_vm0, %v44_v25  ;;  %2261 = vmatprep.mubr.msk.f32.mxu1 %vm55_vm0, %v44_v25 }
  0x15   :  { %2246 = vmatmul.mubr.msk.f32.gmra.mrb[6].mxu0 %vm55_vm0, %v45_v26  ;;  %2262 = vmatmul.mubr.msk.f32.gmra.mrb[6].mxu1 %vm55_vm0, %v45_v26 }
  0x16   :  { %2272 = vmatprep.mubr.msk.f32.mxu0 %vm2696_vm1, %v2697_v27  ;;  %2283 = vmatprep.mubr.msk.f32.mxu1 %vm2696_vm1, %v2697_v27 }
  0x19   :  { %2273 = vmatmul.mubr.f32.vlgmr.msra.gmra.mrb[8].mxu0 %v2697_v27  ;;  %2284 = vmatmul.mubr.f32.vlgmr.msra.gmra.mrb[8].mxu1 %v2697_v27 }
  0x1a   :  { %2462 = vmatpush3.bf16.msra.mxu0 %v2799_v12  ;;  %2468 = vmatpush3.bf16.msra.mxu1 %v2806_v15 }
  0x1b   :  { %2463 = vmatprep.subr.bf16.mxu0 %v2695_v13  ;;  %2294 = vmatprep.mubr.msk.f32.mxu0 %vm2696_vm1, %v2697_v27 }
  0x1c   :  { %2469 = vmatprep.subr.bf16.mxu1 %v2695_v13  ;;  %2305 = vmatprep.mubr.msk.f32.mxu1 %vm2696_vm1, %v2697_v27 }
  0x1e   :  { %2465 = vmatpush3.bf16.msra.mxu0 %v2831_v22  ;;  %2471 = vmatpush3.bf16.msra.mxu1 %v2835_v23 }
  0x1f   :  { %2472 = vmatprep.subr.bf16.mxu0 %v2695_v13  ;;  %2478 = vmatprep.subr.bf16.mxu1 %v2695_v13 }
  0xdc   :  { %v2238_v30 = vpop.f32.mrb[0].mxu0  ;;  %v2254_v33 = vpop.f32.mrb[0].mxu1 }
  0xdd   :  { %v152_v31 = vadd.f32 %v2238_v30, %v2068_v28  ;;  %v146_v32 = vpop.f32.mrb[1].mxu0  ;;  %v275_v35 = vadd.f32 %v2254_v33, %v2077_v29  ;;  %v269_v36 = vpop.f32.mrb[1].mxu1 }
  0xde   :  { %v147_v34 = vadd.f32 %v2068_v28, %v146_v32  ;;  %v270_v37 = vadd.f32 %v2077_v29, %v269_v36 }
  0xdf   :  { %187 = vst.msk [vmem:[#allocation2 + $0x8] sm:$0xff] %vm185_vm2, %v152_v31  ;;  %309 = vst.msk [vmem:[#allocation3 + $0x8] sm:$0xff] %vm185_vm2, %v275_v35 }
  0xe0   :  { %186 = vst.msk [vmem:[#allocation2] sm:$0xff] %vm185_vm2, %v147_v34  ;;  %v2241_v38 = vpop.f32.mrb[2].mxu0  ;;  %308 = vst.msk [vmem:[#allocation3] sm:$0xff] %vm185_vm2, %v270_v37  ;;  %v2257_v41 = vpop.f32.mrb[2].mxu1 }
  0xe1   :  { %v162_v39 = vadd.f32 %v2241_v38, %v2068_v28  ;;  %v156_v40 = vpop.f32.mrb[3].mxu0  ;;  %v285_v43 = vadd.f32 %v2257_v41, %v2077_v29  ;;  %v279_v44 = vpop.f32.mrb[3].mxu1 }
  0xe2   :  { %v157_v42 = vadd.f32 %v2068_v28, %v156_v40  ;;  %v280_v45 = vadd.f32 %v2077_v29, %v279_v44 }
  0xe3   :  { %189 = vst.msk [vmem:[#allocation2 + $0x18] sm:$0xff] %vm185_vm2, %v162_v39  ;;  %311 = vst.msk [vmem:[#allocation3 + $0x18] sm:$0xff] %vm185_vm2, %v285_v43 }
  0xe4   :  { %188 = vst.msk [vmem:[#allocation2 + $0x10] sm:$0xff] %vm185_vm2, %v157_v42  ;;  %v2244_v46 = vpop.f32.mrb[4].mxu0  ;;  %310 = vst.msk [vmem:[#allocation3 + $0x10] sm:$0xff] %vm185_vm2, %v280_v45  ;;  %v2260_v49 = vpop.f32.mrb[4].mxu1 }
  0xe5   :  { %v172_v47 = vadd.f32 %v2244_v46, %v2068_v28  ;;  %v166_v48 = vpop.f32.mrb[5].mxu0  ;;  %v295_v51 = vadd.f32 %v2260_v49, %v2077_v29  ;;  %v289_v52 = vpop.f32.mrb[5].mxu1 }
  0xe6   :  { %v167_v50 = vadd.f32 %v2068_v28, %v166_v48  ;;  %v290_v53 = vadd.f32 %v2077_v29, %v289_v52  ;;  %v549_v52 = vld [vmem:[#allocation2 + $0x8] sm:$0xff] }
  0xe7   :  { %191 = vst.msk [vmem:[#allocation2 + $0x28] sm:$0xff] %vm185_vm2, %v172_v47  ;;  %313 = vst.msk [vmem:[#allocation3 + $0x28] sm:$0xff] %vm185_vm2, %v295_v51  ;;  %v326_v6 = vld [vmem:[#allocation2] sm:$0xff] }
  0xe8   :  { %190 = vst.msk [vmem:[#allocation2 + $0x20] sm:$0xff] %vm185_vm2, %v167_v50  ;;  %v2247_v54 = vpop.f32.mrb[6].mxu0  ;;  %312 = vst.msk [vmem:[#allocation3 + $0x20] sm:$0xff] %vm185_vm2, %v290_v53  ;;  %v2263_v57 = vpop.f32.mrb[6].mxu1 }
  0xe9   :  { %v182_v55 = vadd.f32 %v2247_v54, %v2068_v28  ;;  %v176_v56 = vpop.f32.mrb[7].mxu0  ;;  %v305_v59 = vadd.f32 %v2263_v57, %v2077_v29  ;;  %v299_v61 = vpop.f32.mrb[7].mxu1 }
  0xea   :  { %v177_v58 = vadd.f32 %v2068_v28, %v176_v56  ;;  %v300_v62 = vadd.f32 %v2077_v29, %v299_v61 }
  0xeb   :  { %193 = vst.msk [vmem:[#allocation2 + $0x38] sm:$0xff] %vm185_vm2, %v182_v55  ;;  %315 = vst.msk [vmem:[#allocation3 + $0x38] sm:$0xff] %vm185_vm2, %v305_v59 }
  0xec   :  { %192 = vst.msk [vmem:[#allocation2 + $0x30] sm:$0xff] %vm185_vm2, %v177_v58  ;;  %v403_v63 = vpop.f32.mrb[8].mxu0  ;;  %314 = vst.msk [vmem:[#allocation3 + $0x30] sm:$0xff] %vm185_vm2, %v300_v62  ;;  %v507_v3 = vpop.f32.mrb[8].mxu1 }
  0xed   :  { %v404_v1 = vadd.f32 %v2900_v60, %v403_v63  ;;  %v2274_v2 = vpop.f32.mrb[9].mxu0  ;;  %v2285_v4 = vpop.f32.mrb[9].mxu1  ;;  %v508_v5 = vadd.f32 %v2908_v0, %v507_v3 }
  0xef   :  { %415 = vrot.lane.b32.xlu0 %v404_v1, %s2698_s4  ;;  %v407_v7 = vadd.f32 %v404_v1, %v326_v6 }
  0xf1   :  { %v2087_v9 = vmul.f32 -1.442695, %v407_v7 }
  0xf2   :  { %v434_v8 = vld [vmem:[#allocation3 + $0x38] sm:$0xff] }
  0xf3   :  { %519 = vrot.lane.b32.xlu0 %v508_v5, %s2698_s4  ;;  %v511_v10 = vadd.f32 %v508_v5, %v434_v8  ;;  %2551 = vpow2.f32 %v2087_v9  ;;  %v649_v54 = vld [vmem:[#allocation3 + $0x30] sm:$0xff] }
  0xf5   :  { %v2089_v11 = vmul.f32 -1.442695, %v511_v10 }
  0xf7   :  { %2553 = vpow2.f32 %v2089_v11 }
  0xfd   :  { %v2552_v14 = vpop.eup %2551 }
  0xfe   :  { %v411_v16 = vadd.f32 1.0, %v2552_v14 }
 0x100   :  { %2555 = vrcp.f32 %v411_v16 }
 0x101   :  { %v2554_v17 = vpop.eup %2553 }
 0x102   :  { %v515_v18 = vadd.f32 1.0, %v2554_v17 }
 0x104   :  { %2557 = vrcp.f32 %v515_v18 }
 0x10a   :  { %v2556_v19 = vpop.eup %2555 }
 0x10b   :  { %v425_v34 = vsub.f32 1.0, %v2556_v19  ;;  %v431_v36 = vmul.f32 0.0, %v2556_v19 }
 0x10e   :  { %v2558_v24 = vpop.eup %2557 }
 0x10f   :  { %v529_v39 = vsub.f32 1.0, %v2558_v24  ;;  %v535_v41 = vmul.f32 0.0, %v2558_v24 }
 0x161   :  { %v416_v20 = vpop.permute.xlu0 %415 }
 0x162   :  { %v418_v21 = vmul.f32 %v2556_v19, %v416_v20 }
 0x164   :  { %420 = vrot.lane.b32.xlu1 %v418_v21, %s2698_s4 }
 0x165   :  { %v520_v25 = vpop.permute.xlu0 %519 }
 0x166   :  { %v522_v26 = vmul.f32 %v2558_v24, %v520_v25 }
 0x168   :  { %524 = vrot.lane.b32.xlu1 %v522_v26, %s2698_s4 }
 0x1d6   :  { %v421_v28 = vpop.permute.xlu1 %420 }
 0x1d7   :  { %v423_v29 = vadd.f32 %v421_v28, %v326_v6 }
 0x1d9   :  { %2559 = vtanh.f32 %v423_v29 }
 0x1da   :  { %v525_v30 = vpop.permute.xlu1 %524 }
 0x1db   :  { %v527_v31 = vadd.f32 %v525_v30, %v434_v8 }
 0x1dd   :  { %2561 = vtanh.f32 %v527_v31 }
 0x1e3   :  { %v2560_v32 = vpop.eup %2559 }
 0x1e4   :  { %427 = vrot.lane.b32.xlu0 %v2560_v32, %s2699_s8 }
 0x1e7   :  { %v2562_v33 = vpop.eup %2561 }
 0x1e8   :  { %531 = vrot.lane.b32.xlu1 %v2562_v33, %s2699_s8 }
 0x256   :  { %v428_v35 = vpop.permute.xlu0 %427 }
 0x257   :  { %v430_v37 = vmul.f32 %v428_v35, %v425_v34 }
 0x259   :  { %v2919_v38 = vadd.f32 %v431_v36, %v430_v37  ;;  %v761_v36 = vld [vmem:[#allocation2 + $0x10] sm:$0xff] }
 0x25a   :  { %v532_v40 = vpop.permute.xlu1 %531 }
 0x25b   :  { %v534_v42 = vmul.f32 %v532_v40, %v529_v39  ;;  %538 = vrot.lane.b32.xlu0 %v2919_v38, %s2699_s8 }
 0x25d   :  { %v2923_v43 = vadd.f32 %v535_v41, %v534_v42 }
 0x25f   :  { %543 = vrot.lane.b32.xlu1 %v2923_v43, %s2699_s8 }
 0x2cd   :  { %v539_v44 = vpop.permute.xlu0 %538 }
 0x2ce   :  { %541 = vst.msk [vmem:[%s3222_s9] sm:$0xff] %vm333_vm3, %v539_v44  ;;  %2295 = vmatmul.mubr.msk.f32.vlgmr.msra.gmra.mrb[10].mxu0 %vm333_vm3, %v539_v44 }
 0x2cf   :  { %2474 = vmatpush3.bf16.msra.mxu0 %v2799_v12  ;;  %2316 = vmatprep.mubr.msk.f32.mxu0 %vm2696_vm1, %v2697_v27 }
 0x2d0   :  { %2475 = vmatprep.subr.bf16.mxu0 %v2695_v13 }
 0x2d1   :  { %v544_v45 = vpop.permute.xlu1 %543 }
 0x2d2   :  { %2090 = vst.msk [vmem:[%s3223_s10 + $0x38] sm:$0xff] %vm333_vm3, %v544_v45  ;;  %2306 = vmatmul.mubr.msk.f32.vlgmr.msra.gmra.mrb[10].mxu1 %vm333_vm3, %v544_v45 }
 0x2d3   :  { %2477 = vmatpush3.bf16.msra.mxu0 %v2831_v22  ;;  %2480 = vmatpush3.bf16.msra.mxu1 %v2806_v15 }
 0x2d4   :  { %2481 = vmatprep.subr.bf16.mxu1 %v2695_v13  ;;  %2327 = vmatprep.mubr.msk.f32.mxu1 %vm2696_vm1, %v2697_v27 }
 0x2d5   :  { %2484 = vmatprep.subr.bf16.mxu0 %v2695_v13 }
 0x2d7   :  { %2483 = vmatpush3.bf16.msra.mxu1 %v2835_v23 }
 0x2d8   :  { %2490 = vmatprep.subr.bf16.mxu1 %v2695_v13 }
 0x3a1   :  { %v618_v46 = vpop.f32.mrb[10].mxu0 }
 0x3a2   :  { %v619_v47 = vadd.f32 %v2900_v60, %v618_v46  ;;  %v2296_v48 = vpop.f32.mrb[11].mxu0 }
 0x3a4   :  { %630 = vrot.lane.b32.xlu0 %v619_v47, %s2698_s4  ;;  %v622_v53 = vadd.f32 %v619_v47, %v549_v52 }
 0x3a5   :  { %v718_v49 = vpop.f32.mrb[10].mxu1 }
 0x3a6   :  { %v719_v50 = vadd.f32 %v2908_v0, %v718_v49  ;;  %v2307_v51 = vpop.f32.mrb[11].mxu1  ;;  %v2092_v55 = vmul.f32 -1.442695, %v622_v53 }
 0x3a8   :  { %730 = vrot.lane.b32.xlu1 %v719_v50, %s2698_s4  ;;  %v722_v56 = vadd.f32 %v719_v50, %v649_v54  ;;  %2563 = vpow2.f32 %v2092_v55 }
 0x3aa   :  { %v2094_v57 = vmul.f32 -1.442695, %v722_v56 }
 0x3ac   :  { %2565 = vpow2.f32 %v2094_v57 }
 0x3b2   :  { %v2564_v58 = vpop.eup %2563 }
 0x3b3   :  { %v626_v59 = vadd.f32 1.0, %v2564_v58 }
 0x3b5   :  { %2567 = vrcp.f32 %v626_v59 }
 0x3b6   :  { %v2566_v61 = vpop.eup %2565 }
 0x3b7   :  { %v726_v62 = vadd.f32 1.0, %v2566_v61 }
 0x3b9   :  { %2569 = vrcp.f32 %v726_v62 }
 0x3bf   :  { %v2568_v63 = vpop.eup %2567 }
 0x3c0   :  { %v640_v14 = vsub.f32 1.0, %v2568_v63  ;;  %v646_v17 = vmul.f32 %v2568_v63, %v2919_v38  ;;  %v861_v38 = vld [vmem:[#allocation3 + $0x28] sm:$0xff] }
 0x3c3   :  { %v2570_v3 = vpop.eup %2569 }
 0x3c4   :  { %v740_v20 = vsub.f32 1.0, %v2570_v3  ;;  %v746_v24 = vmul.f32 %v2570_v3, %v2923_v43 }
 0x416   :  { %v631_v1 = vpop.permute.xlu0 %630 }
 0x417   :  { %v633_v2 = vmul.f32 %v2568_v63, %v631_v1 }
 0x419   :  { %635 = vrot.lane.b32.xlu0 %v633_v2, %s2698_s4 }
 0x41a   :  { %v731_v4 = vpop.permute.xlu1 %730 }
 0x41b   :  { %v733_v5 = vmul.f32 %v2570_v3, %v731_v4 }
 0x41d   :  { %735 = vrot.lane.b32.xlu1 %v733_v5, %s2698_s4 }
 0x48b   :  { %v636_v6 = vpop.permute.xlu0 %635 }
 0x48c   :  { %v638_v7 = vadd.f32 %v636_v6, %v549_v52 }
 0x48e   :  { %2571 = vtanh.f32 %v638_v7 }
 0x48f   :  { %v736_v8 = vpop.permute.xlu1 %735 }
 0x490   :  { %v738_v9 = vadd.f32 %v736_v8, %v649_v54 }
 0x492   :  { %2573 = vtanh.f32 %v738_v9 }
 0x498   :  { %v2572_v10 = vpop.eup %2571 }
 0x499   :  { %642 = vrot.lane.b32.xlu0 %v2572_v10, %s2699_s8 }
 0x49c   :  { %v2574_v11 = vpop.eup %2573 }
 0x49d   :  { %742 = vrot.lane.b32.xlu1 %v2574_v11, %s2699_s8 }
 0x50b   :  { %v643_v16 = vpop.permute.xlu0 %642 }
 0x50c   :  { %v645_v18 = vmul.f32 %v643_v16, %v640_v14 }
 0x50e   :  { %v2958_v19 = vadd.f32 %v646_v17, %v645_v18  ;;  %v973_v17 = vld [vmem:[#allocation2 + $0x18] sm:$0xff] }
 0x50f   :  { %v743_v21 = vpop.permute.xlu1 %742 }
 0x510   :  { %v745_v25 = vmul.f32 %v743_v21, %v740_v20  ;;  %749 = vrot.lane.b32.xlu0 %v2958_v19, %s2699_s8 }
 0x512   :  { %v2963_v26 = vadd.f32 %v746_v24, %v745_v25 }
 0x514   :  { %755 = vrot.lane.b32.xlu1 %v2963_v26, %s2699_s8 }
 0x582   :  { %v750_v28 = vpop.permute.xlu0 %749 }
 0x583   :  { %2095 = vst.msk [vmem:[%s3222_s9 + $0x8] sm:$0xff] %vm333_vm3, %v750_v28  ;;  %2317 = vmatmul.mubr.msk.f32.vlgmr.msra.gmra.mrb[12].mxu0 %vm333_vm3, %v750_v28 }
 0x584   :  { %2486 = vmatpush3.bf16.msra.mxu0 %v2799_v12  ;;  %2338 = vmatprep.mubr.msk.f32.mxu0 %vm2696_vm1, %v2697_v27 }
 0x585   :  { %2487 = vmatprep.subr.bf16.mxu0 %v2695_v13 }
 0x586   :  { %v756_v29 = vpop.permute.xlu1 %755 }
 0x587   :  { %2096 = vst.msk [vmem:[%s3223_s10 + $0x30] sm:$0xff] %vm333_vm3, %v756_v29  ;;  %2328 = vmatmul.mubr.msk.f32.vlgmr.msra.gmra.mrb[12].mxu1 %vm333_vm3, %v756_v29 }
 0x588   :  { %2489 = vmatpush3.bf16.msra.mxu0 %v2831_v22  ;;  %2492 = vmatpush3.bf16.msra.mxu1 %v2806_v15 }
 0x589   :  { %2493 = vmatprep.subr.bf16.mxu1 %v2695_v13  ;;  %2349 = vmatprep.mubr.msk.f32.mxu1 %vm2696_vm1, %v2697_v27 }
 0x58a   :  { %2496 = vmatprep.subr.bf16.mxu0 %v2695_v13 }
 0x58c   :  { %2495 = vmatpush3.bf16.msra.mxu1 %v2835_v23 }
 0x58d   :  { %2502 = vmatprep.subr.bf16.mxu1 %v2695_v13 }
 0x656   :  { %v830_v30 = vpop.f32.mrb[12].mxu0 }
 0x657   :  { %v831_v31 = vadd.f32 %v2900_v60, %v830_v30  ;;  %v2318_v32 = vpop.f32.mrb[13].mxu0 }
 0x659   :  { %842 = vrot.lane.b32.xlu0 %v831_v31, %s2698_s4  ;;  %v834_v37 = vadd.f32 %v831_v31, %v761_v36 }
 0x65a   :  { %v930_v33 = vpop.f32.mrb[12].mxu1 }
 0x65b   :  { %v931_v34 = vadd.f32 %v2908_v0, %v930_v33  ;;  %v2329_v35 = vpop.f32.mrb[13].mxu1  ;;  %v2098_v39 = vmul.f32 -1.442695, %v834_v37 }
 0x65d   :  { %942 = vrot.lane.b32.xlu1 %v931_v34, %s2698_s4  ;;  %v934_v40 = vadd.f32 %v931_v34, %v861_v38  ;;  %2575 = vpow2.f32 %v2098_v39 }
 0x65f   :  { %v2100_v41 = vmul.f32 -1.442695, %v934_v40 }
 0x661   :  { %2577 = vpow2.f32 %v2100_v41 }
 0x667   :  { %v2576_v42 = vpop.eup %2575 }
 0x668   :  { %v838_v43 = vadd.f32 1.0, %v2576_v42 }
 0x66a   :  { %2579 = vrcp.f32 %v838_v43 }
 0x66b   :  { %v2578_v44 = vpop.eup %2577 }
 0x66c   :  { %v938_v45 = vadd.f32 1.0, %v2578_v44 }
 0x66e   :  { %2581 = vrcp.f32 %v938_v45 }
 0x674   :  { %v2580_v46 = vpop.eup %2579 }
 0x675   :  { %v852_v58 = vsub.f32 1.0, %v2580_v46  ;;  %v858_v61 = vmul.f32 %v2580_v46, %v2958_v19  ;;  %v1073_v19 = vld [vmem:[#allocation3 + $0x20] sm:$0xff] }
 0x678   :  { %v2582_v49 = vpop.eup %2581 }
 0x679   :  { %v952_v1 = vsub.f32 1.0, %v2582_v49  ;;  %v958_v3 = vmul.f32 %v2582_v49, %v2963_v26 }
 0x6cb   :  { %v843_v47 = vpop.permute.xlu0 %842 }
 0x6cc   :  { %v845_v48 = vmul.f32 %v2580_v46, %v843_v47 }
 0x6ce   :  { %847 = vrot.lane.b32.xlu0 %v845_v48, %s2698_s4 }
 0x6cf   :  { %v943_v50 = vpop.permute.xlu1 %942 }
 0x6d0   :  { %v945_v51 = vmul.f32 %v2582_v49, %v943_v50 }
 0x6d2   :  { %947 = vrot.lane.b32.xlu1 %v945_v51, %s2698_s4 }
 0x740   :  { %v848_v52 = vpop.permute.xlu0 %847 }
 0x741   :  { %v850_v53 = vadd.f32 %v848_v52, %v761_v36 }
 0x743   :  { %2583 = vtanh.f32 %v850_v53 }
 0x744   :  { %v948_v54 = vpop.permute.xlu1 %947 }
 0x745   :  { %v950_v55 = vadd.f32 %v948_v54, %v861_v38 }
 0x747   :  { %2585 = vtanh.f32 %v950_v55 }
 0x74d   :  { %v2584_v56 = vpop.eup %2583 }
 0x74e   :  { %854 = vrot.lane.b32.xlu0 %v2584_v56, %s2699_s8 }
 0x751   :  { %v2586_v57 = vpop.eup %2585 }
 0x752   :  { %954 = vrot.lane.b32.xlu1 %v2586_v57, %s2699_s8 }
 0x7c0   :  { %v855_v59 = vpop.permute.xlu0 %854 }
 0x7c1   :  { %v857_v62 = vmul.f32 %v855_v59, %v852_v58 }
 0x7c3   :  { %v2998_v63 = vadd.f32 %v858_v61, %v857_v62  ;;  %v1185_v61 = vld [vmem:[#allocation2 + $0x20] sm:$0xff] }
 0x7c4   :  { %v955_v2 = vpop.permute.xlu1 %954 }
 0x7c5   :  { %v957_v4 = vmul.f32 %v955_v2, %v952_v1  ;;  %961 = vrot.lane.b32.xlu0 %v2998_v63, %s2699_s8 }
 0x7c7   :  { %v3003_v5 = vadd.f32 %v958_v3, %v957_v4 }
 0x7c9   :  { %967 = vrot.lane.b32.xlu1 %v3003_v5, %s2699_s8 }
 0x837   :  { %v962_v6 = vpop.permute.xlu0 %961 }
 0x838   :  { %2101 = vst.msk [vmem:[%s3222_s9 + $0x10] sm:$0xff] %vm333_vm3, %v962_v6  ;;  %2339 = vmatmul.mubr.msk.f32.vlgmr.msra.gmra.mrb[14].mxu0 %vm333_vm3, %v962_v6 }
 0x839   :  { %2498 = vmatpush3.bf16.msra.mxu0 %v2799_v12  ;;  %2360 = vmatprep.mubr.msk.f32.mxu0 %vm2696_vm1, %v2697_v27 }
 0x83a   :  { %2499 = vmatprep.subr.bf16.mxu0 %v2695_v13 }
 0x83b   :  { %v968_v7 = vpop.permute.xlu1 %967 }
 0x83c   :  { %2102 = vst.msk [vmem:[%s3223_s10 + $0x28] sm:$0xff] %vm333_vm3, %v968_v7  ;;  %2350 = vmatmul.mubr.msk.f32.vlgmr.msra.gmra.mrb[14].mxu1 %vm333_vm3, %v968_v7 }
 0x83d   :  { %2501 = vmatpush3.bf16.msra.mxu0 %v2831_v22  ;;  %2504 = vmatpush3.bf16.msra.mxu1 %v2806_v15 }
 0x83e   :  { %2505 = vmatprep.subr.bf16.mxu1 %v2695_v13  ;;  %2371 = vmatprep.mubr.msk.f32.mxu1 %vm2696_vm1, %v2697_v27 }
 0x83f   :  { %2508 = vmatprep.subr.bf16.mxu0 %v2695_v13 }
 0x841   :  { %2507 = vmatpush3.bf16.msra.mxu1 %v2835_v23 }
 0x842   :  { %2514 = vmatprep.subr.bf16.mxu1 %v2695_v13 }
 0x90b   :  { %v1042_v8 = vpop.f32.mrb[14].mxu0 }
 0x90c   :  { %v1043_v9 = vadd.f32 %v2900_v60, %v1042_v8  ;;  %v2340_v10 = vpop.f32.mrb[15].mxu0 }
 0x90e   :  { %1054 = vrot.lane.b32.xlu0 %v1043_v9, %s2698_s4  ;;  %v1046_v18 = vadd.f32 %v1043_v9, %v973_v17 }
 0x90f   :  { %v1142_v11 = vpop.f32.mrb[14].mxu1 }
 0x910   :  { %v1143_v14 = vadd.f32 %v2908_v0, %v1142_v11  ;;  %v2351_v16 = vpop.f32.mrb[15].mxu1  ;;  %v2104_v20 = vmul.f32 -1.442695, %v1046_v18 }
 0x912   :  { %1154 = vrot.lane.b32.xlu1 %v1143_v14, %s2698_s4  ;;  %v1146_v21 = vadd.f32 %v1143_v14, %v1073_v19  ;;  %2587 = vpow2.f32 %v2104_v20 }
 0x914   :  { %v2106_v24 = vmul.f32 -1.442695, %v1146_v21 }
 0x916   :  { %2589 = vpow2.f32 %v2106_v24 }
 0x91c   :  { %v2588_v25 = vpop.eup %2587 }
 0x91d   :  { %v1050_v26 = vadd.f32 1.0, %v2588_v25 }
 0x91f   :  { %2591 = vrcp.f32 %v1050_v26 }
 0x920   :  { %v2590_v28 = vpop.eup %2589 }
 0x921   :  { %v1150_v29 = vadd.f32 1.0, %v2590_v28 }
 0x923   :  { %2593 = vrcp.f32 %v1150_v29 }
 0x929   :  { %v2592_v30 = vpop.eup %2591 }
 0x92a   :  { %v1064_v42 = vsub.f32 1.0, %v2592_v30  ;;  %v1070_v44 = vmul.f32 %v2592_v30, %v2998_v63  ;;  %v1285_v63 = vld [vmem:[#allocation3 + $0x18] sm:$0xff] }
 0x92d   :  { %v2594_v33 = vpop.eup %2593 }
 0x92e   :  { %v1164_v47 = vsub.f32 1.0, %v2594_v33  ;;  %v1170_v49 = vmul.f32 %v2594_v33, %v3003_v5 }
 0x980   :  { %v1055_v31 = vpop.permute.xlu0 %1054 }
 0x981   :  { %v1057_v32 = vmul.f32 %v2592_v30, %v1055_v31 }
 0x983   :  { %1059 = vrot.lane.b32.xlu0 %v1057_v32, %s2698_s4 }
 0x984   :  { %v1155_v34 = vpop.permute.xlu1 %1154 }
 0x985   :  { %v1157_v35 = vmul.f32 %v2594_v33, %v1155_v34 }
 0x987   :  { %1159 = vrot.lane.b32.xlu1 %v1157_v35, %s2698_s4 }
 0x9f5   :  { %v1060_v36 = vpop.permute.xlu0 %1059 }
 0x9f6   :  { %v1062_v37 = vadd.f32 %v1060_v36, %v973_v17 }
 0x9f8   :  { %2595 = vtanh.f32 %v1062_v37 }
 0x9f9   :  { %v1160_v38 = vpop.permute.xlu1 %1159 }
 0x9fa   :  { %v1162_v39 = vadd.f32 %v1160_v38, %v1073_v19 }
 0x9fc   :  { %2597 = vtanh.f32 %v1162_v39 }
 0xa02   :  { %v2596_v40 = vpop.eup %2595 }
 0xa03   :  { %1066 = vrot.lane.b32.xlu0 %v2596_v40, %s2699_s8 }
 0xa06   :  { %v2598_v41 = vpop.eup %2597 }
 0xa07   :  { %1166 = vrot.lane.b32.xlu1 %v2598_v41, %s2699_s8 }
 0xa75   :  { %v1067_v43 = vpop.permute.xlu0 %1066 }
 0xa76   :  { %v1069_v45 = vmul.f32 %v1067_v43, %v1064_v42 }
 0xa78   :  { %v3038_v46 = vadd.f32 %v1070_v44, %v1069_v45  ;;  %v1397_v44 = vld [vmem:[#allocation2 + $0x28] sm:$0xff] }
 0xa79   :  { %v1167_v48 = vpop.permute.xlu1 %1166 }
 0xa7a   :  { %v1169_v50 = vmul.f32 %v1167_v48, %v1164_v47  ;;  %1173 = vrot.lane.b32.xlu0 %v3038_v46, %s2699_s8 }
 0xa7c   :  { %v3043_v51 = vadd.f32 %v1170_v49, %v1169_v50 }
 0xa7e   :  { %1179 = vrot.lane.b32.xlu1 %v3043_v51, %s2699_s8 }
 0xaec   :  { %v1174_v52 = vpop.permute.xlu0 %1173 }
 0xaed   :  { %2107 = vst.msk [vmem:[%s3222_s9 + $0x18] sm:$0xff] %vm333_vm3, %v1174_v52  ;;  %2361 = vmatmul.mubr.msk.f32.vlgmr.msra.gmra.mrb[16].mxu0 %vm333_vm3, %v1174_v52 }
 0xaee   :  { %2510 = vmatpush3.bf16.msra.mxu0 %v2799_v12  ;;  %2382 = vmatprep.mubr.msk.f32.mxu0 %vm2696_vm1, %v2697_v27 }
 0xaef   :  { %2511 = vmatprep.subr.bf16.mxu0 %v2695_v13 }
 0xaf0   :  { %v1180_v53 = vpop.permute.xlu1 %1179 }
 0xaf1   :  { %2108 = vst.msk [vmem:[%s3223_s10 + $0x20] sm:$0xff] %vm333_vm3, %v1180_v53  ;;  %2372 = vmatmul.mubr.msk.f32.vlgmr.msra.gmra.mrb[16].mxu1 %vm333_vm3, %v1180_v53 }
 0xaf2   :  { %2513 = vmatpush3.bf16.msra.mxu0 %v2831_v22  ;;  %2516 = vmatpush3.bf16.msra.mxu1 %v2806_v15 }
 0xaf3   :  { %2517 = vmatprep.subr.bf16.mxu1 %v2695_v13  ;;  %2393 = vmatprep.mubr.msk.f32.mxu1 %vm2696_vm1, %v2697_v27 }
 0xaf4   :  { %2520 = vmatprep.subr.bf16.mxu0 %v2695_v13 }
 0xaf6   :  { %2519 = vmatpush3.bf16.msra.mxu1 %v2835_v23 }
 0xaf7   :  { %2526 = vmatprep.subr.bf16.mxu1 %v2695_v13 }
 0xbc0   :  { %v1254_v54 = vpop.f32.mrb[16].mxu0 }
 0xbc1   :  { %v1255_v55 = vadd.f32 %v2900_v60, %v1254_v54  ;;  %v2362_v56 = vpop.f32.mrb[17].mxu0 }
 0xbc3   :  { %1266 = vrot.lane.b32.xlu0 %v1255_v55, %s2698_s4  ;;  %v1258_v62 = vadd.f32 %v1255_v55, %v1185_v61 }
 0xbc4   :  { %v1354_v57 = vpop.f32.mrb[16].mxu1 }
 0xbc5   :  { %v1355_v58 = vadd.f32 %v2908_v0, %v1354_v57  ;;  %v2373_v59 = vpop.f32.mrb[17].mxu1  ;;  %v2110_v1 = vmul.f32 -1.442695, %v1258_v62 }
 0xbc7   :  { %1366 = vrot.lane.b32.xlu1 %v1355_v58, %s2698_s4  ;;  %v1358_v2 = vadd.f32 %v1355_v58, %v1285_v63  ;;  %2599 = vpow2.f32 %v2110_v1 }
 0xbc9   :  { %v2112_v3 = vmul.f32 -1.442695, %v1358_v2 }
 0xbcb   :  { %2601 = vpow2.f32 %v2112_v3 }
 0xbd1   :  { %v2600_v4 = vpop.eup %2599 }
 0xbd2   :  { %v1262_v5 = vadd.f32 1.0, %v2600_v4 }
 0xbd4   :  { %2603 = vrcp.f32 %v1262_v5 }
 0xbd5   :  { %v2602_v6 = vpop.eup %2601 }
 0xbd6   :  { %v1362_v7 = vadd.f32 1.0, %v2602_v6 }
 0xbd8   :  { %2605 = vrcp.f32 %v1362_v7 }
 0xbde   :  { %v2604_v8 = vpop.eup %2603 }
 0xbdf   :  { %v1276_v25 = vsub.f32 1.0, %v2604_v8  ;;  %v1282_v28 = vmul.f32 %v2604_v8, %v3038_v46  ;;  %v1497_v46 = vld [vmem:[#allocation3 + $0x10] sm:$0xff] }
 0xbe2   :  { %v2606_v11 = vpop.eup %2605 }
 0xbe3   :  { %v1376_v31 = vsub.f32 1.0, %v2606_v11  ;;  %v1382_v33 = vmul.f32 %v2606_v11, %v3043_v51 }
 0xc35   :  { %v1267_v9 = vpop.permute.xlu0 %1266 }
 0xc36   :  { %v1269_v10 = vmul.f32 %v2604_v8, %v1267_v9 }
 0xc38   :  { %1271 = vrot.lane.b32.xlu0 %v1269_v10, %s2698_s4 }
 0xc39   :  { %v1367_v14 = vpop.permute.xlu1 %1366 }
 0xc3a   :  { %v1369_v16 = vmul.f32 %v2606_v11, %v1367_v14 }
 0xc3c   :  { %1371 = vrot.lane.b32.xlu1 %v1369_v16, %s2698_s4 }
 0xcaa   :  { %v1272_v17 = vpop.permute.xlu0 %1271 }
 0xcab   :  { %v1274_v18 = vadd.f32 %v1272_v17, %v1185_v61 }
 0xcad   :  { %2607 = vtanh.f32 %v1274_v18 }
 0xcae   :  { %v1372_v19 = vpop.permute.xlu1 %1371 }
 0xcaf   :  { %v1374_v20 = vadd.f32 %v1372_v19, %v1285_v63 }
 0xcb1   :  { %2609 = vtanh.f32 %v1374_v20 }
 0xcb7   :  { %v2608_v21 = vpop.eup %2607 }
 0xcb8   :  { %1278 = vrot.lane.b32.xlu0 %v2608_v21, %s2699_s8 }
 0xcbb   :  { %v2610_v24 = vpop.eup %2609 }
 0xcbc   :  { %1378 = vrot.lane.b32.xlu1 %v2610_v24, %s2699_s8 }
 0xd2a   :  { %v1279_v26 = vpop.permute.xlu0 %1278 }
 0xd2b   :  { %v1281_v29 = vmul.f32 %v1279_v26, %v1276_v25 }
 0xd2d   :  { %v3078_v30 = vadd.f32 %v1282_v28, %v1281_v29 }
 0xd2e   :  { %v1379_v32 = vpop.permute.xlu1 %1378 }
 0xd2f   :  { %v1381_v34 = vmul.f32 %v1379_v32, %v1376_v31  ;;  %1385 = vrot.lane.b32.xlu0 %v3078_v30, %s2699_s8 }
 0xd31   :  { %v3083_v35 = vadd.f32 %v1382_v33, %v1381_v34 }
 0xd33   :  { %1391 = vrot.lane.b32.xlu1 %v3083_v35, %s2699_s8 }
 0xda1   :  { %v1386_v36 = vpop.permute.xlu0 %1385 }
 0xda2   :  { %2113 = vst.msk [vmem:[%s3222_s9 + $0x20] sm:$0xff] %vm333_vm3, %v1386_v36  ;;  %2383 = vmatmul.mubr.msk.f32.vlgmr.msra.gmra.mrb[18].mxu0 %vm333_vm3, %v1386_v36 }
 0xda3   :  { %2522 = vmatpush3.bf16.msra.mxu0 %v2799_v12  ;;  %2404 = vmatprep.mubr.msk.f32.mxu0 %vm2696_vm1, %v2697_v27 }
 0xda4   :  { %2523 = vmatprep.subr.bf16.mxu0 %v2695_v13 }
 0xda5   :  { %v1392_v37 = vpop.permute.xlu1 %1391 }
 0xda6   :  { %2114 = vst.msk [vmem:[%s3223_s10 + $0x18] sm:$0xff] %vm333_vm3, %v1392_v37  ;;  %2394 = vmatmul.mubr.msk.f32.vlgmr.msra.gmra.mrb[18].mxu1 %vm333_vm3, %v1392_v37 }
 0xda7   :  { %2525 = vmatpush3.bf16.msra.mxu0 %v2831_v22  ;;  %2528 = vmatpush3.bf16.msra.mxu1 %v2806_v15 }
 0xda8   :  { %2529 = vmatprep.subr.bf16.mxu1 %v2695_v13  ;;  %2415 = vmatprep.mubr.msk.f32.mxu1 %vm2696_vm1, %v2697_v27 }
 0xda9   :  { %2532 = vmatprep.subr.bf16.mxu0 %v2695_v13 }
 0xdab   :  { %2531 = vmatpush3.bf16.msra.mxu1 %v2835_v23 }
 0xdac   :  { %2538 = vmatprep.subr.bf16.mxu1 %v2695_v13 }
 0xe75   :  { %v1466_v38 = vpop.f32.mrb[18].mxu0 }
 0xe76   :  { %v1467_v39 = vadd.f32 %v2900_v60, %v1466_v38  ;;  %v2384_v40 = vpop.f32.mrb[19].mxu0 }
 0xe78   :  { %1478 = vrot.lane.b32.xlu0 %v1467_v39, %s2698_s4  ;;  %v1470_v45 = vadd.f32 %v1467_v39, %v1397_v44 }
 0xe79   :  { %v1566_v41 = vpop.f32.mrb[18].mxu1 }
 0xe7a   :  { %v1567_v42 = vadd.f32 %v2908_v0, %v1566_v41  ;;  %v2395_v43 = vpop.f32.mrb[19].mxu1  ;;  %v2116_v47 = vmul.f32 -1.442695, %v1470_v45 }
 0xe7c   :  { %1578 = vrot.lane.b32.xlu1 %v1567_v42, %s2698_s4  ;;  %v1570_v48 = vadd.f32 %v1567_v42, %v1497_v46  ;;  %2611 = vpow2.f32 %v2116_v47 }
 0xe7e   :  { %v2118_v49 = vmul.f32 -1.442695, %v1570_v48 }
 0xe80   :  { %2613 = vpow2.f32 %v2118_v49 }
 0xe86   :  { %v2612_v50 = vpop.eup %2611 }
 0xe87   :  { %v1474_v51 = vadd.f32 1.0, %v2612_v50 }
 0xe89   :  { %2615 = vrcp.f32 %v1474_v51 }
 0xe8a   :  { %v2614_v52 = vpop.eup %2613 }
 0xe8b   :  { %v1574_v53 = vadd.f32 1.0, %v2614_v52 }
 0xe8d   :  { %2617 = vrcp.f32 %v1574_v53 }
 0xe93   :  { %v2616_v54 = vpop.eup %2615 }
 0xe94   :  { %v1488_v4 = vsub.f32 1.0, %v2616_v54  ;;  %v1494_v6 = vmul.f32 %v2616_v54, %v3078_v30 }
 0xe97   :  { %v2618_v57 = vpop.eup %2617 }
 0xe98   :  { %v1588_v9 = vsub.f32 1.0, %v2618_v57  ;;  %v1594_v11 = vmul.f32 %v2618_v57, %v3083_v35 }
 0xeea   :  { %v1479_v55 = vpop.permute.xlu0 %1478 }
 0xeeb   :  { %v1481_v56 = vmul.f32 %v2616_v54, %v1479_v55 }
 0xeed   :  { %1483 = vrot.lane.b32.xlu0 %v1481_v56, %s2698_s4 }
 0xeee   :  { %v1579_v58 = vpop.permute.xlu1 %1578 }
 0xeef   :  { %v1581_v59 = vmul.f32 %v2618_v57, %v1579_v58 }
 0xef1   :  { %1583 = vrot.lane.b32.xlu1 %v1581_v59, %s2698_s4 }
 0xf5f   :  { %v1484_v61 = vpop.permute.xlu0 %1483 }
 0xf60   :  { %v1486_v62 = vadd.f32 %v1484_v61, %v1397_v44 }
 0xf62   :  { %2619 = vtanh.f32 %v1486_v62 }
 0xf63   :  { %v1584_v63 = vpop.permute.xlu1 %1583 }
 0xf64   :  { %v1586_v1 = vadd.f32 %v1584_v63, %v1497_v46  ;;  %v1821_v63 = vld [vmem:[#allocation2 + $0x38] sm:$0xff] }
 0xf66   :  { %2621 = vtanh.f32 %v1586_v1 }
 0xf6c   :  { %v2620_v2 = vpop.eup %2619 }
 0xf6d   :  { %1490 = vrot.lane.b32.xlu0 %v2620_v2, %s2699_s8  ;;  %v1920_v2 = vld [vmem:[#allocation3] sm:$0xff] }
 0xf70   :  { %v2622_v3 = vpop.eup %2621 }
 0xf71   :  { %1590 = vrot.lane.b32.xlu1 %v2622_v3, %s2699_s8 }
 0xfdf   :  { %v1491_v5 = vpop.permute.xlu0 %1490 }
 0xfe0   :  { %v1493_v7 = vmul.f32 %v1491_v5, %v1488_v4 }
 0xfe2   :  { %v3118_v8 = vadd.f32 %v1494_v6, %v1493_v7 }
 0xfe3   :  { %v1591_v10 = vpop.permute.xlu1 %1590 }
 0xfe4   :  { %v1593_v14 = vmul.f32 %v1591_v10, %v1588_v9  ;;  %1597 = vrot.lane.b32.xlu0 %v3118_v8, %s2699_s8 }
 0xfe6   :  { %v3123_v16 = vadd.f32 %v1594_v11, %v1593_v14 }
 0xfe8   :  { %1603 = vrot.lane.b32.xlu1 %v3123_v16, %s2699_s8 }
0x1056   :  { %v1598_v17 = vpop.permute.xlu0 %1597 }
0x1057   :  { %2119 = vst.msk [vmem:[%s3222_s9 + $0x28] sm:$0xff] %vm333_vm3, %v1598_v17  ;;  %2405 = vmatmul.mubr.msk.f32.vlgmr.msra.gmra.mrb[20].mxu0 %vm333_vm3, %v1598_v17 }
0x1058   :  { %2534 = vmatpush3.bf16.msra.mxu0 %v2799_v12  ;;  %2426 = vmatprep.mubr.msk.f32.mxu0 %vm2696_vm1, %v2697_v27 }
0x1059   :  { %2535 = vmatprep.subr.bf16.mxu0 %v2695_v13 }
0x105a   :  { %v1604_v18 = vpop.permute.xlu1 %1603 }
0x105b   :  { %2120 = vst.msk [vmem:[%s3223_s10 + $0x10] sm:$0xff] %vm333_vm3, %v1604_v18  ;;  %2416 = vmatmul.mubr.msk.f32.vlgmr.msra.gmra.mrb[20].mxu1 %vm333_vm3, %v1604_v18 }
0x105c   :  { %2537 = vmatpush3.bf16.msra.mxu0 %v2831_v22  ;;  %2540 = vmatpush3.bf16.msra.mxu1 %v2806_v15  ;;  %v1609_v15 = vld [vmem:[#allocation2 + $0x30] sm:$0xff] }
0x105d   :  { %2541 = vmatprep.subr.bf16.mxu1 %v2695_v13  ;;  %2437 = vmatprep.mubr.msk.f32.mxu1 %vm2696_vm1, %v2697_v27  ;;  %v1709_v13 = vld [vmem:[#allocation3 + $0x8] sm:$0xff] }
0x1060   :  { %2543 = vmatpush3.bf16.msra.mxu1 %v2835_v23 }
0x112a   :  { %v1678_v12 = vpop.f32.mrb[20].mxu0 }
0x112b   :  { %v1679_v19 = vadd.f32 %v2900_v60, %v1678_v12  ;;  %v2406_v20 = vpop.f32.mrb[21].mxu0 }
0x112d   :  { %1690 = vrot.lane.b32.xlu0 %v1679_v19, %s2698_s4  ;;  %v1682_v22 = vadd.f32 %v1679_v19, %v1609_v15 }
0x112e   :  { %v1778_v21 = vpop.f32.mrb[20].mxu1 }
0x112f   :  { %v1779_v24 = vadd.f32 %v2908_v0, %v1778_v21  ;;  %v2417_v25 = vpop.f32.mrb[21].mxu1  ;;  %v2122_v26 = vmul.f32 -1.442695, %v1682_v22 }
0x1131   :  { %1790 = vrot.lane.b32.xlu1 %v1779_v24, %s2698_s4  ;;  %v1782_v28 = vadd.f32 %v1779_v24, %v1709_v13  ;;  %2623 = vpow2.f32 %v2122_v26 }
0x1133   :  { %v2124_v27 = vmul.f32 -1.442695, %v1782_v28 }
0x1135   :  { %2625 = vpow2.f32 %v2124_v27 }
0x113b   :  { %v2624_v23 = vpop.eup %2623 }
0x113c   :  { %v1686_v29 = vadd.f32 1.0, %v2624_v23 }
0x113e   :  { %2627 = vrcp.f32 %v1686_v29 }
0x113f   :  { %v2626_v30 = vpop.eup %2625 }
0x1140   :  { %v1786_v31 = vadd.f32 1.0, %v2626_v30 }
0x1142   :  { %2629 = vrcp.f32 %v1786_v31 }
0x1148   :  { %v2628_v32 = vpop.eup %2627 }
0x1149   :  { %v1700_v44 = vsub.f32 1.0, %v2628_v32  ;;  %v1706_v46 = vmul.f32 %v2628_v32, %v3118_v8 }
0x114c   :  { %v2630_v35 = vpop.eup %2629 }
0x114d   :  { %v1800_v49 = vsub.f32 1.0, %v2630_v35  ;;  %v1806_v51 = vmul.f32 %v2630_v35, %v3123_v16 }
0x119f   :  { %v1691_v33 = vpop.permute.xlu0 %1690 }
0x11a0   :  { %v1693_v34 = vmul.f32 %v2628_v32, %v1691_v33 }
0x11a2   :  { %1695 = vrot.lane.b32.xlu0 %v1693_v34, %s2698_s4 }
0x11a3   :  { %v1791_v36 = vpop.permute.xlu1 %1790 }
0x11a4   :  { %v1793_v37 = vmul.f32 %v2630_v35, %v1791_v36 }
0x11a6   :  { %1795 = vrot.lane.b32.xlu1 %v1793_v37, %s2698_s4 }
0x1214   :  { %v1696_v38 = vpop.permute.xlu0 %1695 }
0x1215   :  { %v1698_v39 = vadd.f32 %v1696_v38, %v1609_v15 }
0x1217   :  { %2631 = vtanh.f32 %v1698_v39 }
0x1218   :  { %v1796_v40 = vpop.permute.xlu1 %1795 }
0x1219   :  { %v1798_v41 = vadd.f32 %v1796_v40, %v1709_v13 }
0x121b   :  { %2633 = vtanh.f32 %v1798_v41 }
0x1221   :  { %v2632_v42 = vpop.eup %2631 }
0x1222   :  { %1702 = vrot.lane.b32.xlu0 %v2632_v42, %s2699_s8 }
0x1225   :  { %v2634_v43 = vpop.eup %2633 }
0x1226   :  { %1802 = vrot.lane.b32.xlu1 %v2634_v43, %s2699_s8 }
0x1294   :  { %v1703_v45 = vpop.permute.xlu0 %1702 }
0x1295   :  { %v1705_v47 = vmul.f32 %v1703_v45, %v1700_v44 }
0x1297   :  { %v1707_v48 = vadd.f32 %v1706_v46, %v1705_v47 }
0x1298   :  { %v1803_v50 = vpop.permute.xlu1 %1802 }
0x1299   :  { %v1805_v52 = vmul.f32 %v1803_v50, %v1800_v49  ;;  %1809 = vrot.lane.b32.xlu0 %v1707_v48, %s2699_s8 }
0x129b   :  { %v1807_v53 = vadd.f32 %v1806_v51, %v1805_v52 }
0x129d   :  { %1815 = vrot.lane.b32.xlu1 %v1807_v53, %s2699_s8 }
0x130b   :  { %v1810_v54 = vpop.permute.xlu0 %1809 }
0x130c   :  { %2125 = vst.msk [vmem:[%s3222_s9 + $0x30] sm:$0xff] %vm333_vm3, %v1810_v54  ;;  %2427 = vmatmul.mubr.msk.f32.vlgmr.msra.gmra.mrb[22].mxu0 %vm333_vm3, %v1810_v54 }
0x130f   :  { %v1816_v55 = vpop.permute.xlu1 %1815 }
0x1310   :  { %2126 = vst.msk [vmem:[%s3223_s10 + $0x8] sm:$0xff] %vm333_vm3, %v1816_v55  ;;  %2438 = vmatmul.mubr.msk.f32.vlgmr.msra.gmra.mrb[22].mxu1 %vm333_vm3, %v1816_v55 }
0x13df   :  { %v1890_v56 = vpop.f32.mrb[22].mxu0 }
0x13e0   :  { %v1891_v57 = vadd.f32 %v2900_v60, %v1890_v56  ;;  %v2428_v58 = vpop.f32.mrb[23].mxu0 }
0x13e2   :  { %1902 = vrot.lane.b32.xlu0 %v1891_v57, %s2698_s4  ;;  %v1894_v1 = vadd.f32 %v1891_v57, %v1821_v63 }
0x13e3   :  { %v1989_v59 = vpop.f32.mrb[22].mxu1 }
0x13e4   :  { %v1990_v61 = vadd.f32 %v2908_v0, %v1989_v59  ;;  %v2439_v62 = vpop.f32.mrb[23].mxu1  ;;  %v2128_v3 = vmul.f32 -1.442695, %v1894_v1 }
0x13e6   :  { %2001 = vrot.lane.b32.xlu1 %v1990_v61, %s2698_s4  ;;  %v1993_v4 = vadd.f32 %v1990_v61, %v1920_v2  ;;  %2635 = vpow2.f32 %v2128_v3 }
0x13e8   :  { %v2130_v5 = vmul.f32 -1.442695, %v1993_v4 }
0x13ea   :  { %2637 = vpow2.f32 %v2130_v5 }
0x13f0   :  { %v2636_v6 = vpop.eup %2635 }
0x13f1   :  { %v1898_v7 = vadd.f32 1.0, %v2636_v6 }
0x13f3   :  { %2639 = vrcp.f32 %v1898_v7 }
0x13f4   :  { %v2638_v60 = vpop.eup %2637 }
0x13f5   :  { %v1997_v8 = vadd.f32 1.0, %v2638_v60 }
0x13f7   :  { %2641 = vrcp.f32 %v1997_v8 }
0x13fd   :  { %v2640_v9 = vpop.eup %2639 }
0x13fe   :  { %v1912_v24 = vsub.f32 1.0, %v2640_v9  ;;  %v1918_v15 = vmul.f32 %v2640_v9, %v1707_v48 }
0x1401   :  { %v2642_v11 = vpop.eup %2641 }
0x1402   :  { %v2011_v26 = vsub.f32 1.0, %v2642_v11  ;;  %v2017_v27 = vmul.f32 %v2642_v11, %v1807_v53 }
0x1454   :  { %v1903_v10 = vpop.permute.xlu0 %1902 }
0x1455   :  { %v1905_v0 = vmul.f32 %v2640_v9, %v1903_v10 }
0x1457   :  { %1907 = vrot.lane.b32.xlu0 %v1905_v0, %s2698_s4 }
0x1458   :  { %v2002_v14 = vpop.permute.xlu1 %2001 }
0x1459   :  { %v2004_v16 = vmul.f32 %v2642_v11, %v2002_v14 }
0x145b   :  { %2006 = vrot.lane.b32.xlu1 %v2004_v16, %s2698_s4  ;;  %s2700_s4 = smov [#allocation4]  }
0x145c   :  { %s2042_s27 = sshll.u32 %s2700_s4, 4  ;;  %s2043_s27 = int_to_ptr.vmem [resolvable:$true] %s2042_s27 }
0x145d   :  { %s2647_s13 = scalar_lea.vmem %s2043_s27, 128  ;;  %p2652_p1 = scmp.lt.s32.totalorder %s2043_s27, %s2043_s27 }
0x145e   :  { %p2648_p0 = scmp.ne.s32.totalorder %s2043_s27, %s2647_s13  ;;  %p2653_p2 = scmp.lt.s32.totalorder %s2647_s13, %s2647_s13 }
0x1460   :  { %p2654_p3 = por %p2653_p2, %p2652_p1 }
0x1462   :  { %p2655_p4 = pnand %p2654_p3, %p2648_p0 }
0x14c9   :  { %v1908_v17 = vpop.permute.xlu0 %1907 }
0x14ca   :  { %v1910_v18 = vadd.f32 %v1908_v17, %v1821_v63 }
0x14cc   :  { %2643 = vtanh.f32 %v1910_v18 }
0x14cd   :  { %v2007_v12 = vpop.permute.xlu1 %2006 }
0x14ce   :  { %v2009_v19 = vadd.f32 %v2007_v12, %v1920_v2 }
0x14d0   :  { %2645 = vtanh.f32 %v2009_v19 }
0x14d6   :  { %v2644_v20 = vpop.eup %2643 }
0x14d7   :  { %1914 = vrot.lane.b32.xlu0 %v2644_v20, %s2699_s8 }
0x14da   :  { %v2646_v21 = vpop.eup %2645 }
0x14db   :  { %2013 = vrot.lane.b32.xlu1 %v2646_v21, %s2699_s8 }
0x1549   :  { %v1915_v25 = vpop.permute.xlu0 %1914 }
0x154a   :  { %v1917_v22 = vmul.f32 %v1915_v25, %v1912_v24 }
0x154c   :  { %v1919_v13 = vadd.f32 %v1918_v15, %v1917_v22 }
0x154d   :  { %v2014_v28 = vpop.permute.xlu1 %2013 }
0x154e   :  { %v2016_v23 = vmul.f32 %v2014_v28, %v2011_v26  ;;  %2020 = vrot.lane.b32.xlu0 %v1919_v13, %s2699_s8 }
0x1550   :  { %v2018_v29 = vadd.f32 %v2017_v27, %v2016_v23 }
0x1552   :  { %2026 = vrot.lane.b32.xlu1 %v2018_v29, %s2699_s8 }
0x15c0   :  { %v2021_v30 = vpop.permute.xlu0 %2020 }
0x15c1   :  { %2131 = vst.msk [vmem:[%s3222_s9 + $0x38] sm:$0xff] %vm333_vm3, %v2021_v30  ;;  %2030 = vst.msk [vmem:[#allocation4] sm:$0xff] %vm333_vm3, %v2021_v30 }
0x15c2   :  { %2658 = shalt.err (!%p2655_p4)
}
0x15c3   :  { %s2659_s14 = scalar_lea.hbm %s3224_s11, 128 }
0x15c4   :  { %p2660_p5 = scmp.ne.s32.totalorder %s3224_s11, %s2659_s14  ;;  %p2663_p6 = scmp.lt.u32.totalorder %s2659_s14, %s3224_s11 }
0x15c6   :  { %p2665_p7 = pnand %p2663_p6, %p2660_p5 }
0x15c8   :  { %2668 = shalt.err (!%p2665_p7)
}
0x15c9   :  { %2045 = dma.vmem_to_hbm [thread:$0]  %s2043_s27, 128, %s3224_s11, [#allocation5]   ;;  %v2027_v31 = vpop.permute.xlu1 %2026 }
0x15ca   :  { %2029 = vst.msk [vmem:[%s3223_s10] sm:$0xff] %vm333_vm3, %v2027_v31  ;;  %2031 = vst.msk [vmem:[#allocation6] sm:$0xff] %vm333_vm3, %v2027_v31  ;;  %s2669_s19 = scalar_lea.vmem %s2053_s29, 128  ;;  %p2674_p9 = scmp.lt.s32.totalorder %s2053_s29, %s2053_s29 }
0x15cb   :  { %p2670_p8 = scmp.ne.s32.totalorder %s2053_s29, %s2669_s19  ;;  %p2675_p10 = scmp.lt.s32.totalorder %s2669_s19, %s2669_s19 }
0x15cd   :  { %p2676_p11 = por %p2675_p10, %p2674_p9 }
0x15cf   :  { %p2677_p12 = pnand %p2676_p11, %p2670_p8 }
0x15d1   :  { %2680 = shalt.err (!%p2677_p12)
}
0x15d2   :  { %s2681_s11 = scalar_lea.hbm %s3225_s12, 128 }
0x15d3   :  { %p2682_p13 = scmp.ne.s32.totalorder %s3225_s12, %s2681_s11  ;;  %p2685_p0 = scmp.lt.u32.totalorder %s2681_s11, %s3225_s12 }
0x15d5   :  { %p2687_p1 = pnand %p2685_p0, %p2682_p13 }
0x15d7   :  { %2690 = shalt.err (!%p2687_p1)
}
0x15d8   :  { %2055 = dma.vmem_to_hbm [thread:$0]  %s2053_s29, 128, %s3225_s12, [#allocation7]  }
0x15d9   :  { %2691 = dma.done.wait [#allocation5], 128  }
0x15da   :  { %2692 = vsyncadd [#allocation5], 4294967168 }
0x15db   :  { %2693 = dma.done.wait [#allocation7], 128  }
0x15dc   :  { %2694 = vsyncadd [#allocation7], 4294967168 }
0x15dd   :  { %2066 = vsyncpa [#allocation5], 1 }
0x15de   :  { %2067 = vsyncpa [#allocation7], 1 }

// kernel: gru_encoder_forward.3
= control target key start
LH: loop header
LB: loop body
LE: loop exit
PB: predicated region body
PF: predicated region fallthrough
CT: control target
= control target key end

     0   :  { %18 = vsyncpa [#allocation5], 0  ;;  %vm61_vm0 = vcmask 523264   ;;  %s3273_s0 = inlined_call_operand.vmem [shape: f32[64,64], index: 0, kind: input, shape index: {}]   ;;  %s3274_s1 = inlined_call_operand.vmem [shape: f32[64,96], index: 1, kind: input, shape index: {}]   ;;  %s3275_s2 = inlined_call_operand.vmem [shape: f32[32,96], index: 2, kind: input, shape index: {}]   ;;  %s3276_s3 = inlined_call_operand.vmem [shape: f32[1,96], index: 3, kind: input, shape index: {}]   ;;  %s3277_s4 = inlined_call_operand.vmem [shape: f32[1,96], index: 4, kind: input, shape index: {}]   ;;  %s3278_s5 = inlined_call_operand.vmem [shape: f32[64,96], index: 5, kind: input, shape index: {}]   ;;  %s3279_s6 = inlined_call_operand.vmem [shape: f32[32,96], index: 6, kind: input, shape index: {}]   ;;  %s3280_s7 = inlined_call_operand.vmem [shape: f32[1,96], index: 7, kind: input, shape index: {}]   ;;  %s3281_s8 = inlined_call_operand.vmem [shape: f32[1,96], index: 8, kind: input, shape index: {}]   ;;  %s3282_s9 = inlined_call_operand.hbm [shape: f32[64,32], index: 9, kind: output, shape index: {0}]   ;;  %s3283_s10 = inlined_call_operand.hbm [shape: f32[64,32], index: 10, kind: output, shape index: {1}]   ;;  %s3284_s11 = inlined_call_operand.vmem [shape: f32[8,32], index: 11, kind: output, shape index: {2}]   ;;  %s3285_s12 = inlined_call_operand.vmem [shape: f32[8,32], index: 12, kind: output, shape index: {3}]  }
   0x1   :  { %v46_v0 = vld [vmem:[%s3274_s1] sm:$0xff]  ;;  %v47_v1 = vld [vmem:[%s3274_s1 + $0x8] sm:$0xff]  ;;  %v48_v5 = vld [vmem:[%s3274_s1 + $0x10] sm:$0xff] }
   0x2   :  { %v200_v2 = vld [vmem:[%s3278_s5] sm:$0xff]  ;;  %v2478_v3 = vpack.c.bf16 %v47_v1, %v46_v0  ;;  %v201_v4 = vld [vmem:[%s3278_s5 + $0x8] sm:$0xff]  ;;  %v49_v6 = vld [vmem:[%s3274_s1 + $0x18] sm:$0xff] }
   0x3   :  { %v2494_v7 = vpack.c.bf16 %v201_v4, %v200_v2  ;;  %v2482_v8 = vpack.c.bf16 %v49_v6, %v48_v5  ;;  %v202_v9 = vld [vmem:[%s3278_s5 + $0x10] sm:$0xff]  ;;  %v203_v10 = vld [vmem:[%s3278_s5 + $0x18] sm:$0xff]  ;;  %v50_v11 = vld [vmem:[%s3274_s1 + $0x20] sm:$0xff] }
   0x4   :  { %2479 = vmatprep.subr.bf16.mxu0 %v2478_v3  ;;  %v2498_v12 = vpack.c.bf16 %v203_v10, %v202_v9  ;;  %v51_v13 = vld [vmem:[%s3274_s1 + $0x28] sm:$0xff]  ;;  %v204_v14 = vld [vmem:[%s3278_s5 + $0x20] sm:$0xff]  ;;  %v52_v19 = vld [vmem:[%s3274_s1 + $0x30] sm:$0xff] }
   0x5   :  { %v205_v15 = vld [vmem:[%s3278_s5 + $0x28] sm:$0xff]  ;;  %2481 = vmatpush3.bf16.msra.mxu0 %v2478_v3  ;;  %2495 = vmatprep.subr.bf16.mxu1 %v2494_v7  ;;  %v2486_v16 = vpack.c.bf16 %v51_v13, %v50_v11  ;;  %v38_v17 = vld [vmem:[%s3273_s0] sm:$0xff]  ;;  %v53_v20 = vld [vmem:[%s3274_s1 + $0x38] sm:$0xff] }
   0x6   :  { %2497 = vmatpush3.bf16.msra.mxu1 %v2494_v7  ;;  %2483 = vmatprep.subr.bf16.mxu0 %v2482_v8  ;;  %v2502_v18 = vpack.c.bf16 %v205_v15, %v204_v14  ;;  %v206_v21 = vld [vmem:[%s3278_s5 + $0x30] sm:$0xff]  ;;  %v207_v22 = vld [vmem:[%s3278_s5 + $0x38] sm:$0xff]  ;;  %v2490_v23 = vpack.c.bf16 %v53_v20, %v52_v19 }
   0x7   :  { %2499 = vmatprep.subr.bf16.mxu1 %v2498_v12  ;;  %2262 = vmatprep.mubr.msk.f32.mxu0 %vm61_vm0, %v38_v17  ;;  %v2506_v24 = vpack.c.bf16 %v207_v22, %v206_v21 }
   0x8   :  { %2290 = vmatprep.mubr.msk.f32.mxu1 %vm61_vm0, %v38_v17 }
   0x9   :  { %2485 = vmatpush3.bf16.msra.mxu0 %v2482_v8 }
   0xa   :  { %2501 = vmatpush3.bf16.msra.mxu1 %v2498_v12  ;;  %2487 = vmatprep.subr.bf16.mxu0 %v2486_v16 }
   0xb   :  { %2503 = vmatprep.subr.bf16.mxu1 %v2502_v18 }
   0xc   :  { %19 = vsyncpa [#allocation7], 0  ;;  %v328_v25 = vld [vmem:[%s3275_s2] sm:$0xff]  ;;  %v329_v26 = vld [vmem:[%s3275_s2 + $0x8] sm:$0xff]  ;;  %v2759_v31 = vmov 0.0|0.0   ;;  %vm2760_vm1 = vmmov 0  }
   0xd   :  { %2489 = vmatpush3.bf16.msra.mxu0 %v2486_v16  ;;  %v332_v27 = vld [vmem:[%s3279_s6] sm:$0xff]  ;;  %v333_v28 = vld [vmem:[%s3279_s6 + $0x8] sm:$0xff]  ;;  %v2901_v30 = vpack.c.bf16 %v329_v26, %v328_v25  ;;  %v40_v32 = vld [vmem:[%s3273_s0 + $0x10] sm:$0xff]  ;;  %v2761_v45 = vmov 0.0   ;;  %vm191_vm2 = vcmask 785408   ;;  %vm345_vm3 = vcmask 261120  }
   0xe   :  { %2505 = vmatpush3.bf16.msra.mxu1 %v2502_v18  ;;  %2491 = vmatprep.subr.bf16.mxu0 %v2490_v23  ;;  %v39_v29 = vld [vmem:[%s3273_s0 + $0x8] sm:$0xff]  ;;  %v2908_v33 = vpack.c.bf16 %v333_v28, %v332_v27  ;;  %v330_v34 = vld [vmem:[%s3275_s2 + $0x10] sm:$0xff]  ;;  %v331_v35 = vld [vmem:[%s3275_s2 + $0x18] sm:$0xff]  ;;  %s2764_s30 = smov [#allocation4]   ;;  %s2765_s14 = smov [#allocation6]  }
   0xf   :  { %2507 = vmatprep.subr.bf16.mxu1 %v2506_v24  ;;  %v334_v36 = vld [vmem:[%s3279_s6 + $0x10] sm:$0xff]  ;;  %v335_v37 = vld [vmem:[%s3279_s6 + $0x18] sm:$0xff]  ;;  %v42_v39 = vld [vmem:[%s3273_s0 + $0x20] sm:$0xff]  ;;  %v2933_v40 = vpack.c.bf16 %v331_v35, %v330_v34  ;;  %s2049_s13 = sshll.u32 %s2764_s30, 4  ;;  %s2061_s15 = sshll.u32 %s2765_s14, 4  ;;  %s2050_s13 = int_to_ptr.vmem [resolvable:$true] %s2049_s13  ;;  %s2062_s15 = int_to_ptr.vmem [resolvable:$true] %s2061_s15 }
  0x10   :  { %v41_v38 = vld [vmem:[%s3273_s0 + $0x18] sm:$0xff]  ;;  %v2937_v41 = vpack.c.bf16 %v335_v37, %v334_v36  ;;  %v43_v42 = vld [vmem:[%s3273_s0 + $0x28] sm:$0xff]  ;;  %v44_v43 = vld [vmem:[%s3273_s0 + $0x30] sm:$0xff]  ;;  %s2711_s18 = scalar_lea.vmem %s2050_s13, 1024  ;;  %p2716_p1 = scmp.lt.s32.totalorder %s2050_s13, %s2050_s13 }
  0x11   :  { %2493 = vmatpush3.bf16.msra.mxu0 %v2490_v23  ;;  %v45_v44 = vld [vmem:[%s3273_s0 + $0x38] sm:$0xff]  ;;  %v2084_v46 = vld [vmem:[%s3276_s3] ss:$0 sm:$0xff]  ;;  %p2712_p0 = scmp.ne.s32.totalorder %s2050_s13, %s2711_s18  ;;  %p2717_p2 = scmp.lt.s32.totalorder %s2711_s18, %s2711_s18 }
  0x12   :  { %2509 = vmatpush3.bf16.msra.mxu1 %v2506_v24  ;;  %2510 = vmatprep.subr.bf16.mxu0 %v2759_v31  ;;  %v2093_v47 = vld [vmem:[%s3280_s7] ss:$0 sm:$0xff] }
  0x13   :  { %2516 = vmatprep.subr.bf16.mxu1 %v2759_v31  ;;  %v3002_v14 = vld [vmem:[%s3277_s4] ss:$0 sm:$0xff]  ;;  %s2762_s4 = smov 64   ;;  %p2718_p3 = por %p2717_p2, %p2716_p1 }
  0x14   :  { %2263 = vmatmul.mubr.msk.f32.vlgmr.msra.gmra.mrb[0].mxu0 %vm61_vm0, %v39_v29  ;;  %v3010_v18 = vld [vmem:[%s3281_s8] ss:$0 sm:$0xff]  ;;  %s2763_s8 = smov 96  }
  0x15   :  { %2291 = vmatmul.mubr.msk.f32.vlgmr.msra.gmra.mrb[0].mxu1 %vm61_vm0, %v39_v29  ;;  %2512 = vmatpush3.bf16.msra.mxu0 %v2901_v30  ;;  %p2719_p4 = pnand %p2718_p3, %p2712_p0 }
  0x16   :  { %2265 = vmatprep.mubr.msk.f32.mxu0 %vm61_vm0, %v40_v32  ;;  %2293 = vmatprep.mubr.msk.f32.mxu1 %vm61_vm0, %v40_v32 }
  0x17   :  { %2518 = vmatpush3.bf16.msra.mxu1 %v2908_v33  ;;  %2513 = vmatprep.subr.bf16.mxu0 %v2759_v31 }
  0x18   :  { %2266 = vmatmul.mubr.msk.f32.gmra.mrb[2].mxu0 %vm61_vm0, %v41_v38  ;;  %2519 = vmatprep.subr.bf16.mxu1 %v2759_v31 }
  0x19   :  { %2294 = vmatmul.mubr.msk.f32.gmra.mrb[2].mxu1 %vm61_vm0, %v41_v38  ;;  %2268 = vmatprep.mubr.msk.f32.mxu0 %vm61_vm0, %v42_v39 }
  0x1a   :  { %2296 = vmatprep.mubr.msk.f32.mxu1 %vm61_vm0, %v42_v39  ;;  %2515 = vmatpush3.bf16.msra.mxu0 %v2933_v40 }
  0x1b   :  { %2521 = vmatpush3.bf16.msra.mxu1 %v2937_v41  ;;  %2522 = vmatprep.subr.bf16.mxu0 %v2759_v31 }
  0x1c   :  { %2269 = vmatmul.mubr.msk.f32.gmra.mrb[4].mxu0 %vm61_vm0, %v43_v42  ;;  %2528 = vmatprep.subr.bf16.mxu1 %v2759_v31 }
  0x1d   :  { %2297 = vmatmul.mubr.msk.f32.gmra.mrb[4].mxu1 %vm61_vm0, %v43_v42  ;;  %2271 = vmatprep.mubr.msk.f32.mxu0 %vm61_vm0, %v44_v43 }
  0x1e   :  { %2299 = vmatprep.mubr.msk.f32.mxu1 %vm61_vm0, %v44_v43 }
  0x20   :  { %2272 = vmatmul.mubr.msk.f32.gmra.mrb[6].mxu0 %vm61_vm0, %v45_v44 }
  0x21   :  { %2300 = vmatmul.mubr.msk.f32.gmra.mrb[6].mxu1 %vm61_vm0, %v45_v44  ;;  %2310 = vmatprep.mubr.msk.f32.mxu0 %vm2760_vm1, %v2761_v45 }
  0x22   :  { %2321 = vmatprep.mubr.msk.f32.mxu1 %vm2760_vm1, %v2761_v45 }
  0x24   :  { %2311 = vmatmul.mubr.f32.vlgmr.msra.gmra.mrb[8].mxu0 %v2761_v45 }
  0x25   :  { %2322 = vmatmul.mubr.f32.vlgmr.msra.gmra.mrb[8].mxu1 %v2761_v45  ;;  %2524 = vmatpush3.bf16.msra.mxu0 %v2901_v30 }
  0x26   :  { %2525 = vmatprep.subr.bf16.mxu0 %v2759_v31  ;;  %2530 = vmatpush3.bf16.msra.mxu1 %v2908_v33 }
  0x27   :  { %2332 = vmatprep.mubr.msk.f32.mxu0 %vm2760_vm1, %v2761_v45  ;;  %2531 = vmatprep.subr.bf16.mxu1 %v2759_v31 }
  0x28   :  { %2343 = vmatprep.mubr.msk.f32.mxu1 %vm2760_vm1, %v2761_v45 }
  0x29   :  { %2527 = vmatpush3.bf16.msra.mxu0 %v2933_v40 }
  0x2a   :  { %2533 = vmatpush3.bf16.msra.mxu1 %v2937_v41  ;;  %2534 = vmatprep.subr.bf16.mxu0 %v2759_v31 }
  0x2b   :  { %2540 = vmatprep.subr.bf16.mxu1 %v2759_v31 }
  0xe7   :  { %v2264_v48 = vpop.f32.mrb[0].mxu0 }
  0xe8   :  { %v158_v49 = vadd.f32 %v2264_v48, %v2084_v46  ;;  %v152_v50 = vpop.f32.mrb[1].mxu0  ;;  %v2292_v51 = vpop.f32.mrb[0].mxu1 }
  0xe9   :  { %v153_v52 = vadd.f32 %v2084_v46, %v152_v50  ;;  %v287_v53 = vadd.f32 %v2292_v51, %v2093_v47  ;;  %v281_v54 = vpop.f32.mrb[1].mxu1 }
  0xea   :  { %193 = vst.msk [vmem:[#allocation2 + $0x8] sm:$0xff] %vm191_vm2, %v158_v49  ;;  %v282_v55 = vadd.f32 %v2093_v47, %v281_v54 }
  0xeb   :  { %192 = vst.msk [vmem:[#allocation2] sm:$0xff] %vm191_vm2, %v153_v52  ;;  %v2267_v56 = vpop.f32.mrb[2].mxu0  ;;  %321 = vst.msk [vmem:[#allocation3 + $0x8] sm:$0xff] %vm191_vm2, %v287_v53 }
  0xec   :  { %v168_v57 = vadd.f32 %v2267_v56, %v2084_v46  ;;  %v162_v58 = vpop.f32.mrb[3].mxu0  ;;  %320 = vst.msk [vmem:[#allocation3] sm:$0xff] %vm191_vm2, %v282_v55  ;;  %v2295_v59 = vpop.f32.mrb[2].mxu1 }
  0xed   :  { %v163_v60 = vadd.f32 %v2084_v46, %v162_v58  ;;  %v297_v61 = vadd.f32 %v2295_v59, %v2093_v47  ;;  %v291_v62 = vpop.f32.mrb[3].mxu1 }
  0xee   :  { %195 = vst.msk [vmem:[#allocation2 + $0x18] sm:$0xff] %vm191_vm2, %v168_v57  ;;  %v292_v63 = vadd.f32 %v2093_v47, %v291_v62 }
  0xef   :  { %194 = vst.msk [vmem:[#allocation2 + $0x10] sm:$0xff] %vm191_vm2, %v163_v60  ;;  %v2270_v0 = vpop.f32.mrb[4].mxu0  ;;  %323 = vst.msk [vmem:[#allocation3 + $0x18] sm:$0xff] %vm191_vm2, %v297_v61 }
  0xf0   :  { %v178_v1 = vadd.f32 %v2270_v0, %v2084_v46  ;;  %v172_v2 = vpop.f32.mrb[5].mxu0  ;;  %322 = vst.msk [vmem:[#allocation3 + $0x10] sm:$0xff] %vm191_vm2, %v292_v63  ;;  %v2298_v3 = vpop.f32.mrb[4].mxu1 }
  0xf1   :  { %v173_v4 = vadd.f32 %v2084_v46, %v172_v2  ;;  %v307_v5 = vadd.f32 %v2298_v3, %v2093_v47  ;;  %v301_v6 = vpop.f32.mrb[5].mxu1 }
  0xf2   :  { %197 = vst.msk [vmem:[#allocation2 + $0x28] sm:$0xff] %vm191_vm2, %v178_v1  ;;  %v302_v7 = vadd.f32 %v2093_v47, %v301_v6  ;;  %v338_v24 = vld [vmem:[#allocation2] sm:$0xff]  ;;  %v561_v6 = vld [vmem:[#allocation2 + $0x8] sm:$0xff] }
  0xf3   :  { %196 = vst.msk [vmem:[#allocation2 + $0x20] sm:$0xff] %vm191_vm2, %v173_v4  ;;  %325 = vst.msk [vmem:[#allocation3 + $0x28] sm:$0xff] %vm191_vm2, %v307_v5  ;;  %v2273_v8 = vpop.f32.mrb[6].mxu0 }
  0xf4   :  { %v188_v9 = vadd.f32 %v2273_v8, %v2084_v46  ;;  %324 = vst.msk [vmem:[#allocation3 + $0x20] sm:$0xff] %vm191_vm2, %v302_v7  ;;  %v182_v10 = vpop.f32.mrb[7].mxu0  ;;  %v2301_v11 = vpop.f32.mrb[6].mxu1 }
  0xf5   :  { %v183_v12 = vadd.f32 %v2084_v46, %v182_v10  ;;  %v317_v13 = vadd.f32 %v2301_v11, %v2093_v47  ;;  %v311_v15 = vpop.f32.mrb[7].mxu1 }
  0xf6   :  { %199 = vst.msk [vmem:[#allocation2 + $0x38] sm:$0xff] %vm191_vm2, %v188_v9  ;;  %v312_v16 = vadd.f32 %v2093_v47, %v311_v15 }
  0xf7   :  { %198 = vst.msk [vmem:[#allocation2 + $0x30] sm:$0xff] %vm191_vm2, %v183_v12  ;;  %327 = vst.msk [vmem:[#allocation3 + $0x38] sm:$0xff] %vm191_vm2, %v317_v13  ;;  %v415_v17 = vpop.f32.mrb[8].mxu0 }
  0xf8   :  { %v416_v19 = vadd.f32 %v3002_v14, %v415_v17  ;;  %326 = vst.msk [vmem:[#allocation3 + $0x30] sm:$0xff] %vm191_vm2, %v312_v16  ;;  %v2312_v20 = vpop.f32.mrb[9].mxu0  ;;  %v519_v21 = vpop.f32.mrb[8].mxu1 }
  0xf9   :  { %v2323_v22 = vpop.f32.mrb[9].mxu1  ;;  %v520_v23 = vadd.f32 %v3010_v18, %v519_v21 }
  0xfa   :  { %427 = vrot.lane.b32.xlu0 %v416_v19, %s2762_s4  ;;  %v419_v25 = vadd.f32 %v416_v19, %v338_v24 }
  0xfc   :  { %v2103_v27 = vmul.f32 -1.442695, %v419_v25 }
  0xfe   :  { %531 = vrot.lane.b32.xlu0 %v520_v23, %s2762_s4  ;;  %v446_v26 = vld [vmem:[#allocation3 + $0x38] sm:$0xff]  ;;  %2615 = vpow2.f32 %v2103_v27 }
  0xff   :  { %v523_v28 = vadd.f32 %v520_v23, %v446_v26  ;;  %v661_v8 = vld [vmem:[#allocation3 + $0x30] sm:$0xff] }
 0x101   :  { %v2105_v29 = vmul.f32 -1.442695, %v523_v28 }
 0x103   :  { %2617 = vpow2.f32 %v2105_v29 }
 0x108   :  { %v2616_v32 = vpop.eup %2615 }
 0x109   :  { %v423_v34 = vadd.f32 1.0, %v2616_v32 }
 0x10b   :  { %2619 = vrcp.f32 %v423_v34 }
 0x10d   :  { %v2618_v35 = vpop.eup %2617 }
 0x10e   :  { %v527_v36 = vadd.f32 1.0, %v2618_v35 }
 0x110   :  { %2621 = vrcp.f32 %v527_v36 }
 0x115   :  { %v2620_v37 = vpop.eup %2619 }
 0x116   :  { %v437_v52 = vsub.f32 1.0, %v2620_v37  ;;  %v443_v54 = vmul.f32 0.0, %v2620_v37 }
 0x11a   :  { %v2622_v42 = vpop.eup %2621 }
 0x11b   :  { %v541_v57 = vsub.f32 1.0, %v2622_v42  ;;  %v547_v59 = vmul.f32 0.0, %v2622_v42 }
 0x16c   :  { %v428_v38 = vpop.permute.xlu0 %427 }
 0x16d   :  { %v430_v39 = vmul.f32 %v2620_v37, %v428_v38 }
 0x16f   :  { %432 = vrot.lane.b32.xlu1 %v430_v39, %s2762_s4 }
 0x170   :  { %v532_v43 = vpop.permute.xlu0 %531 }
 0x171   :  { %v534_v44 = vmul.f32 %v2622_v42, %v532_v43 }
 0x173   :  { %536 = vrot.lane.b32.xlu1 %v534_v44, %s2762_s4 }
 0x1e1   :  { %v433_v46 = vpop.permute.xlu1 %432 }
 0x1e2   :  { %v435_v47 = vadd.f32 %v433_v46, %v338_v24 }
 0x1e4   :  { %2623 = vtanh.f32 %v435_v47 }
 0x1e5   :  { %v537_v48 = vpop.permute.xlu1 %536 }
 0x1e6   :  { %v539_v49 = vadd.f32 %v537_v48, %v446_v26 }
 0x1e8   :  { %2625 = vtanh.f32 %v539_v49 }
 0x1ee   :  { %v2624_v50 = vpop.eup %2623 }
 0x1ef   :  { %439 = vrot.lane.b32.xlu0 %v2624_v50, %s2763_s8 }
 0x1f2   :  { %v2626_v51 = vpop.eup %2625 }
 0x1f3   :  { %543 = vrot.lane.b32.xlu1 %v2626_v51, %s2763_s8 }
 0x261   :  { %v440_v53 = vpop.permute.xlu0 %439 }
 0x262   :  { %v442_v55 = vmul.f32 %v440_v53, %v437_v52 }
 0x264   :  { %v3021_v56 = vadd.f32 %v443_v54, %v442_v55  ;;  %v773_v54 = vld [vmem:[#allocation2 + $0x10] sm:$0xff] }
 0x265   :  { %v544_v58 = vpop.permute.xlu1 %543 }
 0x266   :  { %v546_v60 = vmul.f32 %v544_v58, %v541_v57  ;;  %550 = vrot.lane.b32.xlu0 %v3021_v56, %s2763_s8 }
 0x268   :  { %v3025_v61 = vadd.f32 %v547_v59, %v546_v60 }
 0x26a   :  { %555 = vrot.lane.b32.xlu1 %v3025_v61, %s2763_s8 }
 0x2d8   :  { %v551_v62 = vpop.permute.xlu0 %550 }
 0x2d9   :  { %553 = vst.msk [vmem:[#allocation4] sm:$0xff] %vm345_vm3, %v551_v62  ;;  %2333 = vmatmul.mubr.msk.f32.vlgmr.msra.gmra.mrb[10].mxu0 %vm345_vm3, %v551_v62 }
 0x2da   :  { %2536 = vmatpush3.bf16.msra.mxu0 %v2901_v30  ;;  %2354 = vmatprep.mubr.msk.f32.mxu0 %vm2760_vm1, %v2761_v45 }
 0x2db   :  { %2537 = vmatprep.subr.bf16.mxu0 %v2759_v31 }
 0x2dc   :  { %v556_v63 = vpop.permute.xlu1 %555 }
 0x2dd   :  { %559 = vst.msk [vmem:[#allocation6 + $0x38] sm:$0xff] %vm345_vm3, %v556_v63  ;;  %2344 = vmatmul.mubr.msk.f32.vlgmr.msra.gmra.mrb[10].mxu1 %vm345_vm3, %v556_v63 }
 0x2de   :  { %2539 = vmatpush3.bf16.msra.mxu0 %v2933_v40  ;;  %2542 = vmatpush3.bf16.msra.mxu1 %v2908_v33 }
 0x2df   :  { %2543 = vmatprep.subr.bf16.mxu1 %v2759_v31  ;;  %2365 = vmatprep.mubr.msk.f32.mxu1 %vm2760_vm1, %v2761_v45 }
 0x2e0   :  { %2546 = vmatprep.subr.bf16.mxu0 %v2759_v31 }
 0x2e2   :  { %2545 = vmatpush3.bf16.msra.mxu1 %v2937_v41 }
 0x2e3   :  { %2552 = vmatprep.subr.bf16.mxu1 %v2759_v31 }
 0x3ac   :  { %v630_v0 = vpop.f32.mrb[10].mxu0 }
 0x3ad   :  { %v631_v1 = vadd.f32 %v3002_v14, %v630_v0  ;;  %v2334_v2 = vpop.f32.mrb[11].mxu0 }
 0x3af   :  { %642 = vrot.lane.b32.xlu0 %v631_v1, %s2762_s4  ;;  %v634_v7 = vadd.f32 %v631_v1, %v561_v6 }
 0x3b0   :  { %v730_v3 = vpop.f32.mrb[10].mxu1 }
 0x3b1   :  { %v731_v4 = vadd.f32 %v3010_v18, %v730_v3  ;;  %v2345_v5 = vpop.f32.mrb[11].mxu1  ;;  %v2107_v9 = vmul.f32 -1.442695, %v634_v7 }
 0x3b3   :  { %742 = vrot.lane.b32.xlu1 %v731_v4, %s2762_s4  ;;  %v734_v10 = vadd.f32 %v731_v4, %v661_v8  ;;  %2627 = vpow2.f32 %v2107_v9 }
 0x3b5   :  { %v2109_v11 = vmul.f32 -1.442695, %v734_v10 }
 0x3b7   :  { %2629 = vpow2.f32 %v2109_v11 }
 0x3bd   :  { %v2628_v12 = vpop.eup %2627 }
 0x3be   :  { %v638_v13 = vadd.f32 1.0, %v2628_v12 }
 0x3c0   :  { %2631 = vrcp.f32 %v638_v13 }
 0x3c1   :  { %v2630_v15 = vpop.eup %2629 }
 0x3c2   :  { %v738_v16 = vadd.f32 1.0, %v2630_v15 }
 0x3c4   :  { %2633 = vrcp.f32 %v738_v16 }
 0x3ca   :  { %v2632_v17 = vpop.eup %2631 }
 0x3cb   :  { %v652_v32 = vsub.f32 1.0, %v2632_v17  ;;  %v658_v35 = vmul.f32 %v2632_v17, %v3021_v56  ;;  %v873_v56 = vld [vmem:[#allocation3 + $0x28] sm:$0xff] }
 0x3ce   :  { %v2634_v21 = vpop.eup %2633 }
 0x3cf   :  { %v752_v38 = vsub.f32 1.0, %v2634_v21  ;;  %v758_v42 = vmul.f32 %v2634_v21, %v3025_v61 }
 0x421   :  { %v643_v19 = vpop.permute.xlu0 %642 }
 0x422   :  { %v645_v20 = vmul.f32 %v2632_v17, %v643_v19 }
 0x424   :  { %647 = vrot.lane.b32.xlu0 %v645_v20, %s2762_s4 }
 0x425   :  { %v743_v22 = vpop.permute.xlu1 %742 }
 0x426   :  { %v745_v23 = vmul.f32 %v2634_v21, %v743_v22 }
 0x428   :  { %747 = vrot.lane.b32.xlu1 %v745_v23, %s2762_s4 }
 0x496   :  { %v648_v24 = vpop.permute.xlu0 %647 }
 0x497   :  { %v650_v25 = vadd.f32 %v648_v24, %v561_v6 }
 0x499   :  { %2635 = vtanh.f32 %v650_v25 }
 0x49a   :  { %v748_v26 = vpop.permute.xlu1 %747 }
 0x49b   :  { %v750_v27 = vadd.f32 %v748_v26, %v661_v8 }
 0x49d   :  { %2637 = vtanh.f32 %v750_v27 }
 0x4a3   :  { %v2636_v28 = vpop.eup %2635 }
 0x4a4   :  { %654 = vrot.lane.b32.xlu0 %v2636_v28, %s2763_s8 }
 0x4a7   :  { %v2638_v29 = vpop.eup %2637 }
 0x4a8   :  { %754 = vrot.lane.b32.xlu1 %v2638_v29, %s2763_s8 }
 0x516   :  { %v655_v34 = vpop.permute.xlu0 %654 }
 0x517   :  { %v657_v36 = vmul.f32 %v655_v34, %v652_v32 }
 0x519   :  { %v3054_v37 = vadd.f32 %v658_v35, %v657_v36  ;;  %v985_v35 = vld [vmem:[#allocation2 + $0x18] sm:$0xff] }
 0x51a   :  { %v755_v39 = vpop.permute.xlu1 %754 }
 0x51b   :  { %v757_v43 = vmul.f32 %v755_v39, %v752_v38  ;;  %761 = vrot.lane.b32.xlu0 %v3054_v37, %s2763_s8 }
 0x51d   :  { %v3059_v44 = vadd.f32 %v758_v42, %v757_v43 }
 0x51f   :  { %767 = vrot.lane.b32.xlu1 %v3059_v44, %s2763_s8 }
 0x58d   :  { %v762_v46 = vpop.permute.xlu0 %761 }
 0x58e   :  { %765 = vst.msk [vmem:[#allocation4 + $0x8] sm:$0xff] %vm345_vm3, %v762_v46  ;;  %2355 = vmatmul.mubr.msk.f32.vlgmr.msra.gmra.mrb[12].mxu0 %vm345_vm3, %v762_v46 }
 0x58f   :  { %2548 = vmatpush3.bf16.msra.mxu0 %v2901_v30  ;;  %2376 = vmatprep.mubr.msk.f32.mxu0 %vm2760_vm1, %v2761_v45 }
 0x590   :  { %2549 = vmatprep.subr.bf16.mxu0 %v2759_v31 }
 0x591   :  { %v768_v47 = vpop.permute.xlu1 %767 }
 0x592   :  { %771 = vst.msk [vmem:[#allocation6 + $0x30] sm:$0xff] %vm345_vm3, %v768_v47  ;;  %2366 = vmatmul.mubr.msk.f32.vlgmr.msra.gmra.mrb[12].mxu1 %vm345_vm3, %v768_v47 }
 0x593   :  { %2551 = vmatpush3.bf16.msra.mxu0 %v2933_v40  ;;  %2554 = vmatpush3.bf16.msra.mxu1 %v2908_v33 }
 0x594   :  { %2555 = vmatprep.subr.bf16.mxu1 %v2759_v31  ;;  %2387 = vmatprep.mubr.msk.f32.mxu1 %vm2760_vm1, %v2761_v45 }
 0x595   :  { %2558 = vmatprep.subr.bf16.mxu0 %v2759_v31 }
 0x597   :  { %2557 = vmatpush3.bf16.msra.mxu1 %v2937_v41 }
 0x598   :  { %2564 = vmatprep.subr.bf16.mxu1 %v2759_v31 }
 0x661   :  { %v842_v48 = vpop.f32.mrb[12].mxu0 }
 0x662   :  { %v843_v49 = vadd.f32 %v3002_v14, %v842_v48  ;;  %v2356_v50 = vpop.f32.mrb[13].mxu0 }
 0x664   :  { %854 = vrot.lane.b32.xlu0 %v843_v49, %s2762_s4  ;;  %v846_v55 = vadd.f32 %v843_v49, %v773_v54 }
 0x665   :  { %v942_v51 = vpop.f32.mrb[12].mxu1 }
 0x666   :  { %v943_v52 = vadd.f32 %v3010_v18, %v942_v51  ;;  %v2367_v53 = vpop.f32.mrb[13].mxu1  ;;  %v2111_v57 = vmul.f32 -1.442695, %v846_v55 }
 0x668   :  { %954 = vrot.lane.b32.xlu1 %v943_v52, %s2762_s4  ;;  %v946_v58 = vadd.f32 %v943_v52, %v873_v56  ;;  %2639 = vpow2.f32 %v2111_v57 }
 0x66a   :  { %v2113_v59 = vmul.f32 -1.442695, %v946_v58 }
 0x66c   :  { %2641 = vpow2.f32 %v2113_v59 }
 0x672   :  { %v2640_v60 = vpop.eup %2639 }
 0x673   :  { %v850_v61 = vadd.f32 1.0, %v2640_v60 }
 0x675   :  { %2643 = vrcp.f32 %v850_v61 }
 0x676   :  { %v2642_v62 = vpop.eup %2641 }
 0x677   :  { %v950_v63 = vadd.f32 1.0, %v2642_v62 }
 0x679   :  { %2645 = vrcp.f32 %v950_v63 }
 0x67f   :  { %v2644_v0 = vpop.eup %2643 }
 0x680   :  { %v864_v12 = vsub.f32 1.0, %v2644_v0  ;;  %v870_v15 = vmul.f32 %v2644_v0, %v3054_v37  ;;  %v1085_v37 = vld [vmem:[#allocation3 + $0x20] sm:$0xff] }
 0x683   :  { %v2646_v3 = vpop.eup %2645 }
 0x684   :  { %v964_v19 = vsub.f32 1.0, %v2646_v3  ;;  %v970_v21 = vmul.f32 %v2646_v3, %v3059_v44 }
 0x6d6   :  { %v855_v1 = vpop.permute.xlu0 %854 }
 0x6d7   :  { %v857_v2 = vmul.f32 %v2644_v0, %v855_v1 }
 0x6d9   :  { %859 = vrot.lane.b32.xlu0 %v857_v2, %s2762_s4 }
 0x6da   :  { %v955_v4 = vpop.permute.xlu1 %954 }
 0x6db   :  { %v957_v5 = vmul.f32 %v2646_v3, %v955_v4 }
 0x6dd   :  { %959 = vrot.lane.b32.xlu1 %v957_v5, %s2762_s4 }
 0x74b   :  { %v860_v6 = vpop.permute.xlu0 %859 }
 0x74c   :  { %v862_v7 = vadd.f32 %v860_v6, %v773_v54 }
 0x74e   :  { %2647 = vtanh.f32 %v862_v7 }
 0x74f   :  { %v960_v8 = vpop.permute.xlu1 %959 }
 0x750   :  { %v962_v9 = vadd.f32 %v960_v8, %v873_v56 }
 0x752   :  { %2649 = vtanh.f32 %v962_v9 }
 0x758   :  { %v2648_v10 = vpop.eup %2647 }
 0x759   :  { %866 = vrot.lane.b32.xlu0 %v2648_v10, %s2763_s8 }
 0x75c   :  { %v2650_v11 = vpop.eup %2649 }
 0x75d   :  { %966 = vrot.lane.b32.xlu1 %v2650_v11, %s2763_s8 }
 0x7cb   :  { %v867_v13 = vpop.permute.xlu0 %866 }
 0x7cc   :  { %v869_v16 = vmul.f32 %v867_v13, %v864_v12 }
 0x7ce   :  { %v3088_v17 = vadd.f32 %v870_v15, %v869_v16  ;;  %v1197_v15 = vld [vmem:[#allocation2 + $0x20] sm:$0xff] }
 0x7cf   :  { %v967_v20 = vpop.permute.xlu1 %966 }
 0x7d0   :  { %v969_v22 = vmul.f32 %v967_v20, %v964_v19  ;;  %973 = vrot.lane.b32.xlu0 %v3088_v17, %s2763_s8 }
 0x7d2   :  { %v3093_v23 = vadd.f32 %v970_v21, %v969_v22 }
 0x7d4   :  { %979 = vrot.lane.b32.xlu1 %v3093_v23, %s2763_s8 }
 0x842   :  { %v974_v24 = vpop.permute.xlu0 %973 }
 0x843   :  { %977 = vst.msk [vmem:[#allocation4 + $0x10] sm:$0xff] %vm345_vm3, %v974_v24  ;;  %2377 = vmatmul.mubr.msk.f32.vlgmr.msra.gmra.mrb[14].mxu0 %vm345_vm3, %v974_v24 }
 0x844   :  { %2560 = vmatpush3.bf16.msra.mxu0 %v2901_v30  ;;  %2398 = vmatprep.mubr.msk.f32.mxu0 %vm2760_vm1, %v2761_v45 }
 0x845   :  { %2561 = vmatprep.subr.bf16.mxu0 %v2759_v31 }
 0x846   :  { %v980_v25 = vpop.permute.xlu1 %979 }
 0x847   :  { %983 = vst.msk [vmem:[#allocation6 + $0x28] sm:$0xff] %vm345_vm3, %v980_v25  ;;  %2388 = vmatmul.mubr.msk.f32.vlgmr.msra.gmra.mrb[14].mxu1 %vm345_vm3, %v980_v25 }
 0x848   :  { %2563 = vmatpush3.bf16.msra.mxu0 %v2933_v40  ;;  %2566 = vmatpush3.bf16.msra.mxu1 %v2908_v33 }
 0x849   :  { %2567 = vmatprep.subr.bf16.mxu1 %v2759_v31  ;;  %2409 = vmatprep.mubr.msk.f32.mxu1 %vm2760_vm1, %v2761_v45 }
 0x84a   :  { %2570 = vmatprep.subr.bf16.mxu0 %v2759_v31 }
 0x84c   :  { %2569 = vmatpush3.bf16.msra.mxu1 %v2937_v41 }
 0x84d   :  { %2576 = vmatprep.subr.bf16.mxu1 %v2759_v31 }
 0x916   :  { %v1054_v26 = vpop.f32.mrb[14].mxu0 }
 0x917   :  { %v1055_v27 = vadd.f32 %v3002_v14, %v1054_v26  ;;  %v2378_v28 = vpop.f32.mrb[15].mxu0 }
 0x919   :  { %1066 = vrot.lane.b32.xlu0 %v1055_v27, %s2762_s4  ;;  %v1058_v36 = vadd.f32 %v1055_v27, %v985_v35 }
 0x91a   :  { %v1154_v29 = vpop.f32.mrb[14].mxu1 }
 0x91b   :  { %v1155_v32 = vadd.f32 %v3010_v18, %v1154_v29  ;;  %v2389_v34 = vpop.f32.mrb[15].mxu1  ;;  %v2115_v38 = vmul.f32 -1.442695, %v1058_v36 }
 0x91d   :  { %1166 = vrot.lane.b32.xlu1 %v1155_v32, %s2762_s4  ;;  %v1158_v39 = vadd.f32 %v1155_v32, %v1085_v37  ;;  %2651 = vpow2.f32 %v2115_v38 }
 0x91f   :  { %v2117_v42 = vmul.f32 -1.442695, %v1158_v39 }
 0x921   :  { %2653 = vpow2.f32 %v2117_v42 }
 0x927   :  { %v2652_v43 = vpop.eup %2651 }
 0x928   :  { %v1062_v44 = vadd.f32 1.0, %v2652_v43 }
 0x92a   :  { %2655 = vrcp.f32 %v1062_v44 }
 0x92b   :  { %v2654_v46 = vpop.eup %2653 }
 0x92c   :  { %v1162_v47 = vadd.f32 1.0, %v2654_v46 }
 0x92e   :  { %2657 = vrcp.f32 %v1162_v47 }
 0x934   :  { %v2656_v48 = vpop.eup %2655 }
 0x935   :  { %v1076_v60 = vsub.f32 1.0, %v2656_v48  ;;  %v1082_v62 = vmul.f32 %v2656_v48, %v3088_v17  ;;  %v1297_v17 = vld [vmem:[#allocation3 + $0x18] sm:$0xff] }
 0x938   :  { %v2658_v51 = vpop.eup %2657 }
 0x939   :  { %v1176_v1 = vsub.f32 1.0, %v2658_v51  ;;  %v1182_v3 = vmul.f32 %v2658_v51, %v3093_v23 }
 0x98b   :  { %v1067_v49 = vpop.permute.xlu0 %1066 }
 0x98c   :  { %v1069_v50 = vmul.f32 %v2656_v48, %v1067_v49 }
 0x98e   :  { %1071 = vrot.lane.b32.xlu0 %v1069_v50, %s2762_s4 }
 0x98f   :  { %v1167_v52 = vpop.permute.xlu1 %1166 }
 0x990   :  { %v1169_v53 = vmul.f32 %v2658_v51, %v1167_v52 }
 0x992   :  { %1171 = vrot.lane.b32.xlu1 %v1169_v53, %s2762_s4 }
 0xa00   :  { %v1072_v54 = vpop.permute.xlu0 %1071 }
 0xa01   :  { %v1074_v55 = vadd.f32 %v1072_v54, %v985_v35 }
 0xa03   :  { %2659 = vtanh.f32 %v1074_v55 }
 0xa04   :  { %v1172_v56 = vpop.permute.xlu1 %1171 }
 0xa05   :  { %v1174_v57 = vadd.f32 %v1172_v56, %v1085_v37 }
 0xa07   :  { %2661 = vtanh.f32 %v1174_v57 }
 0xa0d   :  { %v2660_v58 = vpop.eup %2659 }
 0xa0e   :  { %1078 = vrot.lane.b32.xlu0 %v2660_v58, %s2763_s8 }
 0xa11   :  { %v2662_v59 = vpop.eup %2661 }
 0xa12   :  { %1178 = vrot.lane.b32.xlu1 %v2662_v59, %s2763_s8 }
 0xa80   :  { %v1079_v61 = vpop.permute.xlu0 %1078 }
 0xa81   :  { %v1081_v63 = vmul.f32 %v1079_v61, %v1076_v60 }
 0xa83   :  { %v3122_v0 = vadd.f32 %v1082_v62, %v1081_v63  ;;  %v1409_v62 = vld [vmem:[#allocation2 + $0x28] sm:$0xff] }
 0xa84   :  { %v1179_v2 = vpop.permute.xlu1 %1178 }
 0xa85   :  { %v1181_v4 = vmul.f32 %v1179_v2, %v1176_v1  ;;  %1185 = vrot.lane.b32.xlu0 %v3122_v0, %s2763_s8 }
 0xa87   :  { %v3127_v5 = vadd.f32 %v1182_v3, %v1181_v4 }
 0xa89   :  { %1191 = vrot.lane.b32.xlu1 %v3127_v5, %s2763_s8 }
 0xaf7   :  { %v1186_v6 = vpop.permute.xlu0 %1185 }
 0xaf8   :  { %1189 = vst.msk [vmem:[#allocation4 + $0x18] sm:$0xff] %vm345_vm3, %v1186_v6  ;;  %2399 = vmatmul.mubr.msk.f32.vlgmr.msra.gmra.mrb[16].mxu0 %vm345_vm3, %v1186_v6 }
 0xaf9   :  { %2572 = vmatpush3.bf16.msra.mxu0 %v2901_v30  ;;  %2420 = vmatprep.mubr.msk.f32.mxu0 %vm2760_vm1, %v2761_v45 }
 0xafa   :  { %2573 = vmatprep.subr.bf16.mxu0 %v2759_v31 }
 0xafb   :  { %v1192_v7 = vpop.permute.xlu1 %1191 }
 0xafc   :  { %1195 = vst.msk [vmem:[#allocation6 + $0x20] sm:$0xff] %vm345_vm3, %v1192_v7  ;;  %2410 = vmatmul.mubr.msk.f32.vlgmr.msra.gmra.mrb[16].mxu1 %vm345_vm3, %v1192_v7 }
 0xafd   :  { %2575 = vmatpush3.bf16.msra.mxu0 %v2933_v40  ;;  %2578 = vmatpush3.bf16.msra.mxu1 %v2908_v33 }
 0xafe   :  { %2579 = vmatprep.subr.bf16.mxu1 %v2759_v31  ;;  %2431 = vmatprep.mubr.msk.f32.mxu1 %vm2760_vm1, %v2761_v45 }
 0xaff   :  { %2582 = vmatprep.subr.bf16.mxu0 %v2759_v31 }
 0xb01   :  { %2581 = vmatpush3.bf16.msra.mxu1 %v2937_v41 }
 0xb02   :  { %2588 = vmatprep.subr.bf16.mxu1 %v2759_v31 }
 0xbcb   :  { %v1266_v8 = vpop.f32.mrb[16].mxu0 }
 0xbcc   :  { %v1267_v9 = vadd.f32 %v3002_v14, %v1266_v8  ;;  %v2400_v10 = vpop.f32.mrb[17].mxu0 }
 0xbce   :  { %1278 = vrot.lane.b32.xlu0 %v1267_v9, %s2762_s4  ;;  %v1270_v16 = vadd.f32 %v1267_v9, %v1197_v15 }
 0xbcf   :  { %v1366_v11 = vpop.f32.mrb[16].mxu1 }
 0xbd0   :  { %v1367_v12 = vadd.f32 %v3010_v18, %v1366_v11  ;;  %v2411_v13 = vpop.f32.mrb[17].mxu1  ;;  %v2119_v19 = vmul.f32 -1.442695, %v1270_v16 }
 0xbd2   :  { %1378 = vrot.lane.b32.xlu1 %v1367_v12, %s2762_s4  ;;  %v1370_v20 = vadd.f32 %v1367_v12, %v1297_v17  ;;  %2663 = vpow2.f32 %v2119_v19 }
 0xbd4   :  { %v2121_v21 = vmul.f32 -1.442695, %v1370_v20 }
 0xbd6   :  { %2665 = vpow2.f32 %v2121_v21 }
 0xbdc   :  { %v2664_v22 = vpop.eup %2663 }
 0xbdd   :  { %v1274_v23 = vadd.f32 1.0, %v2664_v22 }
 0xbdf   :  { %2667 = vrcp.f32 %v1274_v23 }
 0xbe0   :  { %v2666_v24 = vpop.eup %2665 }
 0xbe1   :  { %v1374_v25 = vadd.f32 1.0, %v2666_v24 }
 0xbe3   :  { %2669 = vrcp.f32 %v1374_v25 }
 0xbe9   :  { %v2668_v26 = vpop.eup %2667 }
 0xbea   :  { %v1288_v43 = vsub.f32 1.0, %v2668_v26  ;;  %v1294_v46 = vmul.f32 %v2668_v26, %v3122_v0  ;;  %v1509_v0 = vld [vmem:[#allocation3 + $0x10] sm:$0xff] }
 0xbed   :  { %v2670_v29 = vpop.eup %2669 }
 0xbee   :  { %v1388_v49 = vsub.f32 1.0, %v2670_v29  ;;  %v1394_v51 = vmul.f32 %v2670_v29, %v3127_v5 }
 0xc40   :  { %v1279_v27 = vpop.permute.xlu0 %1278 }
 0xc41   :  { %v1281_v28 = vmul.f32 %v2668_v26, %v1279_v27 }
 0xc43   :  { %1283 = vrot.lane.b32.xlu0 %v1281_v28, %s2762_s4 }
 0xc44   :  { %v1379_v32 = vpop.permute.xlu1 %1378 }
 0xc45   :  { %v1381_v34 = vmul.f32 %v2670_v29, %v1379_v32 }
 0xc47   :  { %1383 = vrot.lane.b32.xlu1 %v1381_v34, %s2762_s4 }
 0xcb5   :  { %v1284_v35 = vpop.permute.xlu0 %1283 }
 0xcb6   :  { %v1286_v36 = vadd.f32 %v1284_v35, %v1197_v15 }
 0xcb8   :  { %2671 = vtanh.f32 %v1286_v36 }
 0xcb9   :  { %v1384_v37 = vpop.permute.xlu1 %1383 }
 0xcba   :  { %v1386_v38 = vadd.f32 %v1384_v37, %v1297_v17 }
 0xcbc   :  { %2673 = vtanh.f32 %v1386_v38 }
 0xcc2   :  { %v2672_v39 = vpop.eup %2671 }
 0xcc3   :  { %1290 = vrot.lane.b32.xlu0 %v2672_v39, %s2763_s8 }
 0xcc6   :  { %v2674_v42 = vpop.eup %2673 }
 0xcc7   :  { %1390 = vrot.lane.b32.xlu1 %v2674_v42, %s2763_s8 }
 0xd35   :  { %v1291_v44 = vpop.permute.xlu0 %1290 }
 0xd36   :  { %v1293_v47 = vmul.f32 %v1291_v44, %v1288_v43 }
 0xd38   :  { %v3156_v48 = vadd.f32 %v1294_v46, %v1293_v47 }
 0xd39   :  { %v1391_v50 = vpop.permute.xlu1 %1390 }
 0xd3a   :  { %v1393_v52 = vmul.f32 %v1391_v50, %v1388_v49  ;;  %1397 = vrot.lane.b32.xlu0 %v3156_v48, %s2763_s8 }
 0xd3c   :  { %v3161_v53 = vadd.f32 %v1394_v51, %v1393_v52 }
 0xd3e   :  { %1403 = vrot.lane.b32.xlu1 %v3161_v53, %s2763_s8 }
 0xdac   :  { %v1398_v54 = vpop.permute.xlu0 %1397 }
 0xdad   :  { %1401 = vst.msk [vmem:[#allocation4 + $0x20] sm:$0xff] %vm345_vm3, %v1398_v54  ;;  %2421 = vmatmul.mubr.msk.f32.vlgmr.msra.gmra.mrb[18].mxu0 %vm345_vm3, %v1398_v54 }
 0xdae   :  { %2584 = vmatpush3.bf16.msra.mxu0 %v2901_v30  ;;  %2442 = vmatprep.mubr.msk.f32.mxu0 %vm2760_vm1, %v2761_v45 }
 0xdaf   :  { %2585 = vmatprep.subr.bf16.mxu0 %v2759_v31 }
 0xdb0   :  { %v1404_v55 = vpop.permute.xlu1 %1403 }
 0xdb1   :  { %1407 = vst.msk [vmem:[#allocation6 + $0x18] sm:$0xff] %vm345_vm3, %v1404_v55  ;;  %2432 = vmatmul.mubr.msk.f32.vlgmr.msra.gmra.mrb[18].mxu1 %vm345_vm3, %v1404_v55 }
 0xdb2   :  { %2587 = vmatpush3.bf16.msra.mxu0 %v2933_v40  ;;  %2590 = vmatpush3.bf16.msra.mxu1 %v2908_v33 }
 0xdb3   :  { %2591 = vmatprep.subr.bf16.mxu1 %v2759_v31  ;;  %2453 = vmatprep.mubr.msk.f32.mxu1 %vm2760_vm1, %v2761_v45 }
 0xdb4   :  { %2594 = vmatprep.subr.bf16.mxu0 %v2759_v31 }
 0xdb6   :  { %2593 = vmatpush3.bf16.msra.mxu1 %v2937_v41 }
 0xdb7   :  { %2600 = vmatprep.subr.bf16.mxu1 %v2759_v31 }
 0xe80   :  { %v1478_v56 = vpop.f32.mrb[18].mxu0 }
 0xe81   :  { %v1479_v57 = vadd.f32 %v3002_v14, %v1478_v56  ;;  %v2422_v58 = vpop.f32.mrb[19].mxu0 }
 0xe83   :  { %1490 = vrot.lane.b32.xlu0 %v1479_v57, %s2762_s4  ;;  %v1482_v63 = vadd.f32 %v1479_v57, %v1409_v62 }
 0xe84   :  { %v1578_v59 = vpop.f32.mrb[18].mxu1 }
 0xe85   :  { %v1579_v60 = vadd.f32 %v3010_v18, %v1578_v59  ;;  %v2433_v61 = vpop.f32.mrb[19].mxu1  ;;  %v2123_v1 = vmul.f32 -1.442695, %v1482_v63 }
 0xe87   :  { %1590 = vrot.lane.b32.xlu1 %v1579_v60, %s2762_s4  ;;  %v1582_v2 = vadd.f32 %v1579_v60, %v1509_v0  ;;  %2675 = vpow2.f32 %v2123_v1 }
 0xe89   :  { %v2125_v3 = vmul.f32 -1.442695, %v1582_v2 }
 0xe8b   :  { %2677 = vpow2.f32 %v2125_v3 }
 0xe91   :  { %v2676_v4 = vpop.eup %2675 }
 0xe92   :  { %v1486_v5 = vadd.f32 1.0, %v2676_v4 }
 0xe94   :  { %2679 = vrcp.f32 %v1486_v5 }
 0xe95   :  { %v2678_v6 = vpop.eup %2677 }
 0xe96   :  { %v1586_v7 = vadd.f32 1.0, %v2678_v6 }
 0xe98   :  { %2681 = vrcp.f32 %v1586_v7 }
 0xe9e   :  { %v2680_v8 = vpop.eup %2679 }
 0xe9f   :  { %v1500_v22 = vsub.f32 1.0, %v2680_v8  ;;  %v1506_v24 = vmul.f32 %v2680_v8, %v3156_v48 }
 0xea2   :  { %v2682_v11 = vpop.eup %2681 }
 0xea3   :  { %v1600_v27 = vsub.f32 1.0, %v2682_v11  ;;  %v1606_v29 = vmul.f32 %v2682_v11, %v3161_v53 }
 0xef5   :  { %v1491_v9 = vpop.permute.xlu0 %1490 }
 0xef6   :  { %v1493_v10 = vmul.f32 %v2680_v8, %v1491_v9 }
 0xef8   :  { %1495 = vrot.lane.b32.xlu0 %v1493_v10, %s2762_s4 }
 0xef9   :  { %v1591_v12 = vpop.permute.xlu1 %1590 }
 0xefa   :  { %v1593_v13 = vmul.f32 %v2682_v11, %v1591_v12 }
 0xefc   :  { %1595 = vrot.lane.b32.xlu1 %v1593_v13, %s2762_s4 }
 0xf6a   :  { %v1496_v15 = vpop.permute.xlu0 %1495 }
 0xf6b   :  { %v1498_v16 = vadd.f32 %v1496_v15, %v1409_v62 }
 0xf6d   :  { %2683 = vtanh.f32 %v1498_v16 }
 0xf6e   :  { %v1596_v17 = vpop.permute.xlu1 %1595 }
 0xf6f   :  { %v1598_v19 = vadd.f32 %v1596_v17, %v1509_v0  ;;  %v1833_v17 = vld [vmem:[#allocation2 + $0x38] sm:$0xff] }
 0xf71   :  { %2685 = vtanh.f32 %v1598_v19 }
 0xf77   :  { %v2684_v20 = vpop.eup %2683 }
 0xf78   :  { %1502 = vrot.lane.b32.xlu0 %v2684_v20, %s2763_s8  ;;  %v1932_v20 = vld [vmem:[#allocation3] sm:$0xff] }
 0xf7b   :  { %v2686_v21 = vpop.eup %2685 }
 0xf7c   :  { %1602 = vrot.lane.b32.xlu1 %v2686_v21, %s2763_s8 }
 0xfea   :  { %v1503_v23 = vpop.permute.xlu0 %1502 }
 0xfeb   :  { %v1505_v25 = vmul.f32 %v1503_v23, %v1500_v22 }
 0xfed   :  { %v3190_v26 = vadd.f32 %v1506_v24, %v1505_v25 }
 0xfee   :  { %v1603_v28 = vpop.permute.xlu1 %1602 }
 0xfef   :  { %v1605_v32 = vmul.f32 %v1603_v28, %v1600_v27  ;;  %1609 = vrot.lane.b32.xlu0 %v3190_v26, %s2763_s8 }
 0xff1   :  { %v3195_v34 = vadd.f32 %v1606_v29, %v1605_v32 }
 0xff3   :  { %1615 = vrot.lane.b32.xlu1 %v3195_v34, %s2763_s8 }
0x1061   :  { %v1610_v35 = vpop.permute.xlu0 %1609 }
0x1062   :  { %1613 = vst.msk [vmem:[#allocation4 + $0x28] sm:$0xff] %vm345_vm3, %v1610_v35  ;;  %2443 = vmatmul.mubr.msk.f32.vlgmr.msra.gmra.mrb[20].mxu0 %vm345_vm3, %v1610_v35 }
0x1063   :  { %2596 = vmatpush3.bf16.msra.mxu0 %v2901_v30  ;;  %2464 = vmatprep.mubr.msk.f32.mxu0 %vm2760_vm1, %v2761_v45 }
0x1064   :  { %2597 = vmatprep.subr.bf16.mxu0 %v2759_v31 }
0x1065   :  { %v1616_v36 = vpop.permute.xlu1 %1615 }
0x1066   :  { %1619 = vst.msk [vmem:[#allocation6 + $0x10] sm:$0xff] %vm345_vm3, %v1616_v36  ;;  %2454 = vmatmul.mubr.msk.f32.vlgmr.msra.gmra.mrb[20].mxu1 %vm345_vm3, %v1616_v36 }
0x1067   :  { %2599 = vmatpush3.bf16.msra.mxu0 %v2933_v40  ;;  %2602 = vmatpush3.bf16.msra.mxu1 %v2908_v33  ;;  %v1621_v33 = vld [vmem:[#allocation2 + $0x30] sm:$0xff] }
0x1068   :  { %2603 = vmatprep.subr.bf16.mxu1 %v2759_v31  ;;  %2475 = vmatprep.mubr.msk.f32.mxu1 %vm2760_vm1, %v2761_v45  ;;  %v1721_v31 = vld [vmem:[#allocation3 + $0x8] sm:$0xff] }
0x106b   :  { %2605 = vmatpush3.bf16.msra.mxu1 %v2937_v41 }
0x1135   :  { %v1690_v30 = vpop.f32.mrb[20].mxu0 }
0x1136   :  { %v1691_v37 = vadd.f32 %v3002_v14, %v1690_v30  ;;  %v2444_v38 = vpop.f32.mrb[21].mxu0 }
0x1138   :  { %1702 = vrot.lane.b32.xlu0 %v1691_v37, %s2762_s4  ;;  %v1694_v40 = vadd.f32 %v1691_v37, %v1621_v33 }
0x1139   :  { %v1790_v39 = vpop.f32.mrb[20].mxu1 }
0x113a   :  { %v1791_v42 = vadd.f32 %v3010_v18, %v1790_v39  ;;  %v2455_v43 = vpop.f32.mrb[21].mxu1  ;;  %v2127_v44 = vmul.f32 -1.442695, %v1694_v40 }
0x113c   :  { %1802 = vrot.lane.b32.xlu1 %v1791_v42, %s2762_s4  ;;  %v1794_v46 = vadd.f32 %v1791_v42, %v1721_v31  ;;  %2687 = vpow2.f32 %v2127_v44 }
0x113e   :  { %v2129_v45 = vmul.f32 -1.442695, %v1794_v46 }
0x1140   :  { %2689 = vpow2.f32 %v2129_v45 }
0x1146   :  { %v2688_v41 = vpop.eup %2687 }
0x1147   :  { %v1698_v47 = vadd.f32 1.0, %v2688_v41 }
0x1149   :  { %2691 = vrcp.f32 %v1698_v47 }
0x114a   :  { %v2690_v48 = vpop.eup %2689 }
0x114b   :  { %v1798_v49 = vadd.f32 1.0, %v2690_v48 }
0x114d   :  { %2693 = vrcp.f32 %v1798_v49 }
0x1153   :  { %v2692_v50 = vpop.eup %2691 }
0x1154   :  { %v1712_v62 = vsub.f32 1.0, %v2692_v50  ;;  %v1718_v0 = vmul.f32 %v2692_v50, %v3190_v26 }
0x1157   :  { %v2694_v53 = vpop.eup %2693 }
0x1158   :  { %v1812_v3 = vsub.f32 1.0, %v2694_v53  ;;  %v1818_v5 = vmul.f32 %v2694_v53, %v3195_v34 }
0x11aa   :  { %v1703_v51 = vpop.permute.xlu0 %1702 }
0x11ab   :  { %v1705_v52 = vmul.f32 %v2692_v50, %v1703_v51 }
0x11ad   :  { %1707 = vrot.lane.b32.xlu0 %v1705_v52, %s2762_s4 }
0x11ae   :  { %v1803_v54 = vpop.permute.xlu1 %1802 }
0x11af   :  { %v1805_v55 = vmul.f32 %v2694_v53, %v1803_v54 }
0x11b1   :  { %1807 = vrot.lane.b32.xlu1 %v1805_v55, %s2762_s4 }
0x121f   :  { %v1708_v56 = vpop.permute.xlu0 %1707 }
0x1220   :  { %v1710_v57 = vadd.f32 %v1708_v56, %v1621_v33 }
0x1222   :  { %2695 = vtanh.f32 %v1710_v57 }
0x1223   :  { %v1808_v58 = vpop.permute.xlu1 %1807 }
0x1224   :  { %v1810_v59 = vadd.f32 %v1808_v58, %v1721_v31 }
0x1226   :  { %2697 = vtanh.f32 %v1810_v59 }
0x122c   :  { %v2696_v60 = vpop.eup %2695 }
0x122d   :  { %1714 = vrot.lane.b32.xlu0 %v2696_v60, %s2763_s8 }
0x1230   :  { %v2698_v61 = vpop.eup %2697 }
0x1231   :  { %1814 = vrot.lane.b32.xlu1 %v2698_v61, %s2763_s8 }
0x129f   :  { %v1715_v63 = vpop.permute.xlu0 %1714 }
0x12a0   :  { %v1717_v1 = vmul.f32 %v1715_v63, %v1712_v62 }
0x12a2   :  { %v1719_v2 = vadd.f32 %v1718_v0, %v1717_v1 }
0x12a3   :  { %v1815_v4 = vpop.permute.xlu1 %1814 }
0x12a4   :  { %v1817_v6 = vmul.f32 %v1815_v4, %v1812_v3  ;;  %1821 = vrot.lane.b32.xlu0 %v1719_v2, %s2763_s8 }
0x12a6   :  { %v1819_v7 = vadd.f32 %v1818_v5, %v1817_v6 }
0x12a8   :  { %1827 = vrot.lane.b32.xlu1 %v1819_v7, %s2763_s8 }
0x1316   :  { %v1822_v8 = vpop.permute.xlu0 %1821 }
0x1317   :  { %1825 = vst.msk [vmem:[#allocation4 + $0x30] sm:$0xff] %vm345_vm3, %v1822_v8  ;;  %2465 = vmatmul.mubr.msk.f32.vlgmr.msra.gmra.mrb[22].mxu0 %vm345_vm3, %v1822_v8 }
0x131a   :  { %v1828_v9 = vpop.permute.xlu1 %1827 }
0x131b   :  { %1831 = vst.msk [vmem:[#allocation6 + $0x8] sm:$0xff] %vm345_vm3, %v1828_v9  ;;  %2476 = vmatmul.mubr.msk.f32.vlgmr.msra.gmra.mrb[22].mxu1 %vm345_vm3, %v1828_v9 }
0x13ea   :  { %v1902_v10 = vpop.f32.mrb[22].mxu0 }
0x13eb   :  { %v1903_v11 = vadd.f32 %v3002_v14, %v1902_v10  ;;  %v2466_v12 = vpop.f32.mrb[23].mxu0 }
0x13ed   :  { %1914 = vrot.lane.b32.xlu0 %v1903_v11, %s2762_s4  ;;  %v1906_v19 = vadd.f32 %v1903_v11, %v1833_v17 }
0x13ee   :  { %v2001_v13 = vpop.f32.mrb[22].mxu1 }
0x13ef   :  { %v2002_v15 = vadd.f32 %v3010_v18, %v2001_v13  ;;  %v2477_v16 = vpop.f32.mrb[23].mxu1  ;;  %v2131_v21 = vmul.f32 -1.442695, %v1906_v19 }
0x13f1   :  { %2013 = vrot.lane.b32.xlu1 %v2002_v15, %s2762_s4  ;;  %v2005_v22 = vadd.f32 %v2002_v15, %v1932_v20  ;;  %2699 = vpow2.f32 %v2131_v21 }
0x13f3   :  { %v2133_v23 = vmul.f32 -1.442695, %v2005_v22 }
0x13f5   :  { %2701 = vpow2.f32 %v2133_v23 }
0x13fb   :  { %v2700_v24 = vpop.eup %2699 }
0x13fc   :  { %v1910_v25 = vadd.f32 1.0, %v2700_v24 }
0x13fe   :  { %2703 = vrcp.f32 %v1910_v25 }
0x13ff   :  { %v2702_v14 = vpop.eup %2701 }
0x1400   :  { %v2009_v26 = vadd.f32 1.0, %v2702_v14 }
0x1402   :  { %2705 = vrcp.f32 %v2009_v26 }
0x1408   :  { %v2704_v27 = vpop.eup %2703 }
0x1409   :  { %v1924_v42 = vsub.f32 1.0, %v2704_v27  ;;  %v1930_v33 = vmul.f32 %v2704_v27, %v1719_v2 }
0x140c   :  { %v2706_v29 = vpop.eup %2705 }
0x140d   :  { %v2023_v44 = vsub.f32 1.0, %v2706_v29  ;;  %v2029_v45 = vmul.f32 %v2706_v29, %v1819_v7 }
0x145f   :  { %v1915_v28 = vpop.permute.xlu0 %1914 }
0x1460   :  { %v1917_v18 = vmul.f32 %v2704_v27, %v1915_v28 }
0x1462   :  { %1919 = vrot.lane.b32.xlu0 %v1917_v18, %s2762_s4 }
0x1463   :  { %v2014_v32 = vpop.permute.xlu1 %2013 }
0x1464   :  { %v2016_v34 = vmul.f32 %v2706_v29, %v2014_v32 }
0x1466   :  { %2018 = vrot.lane.b32.xlu1 %v2016_v34, %s2762_s4 }
0x14d4   :  { %v1920_v35 = vpop.permute.xlu0 %1919 }
0x14d5   :  { %v1922_v36 = vadd.f32 %v1920_v35, %v1833_v17 }
0x14d7   :  { %2707 = vtanh.f32 %v1922_v36 }
0x14d8   :  { %v2019_v30 = vpop.permute.xlu1 %2018 }
0x14d9   :  { %v2021_v37 = vadd.f32 %v2019_v30, %v1932_v20 }
0x14db   :  { %2709 = vtanh.f32 %v2021_v37 }
0x14e1   :  { %v2708_v38 = vpop.eup %2707 }
0x14e2   :  { %1926 = vrot.lane.b32.xlu0 %v2708_v38, %s2763_s8 }
0x14e5   :  { %v2710_v39 = vpop.eup %2709 }
0x14e6   :  { %2025 = vrot.lane.b32.xlu1 %v2710_v39, %s2763_s8 }
0x1554   :  { %v1927_v43 = vpop.permute.xlu0 %1926 }
0x1555   :  { %v1929_v40 = vmul.f32 %v1927_v43, %v1924_v42 }
0x1557   :  { %v1931_v31 = vadd.f32 %v1930_v33, %v1929_v40 }
0x1558   :  { %v2026_v46 = vpop.permute.xlu1 %2025 }
0x1559   :  { %v2028_v41 = vmul.f32 %v2026_v46, %v2023_v44  ;;  %2032 = vrot.lane.b32.xlu0 %v1931_v31, %s2763_s8 }
0x155b   :  { %v2030_v47 = vadd.f32 %v2029_v45, %v2028_v41 }
0x155d   :  { %2038 = vrot.lane.b32.xlu1 %v2030_v47, %s2763_s8 }
0x15cb   :  { %v2033_v48 = vpop.permute.xlu0 %2032 }
0x15cc   :  { %2036 = vst.msk [vmem:[#allocation4 + $0x38] sm:$0xff] %vm345_vm3, %v2033_v48  ;;  %2042 = vst.msk [vmem:[%s3284_s11] sm:$0xff] %vm345_vm3, %v2033_v48 }
0x15cd   :  { %2722 = shalt.err (!%p2719_p4)
}
0x15ce   :  { %s2723_s2 = scalar_lea.hbm %s3282_s9, 1024 }
0x15cf   :  { %p2724_p5 = scmp.ne.s32.totalorder %s3282_s9, %s2723_s2  ;;  %p2727_p6 = scmp.lt.u32.totalorder %s2723_s2, %s3282_s9 }
0x15d1   :  { %p2729_p7 = pnand %p2727_p6, %p2724_p5 }
0x15d3   :  { %2732 = shalt.err (!%p2729_p7)
}
0x15d4   :  { %s2766_s11 = smov 128   ;;  %s2767_s22 = smov 8   ;;  %v2039_v49 = vpop.permute.xlu1 %2038 }
0x15d5   :  { %2055 = dma.vmem_to_hbm [thread:$0]  %s2050_s13, 1024, %s3282_s9, [#allocation5], %s2766_s11, %s2766_s11, %s2767_s22   ;;  %2041 = vst.msk [vmem:[#allocation6] sm:$0xff] %vm345_vm3, %v2039_v49 }
0x15d6   :  { %2043 = vst.msk [vmem:[%s3285_s12] sm:$0xff] %vm345_vm3, %v2039_v49  ;;  %s2733_s26 = scalar_lea.vmem %s2062_s15, 1024  ;;  %p2738_p9 = scmp.lt.s32.totalorder %s2062_s15, %s2062_s15 }
0x15d7   :  { %p2734_p8 = scmp.ne.s32.totalorder %s2062_s15, %s2733_s26  ;;  %p2739_p10 = scmp.lt.s32.totalorder %s2733_s26, %s2733_s26 }
0x15d9   :  { %p2740_p11 = por %p2739_p10, %p2738_p9 }
0x15db   :  { %p2741_p12 = pnand %p2740_p11, %p2734_p8 }
0x15dd   :  { %2744 = shalt.err (!%p2741_p12)
}
0x15de   :  { %s2745_s9 = scalar_lea.hbm %s3283_s10, 1024 }
0x15df   :  { %p2746_p13 = scmp.ne.s32.totalorder %s3283_s10, %s2745_s9  ;;  %p2749_p0 = scmp.lt.u32.totalorder %s2745_s9, %s3283_s10 }
0x15e1   :  { %p2751_p1 = pnand %p2749_p0, %p2746_p13 }
0x15e3   :  { %2754 = shalt.err (!%p2751_p1)
}
0x15e4   :  { %2067 = dma.vmem_to_hbm [thread:$0]  %s2062_s15, 1024, %s3283_s10, [#allocation7], %s2766_s11, %s2766_s11, %s2767_s22  }
0x15e5   :  { %2755 = dma.done.wait [#allocation5], 1024  }
0x15e6   :  { %2756 = vsyncadd [#allocation5], 4294966272 }
0x15e7   :  { %2757 = dma.done.wait [#allocation7], 1024  }
0x15e8   :  { %2758 = vsyncadd [#allocation7], 4294966272 }
0x15e9   :  { %2082 = vsyncpa [#allocation5], 1 }
0x15ea   :  { %2083 = vsyncpa [#allocation7], 1 }

</bundles_post_ra>
